<compile_context>
chip_gen: v7x
topology: tpu7x:2x2x1
jax: 0.10.0
libtpu: 0.0.40
codegen_flags: <defaults>
</compile_context>

<pallas_src>
import functools

import numpy as np
import jax
import jax.numpy as jnp
from jax.experimental import pallas as pl
from jax.experimental.pallas import tpu as pltpu


def _layernorm(x, gamma, beta, eps=1e-5):
    mean = jnp.mean(x, axis=-1, keepdims=True)
    var = jnp.mean(jnp.square(x - mean), axis=-1, keepdims=True)
    return (x - mean) * jax.lax.rsqrt(var + eps) * gamma + beta


def skeleton_encoder_kernel(
        x_ref, base_ref, w_emb_ref, w_qkv_ref, wo_ref, w1_ref, w2_ref,
        vecs_ref, out_ref, *, b_tile, seq_len, num_heads, head_dim):
    M, D = out_ref.shape          # M = b_tile * seq_pad
    seq = M // b_tile
    ff = w1_ref.shape[1]
    bf16 = jnp.bfloat16

    # Packed small vectors (one DMA): [b_qkv, bo, g1, beta1, b1, b2, g2, beta2].
    b_qkv = vecs_ref[0:1, :3 * D]
    bo    = vecs_ref[1:2, :D]
    g1    = vecs_ref[2:3, :D]
    be1   = vecs_ref[3:4, :D]
    b1    = vecs_ref[4:5, :ff]
    b2    = vecs_ref[5:6, :D]
    g2    = vecs_ref[6:7, :D]
    be2   = vecs_ref[7:8, :D]

    # 1) skelEmbedding + [muQuery, sigmaQuery] + positional encoding.
    #    base_ref already holds (queries | PE | embedding bias); the query rows
    #    of x are zero, so one GEMM + one aligned add builds xseq.
    xseq = jnp.dot(x_ref[...], w_emb_ref[...],
                   preferred_element_type=jnp.float32) + base_ref[...]

    # 2) fused Q/K/V projection over the whole (M, D) slab (Q scale pre-folded).
    qkv = jnp.dot(xseq.astype(bf16), w_qkv_ref[...],
                  preferred_element_type=jnp.float32) + b_qkv
    qkv3 = qkv.reshape(b_tile, seq, 3 * D)

    # Additive key mask for padded sequence positions (static no-op if aligned).
    if seq != seq_len:
        key_idx = jax.lax.broadcasted_iota(jnp.int32, (1, 1, seq), 2)
        key_mask = jnp.where(key_idx < seq_len, 0.0, -1e30).astype(jnp.float32)
    else:
        key_mask = None

    # 3) multi-head self-attention: head-batched dot_generals over the batch
    #    tile; per-head output projection through row slices of W_o, summed.
    att = None
    for h in range(num_heads):
        lo = h * head_dim
        qh = qkv3[:, :, lo:lo + head_dim].astype(bf16)
        kh = qkv3[:, :, D + lo:D + lo + head_dim].astype(bf16)
        vh = qkv3[:, :, 2 * D + lo:2 * D + lo + head_dim].astype(bf16)
        s = jax.lax.dot_general(qh, kh, (((2,), (2,)), ((0,), (0,))),
                                preferred_element_type=jnp.float32)
        if key_mask is not None:
            s = s + key_mask
        s = s - jnp.max(s, axis=-1, keepdims=True)
        e = jnp.exp(s)
        p = e / jnp.sum(e, axis=-1, keepdims=True)            # exact softmax
        oh = jax.lax.dot_general(p.astype(bf16), vh,
                                 (((2,), (1,)), ((0,), (0,))),
                                 preferred_element_type=jnp.float32)
        part = jnp.dot(oh.reshape(M, head_dim).astype(bf16),
                       wo_ref[lo:lo + head_dim, :],
                       preferred_element_type=jnp.float32)
        att = part if att is None else att + part
    att = att + bo

    # 4) residual + LayerNorm1 (PyTorch post-norm; dropout = identity in eval).
    h1 = _layernorm(xseq + att, g1, be1)

    # 5) feed-forward with exact (erf) GELU, matching F.gelu.
    f = jnp.dot(h1.astype(bf16), w1_ref[...],
                preferred_element_type=jnp.float32) + b1
    f = 0.5 * f * (1.0 + jax.lax.erf(f * (1.0 / float(np.sqrt(2.0)))))
    ffn = jnp.dot(f.astype(bf16), w2_ref[...],
                  preferred_element_type=jnp.float32) + b2

    # 6) residual + LayerNorm2.
    out_ref[...] = _layernorm(h1 + ffn, g2, be2)


def make_positional_encoding(d_model, max_len=5000):
    pe = np.zeros((max_len, d_model), np.float32)
    position = np.arange(0, max_len, dtype=np.float32)[:, None]
    div_term = np.exp(np.arange(0, d_model, 2).astype(np.float32)
                      * (-np.log(10000.0) / d_model))
    pe[:, 0::2] = np.sin(position * div_term)
    pe[:, 1::2] = np.cos(position * div_term)
    return jnp.asarray(pe)


def init_params(key, njoints=17, nfeats=3, latent_dim=256, ff_size=1024):
    input_feats = njoints * nfeats
    ks = jax.random.split(key, 9)
    s = 0.02
    zD = jnp.zeros((1, latent_dim), jnp.float32)
    return dict(
        mu_query=jax.random.normal(ks[0], (1, latent_dim), jnp.float32),
        sigma_query=jax.random.normal(ks[1], (1, latent_dim), jnp.float32),
        w_emb=s * jax.random.normal(ks[2], (input_feats, latent_dim), jnp.float32),
        b_emb=zD,
        wq=s * jax.random.normal(ks[3], (latent_dim, latent_dim), jnp.float32), bq=zD,
        wk=s * jax.random.normal(ks[4], (latent_dim, latent_dim), jnp.float32), bk=zD,
        wv=s * jax.random.normal(ks[5], (latent_dim, latent_dim), jnp.float32), bv=zD,
        wo=s * jax.random.normal(ks[6], (latent_dim, latent_dim), jnp.float32), bo=zD,
        g1=jnp.ones((1, latent_dim), jnp.float32), beta1=zD,
        w1=s * jax.random.normal(ks[7], (latent_dim, ff_size), jnp.float32),
        b1=jnp.zeros((1, ff_size), jnp.float32),
        w2=s * jax.random.normal(ks[8], (ff_size, latent_dim), jnp.float32),
        b2=zD,
        g2=jnp.ones((1, latent_dim), jnp.float32), beta2=zD,
    )


def skeleton_encoder(x, params, *, latent_dim=256, num_heads=4, batch_tile=16):
    """Returns (nframes + 2, bs, latent_dim), matching the PyTorch module."""
    bs, nj, nf, nframes = x.shape
    input_feats = nj * nf
    seq_len = nframes + 2                    # [muQuery, sigmaQuery, frames...]
    seq_pad = ((seq_len + 15) // 16) * 16    # sublane-aligned for f32 & bf16
    head_dim = latent_dim // num_heads
    ff_size = params['w1'].shape[1]
    f_pad = ((input_feats + 63) // 64) * 64  # full-dim block => 64 is enough

    # Batch tile: B_TILE*seq >= 256 fills the v6e/v7x MXU; v5e is happy at 128.
    # For tiny batches shrink the tile rather than padding (keeps grid >= 1 and,
    # when bs allows, >= 2 so both v7x TensorCores get work).
    b_tile = max(1, min(batch_tile, bs))
    bs_pad = ((bs + b_tile - 1) // b_tile) * b_tile
    grid = bs_pad // b_tile
    m_tile = b_tile * seq_pad

    # glue: (bs, nj, nf, T) -> (bs, T, F); prepend 2 zero rows (query slots get
    # no embedding term); zero-pad batch/sequence/feature; flatten; cast bf16.
    x_tok = jnp.transpose(x, (0, 3, 1, 2)).reshape(bs, nframes, input_feats)
    x_tok = jnp.pad(x_tok, ((0, bs_pad - bs),
                            (2, seq_pad - seq_len),
                            (0, f_pad - input_feats)))
    x2d = x_tok.reshape(bs_pad * seq_pad, f_pad).astype(jnp.bfloat16)

    # glue: fold muQuery / sigmaQuery / PE / embedding bias into one additive
    # base slab, pre-tiled to the (m_tile, D) batch-tile layout.
    pe = make_positional_encoding(latent_dim)[:seq_pad]
    add = jnp.concatenate(
        [params['mu_query'], params['sigma_query'],
         jnp.broadcast_to(params['b_emb'], (seq_pad - 2, latent_dim))], axis=0)
    base = jnp.tile(pe + add, (b_tile, 1))                     # (m_tile, D) f32

    # glue: fused QKV with 1/sqrt(head_dim) folded into the Q third; bf16 weights.
    scale = 1.0 / float(np.sqrt(head_dim))
    w_qkv = jnp.concatenate([params['wq'] * scale, params['wk'], params['wv']],
                            axis=1).astype(jnp.bfloat16)
    w_emb = jnp.pad(params['w_emb'],
                    ((0, f_pad - input_feats), (0, 0))).astype(jnp.bfloat16)
    wo = params['wo'].astype(jnp.bfloat16)
    w1 = params['w1'].astype(jnp.bfloat16)
    w2 = params['w2'].astype(jnp.bfloat16)

    # glue: pack the eight small vectors into one (8, max_w) f32 slab.
    b_qkv = jnp.concatenate([params['bq'] * scale, params['bk'], params['bv']],
                            axis=1)
    max_w = max(3 * latent_dim, ff_size, latent_dim)

    def row(v):
        return jnp.pad(v, ((0, 0), (0, max_w - v.shape[1])))

    vecs = jnp.concatenate(
        [row(b_qkv), row(params['bo']), row(params['g1']), row(params['beta1']),
         row(params['b1']), row(params['b2']), row(params['g2']),
         row(params['beta2'])], axis=0)                         # (8, max_w)

    kernel = functools.partial(skeleton_encoder_kernel, b_tile=b_tile,
                               seq_len=seq_len, num_heads=num_heads,
                               head_dim=head_dim)

    def const_spec(shape):
        return pl.BlockSpec(shape, lambda b: (0,) * len(shape))

    out2d = pl.pallas_call(
        kernel,
        grid=(grid,),
        in_specs=[
            pl.BlockSpec((m_tile, f_pad), lambda b: (b, 0)),    # tokens
            const_spec(base.shape),
            const_spec(w_emb.shape),
            const_spec(w_qkv.shape),
            const_spec(wo.shape),
            const_spec(w1.shape),
            const_spec(w2.shape),
            const_spec(vecs.shape),
        ],
        out_specs=pl.BlockSpec((m_tile, latent_dim), lambda b: (b, 0)),
        out_shape=jax.ShapeDtypeStruct((bs_pad * seq_pad, latent_dim),
                                       jnp.float32),
        compiler_params=pltpu.CompilerParams(
            dimension_semantics=("parallel",),
            vmem_limit_bytes=32 * 1024 * 1024),
    )(x2d, base, w_emb, w_qkv, wo, w1, w2, vecs)

    out = out2d.reshape(bs_pad, seq_pad, latent_dim)[:bs, :seq_len]
    return jnp.transpose(out, (1, 0, 2))       # (nframes+2, bs, latent_dim)


def skeleton_encoder_ref(x, params, *, latent_dim=256, num_heads=4):
    """Pure-JAX f32 reference mirroring the PyTorch module (eval mode)."""
    bs, nj, nf, nframes = x.shape
    F = nj * nf
    hd = latent_dim // num_heads
    xt = jnp.transpose(x, (0, 3, 1, 2)).reshape(bs, nframes, F)
    emb = xt @ params['w_emb'] + params['b_emb']
    mu = jnp.broadcast_to(params['mu_query'], (bs, 1, latent_dim))
    si = jnp.broadcast_to(params['sigma_query'], (bs, 1, latent_dim))
    xseq = jnp.concatenate([mu, si, emb], axis=1)
    xseq = xseq + make_positional_encoding(latent_dim)[:nframes + 2]
    scale = 1.0 / float(np.sqrt(hd))
    q = (xseq @ params['wq'] + params['bq']) * scale
    k = xseq @ params['wk'] + params['bk']
    v = xseq @ params['wv'] + params['bv']

    def split(t):
        return t.reshape(bs, -1, num_heads, hd).transpose(0, 2, 1, 3)

    s = jnp.einsum('bhqd,bhkd->bhqk', split(q), split(k))
    p = jax.nn.softmax(s, axis=-1)
    o = jnp.einsum('bhqk,bhkd->bhqd', p, split(v))
    o = o.transpose(0, 2, 1, 3).reshape(bs, -1, latent_dim)
    att = o @ params['wo'] + params['bo']

    def ln(t, g, b):
        m = t.mean(-1, keepdims=True)
        vv = jnp.mean(jnp.square(t - m), -1, keepdims=True)
        return (t - m) * jax.lax.rsqrt(vv + 1e-5) * g + b

    h1 = ln(xseq + att, params['g1'], params['beta1'])
    f = h1 @ params['w1'] + params['b1']
    f = 0.5 * f * (1.0 + jax.lax.erf(f * (1.0 / float(np.sqrt(2.0)))))
    ffn = f @ params['w2'] + params['b2']
    out = ln(h1 + ffn, params['g2'], params['beta2'])
    return jnp.transpose(out, (1, 0, 2))


if __name__ == "__main__":
    key = jax.random.PRNGKey(0)
    k_x, k_p = jax.random.split(key)
    bs, njoints, nfeats, nframes = 2, 17, 3, 14       # seq_len = 16
    x = jax.random.normal(k_x, (bs, njoints, nfeats, nframes), jnp.float32)
    params = init_params(k_p, njoints=njoints, nfeats=nfeats)

    out = jax.block_until_ready(skeleton_encoder(x, params))
    assert out.shape == (nframes + 2, bs, 256), out.shape

    ref = jax.block_until_ready(skeleton_encoder_ref(x, params))
    err = float(jnp.max(jnp.abs(out - ref)))
    assert bool(jnp.all(jnp.isfinite(out))) and err < 1e-1, err
    print("KERNEL_OK")
</pallas_src>

<mosaic_0001>
module attributes {stable_mosaic.version = 11 : i64} {
  func.func @skeleton_encoder_kernel(%arg0: i32, %arg1: memref<32x64xbf16, #tpu.memory_space<vmem>>, %arg2: memref<32x256xf32, #tpu.memory_space<vmem>>, %arg3: memref<64x256xbf16, #tpu.memory_space<vmem>>, %arg4: memref<256x768xbf16, #tpu.memory_space<vmem>>, %arg5: memref<256x256xbf16, #tpu.memory_space<vmem>>, %arg6: memref<256x1024xbf16, #tpu.memory_space<vmem>>, %arg7: memref<1024x256xbf16, #tpu.memory_space<vmem>>, %arg8: memref<8x1024xf32, #tpu.memory_space<vmem>>, %arg9: memref<32x256xf32, #tpu.memory_space<vmem>>) attributes {dimension_semantics = [#tpu.dimension_semantics<parallel>], iteration_bounds = array<i64: 1>, scalar_prefetch = 0 : i64, scratch_operands = 0 : i64, tpu.core_type = #tpu.core_type<tc>, window_params = [{transform_indices = @transform_0, window_bounds = array<i64: 32, 64>}, {pipeline_mode = #tpu.pipeline_mode<synchronous>, transform_indices = @transform_1, window_bounds = array<i64: 32, 256>}, {pipeline_mode = #tpu.pipeline_mode<synchronous>, transform_indices = @transform_2, window_bounds = array<i64: 64, 256>}, {pipeline_mode = #tpu.pipeline_mode<synchronous>, transform_indices = @transform_3, window_bounds = array<i64: 256, 768>}, {pipeline_mode = #tpu.pipeline_mode<synchronous>, transform_indices = @transform_4, window_bounds = array<i64: 256, 256>}, {pipeline_mode = #tpu.pipeline_mode<synchronous>, transform_indices = @transform_5, window_bounds = array<i64: 256, 1024>}, {pipeline_mode = #tpu.pipeline_mode<synchronous>, transform_indices = @transform_6, window_bounds = array<i64: 1024, 256>}, {pipeline_mode = #tpu.pipeline_mode<synchronous>, transform_indices = @transform_7, window_bounds = array<i64: 8, 1024>}, {transform_indices = @transform_8, window_bounds = array<i64: 32, 256>}]} {
    %c0 = arith.constant 0 : index
    %c0_0 = arith.constant 0 : index
    %0 = vector.load %arg8[%c0, %c0_0] : memref<8x1024xf32, #tpu.memory_space<vmem>>, vector<1x768xf32>
    %c1 = arith.constant 1 : index
    %c0_1 = arith.constant 0 : index
    %1 = vector.load %arg8[%c1, %c0_1] : memref<8x1024xf32, #tpu.memory_space<vmem>>, vector<1x256xf32>
    %c2 = arith.constant 2 : index
    %c0_2 = arith.constant 0 : index
    %2 = vector.load %arg8[%c2, %c0_2] : memref<8x1024xf32, #tpu.memory_space<vmem>>, vector<1x256xf32>
    %c3 = arith.constant 3 : index
    %c0_3 = arith.constant 0 : index
    %3 = vector.load %arg8[%c3, %c0_3] : memref<8x1024xf32, #tpu.memory_space<vmem>>, vector<1x256xf32>
    %c4 = arith.constant 4 : index
    %c0_4 = arith.constant 0 : index
    %4 = vector.load %arg8[%c4, %c0_4] : memref<8x1024xf32, #tpu.memory_space<vmem>>, vector<1x1024xf32>
    %c5 = arith.constant 5 : index
    %c0_5 = arith.constant 0 : index
    %5 = vector.load %arg8[%c5, %c0_5] : memref<8x1024xf32, #tpu.memory_space<vmem>>, vector<1x256xf32>
    %c6 = arith.constant 6 : index
    %c0_6 = arith.constant 0 : index
    %6 = vector.load %arg8[%c6, %c0_6] : memref<8x1024xf32, #tpu.memory_space<vmem>>, vector<1x256xf32>
    %c7 = arith.constant 7 : index
    %c0_7 = arith.constant 0 : index
    %7 = vector.load %arg8[%c7, %c0_7] : memref<8x1024xf32, #tpu.memory_space<vmem>>, vector<1x256xf32>
    %c0_8 = arith.constant 0 : index
    %c0_9 = arith.constant 0 : index
    %8 = vector.load %arg1[%c0_8, %c0_9] : memref<32x64xbf16, #tpu.memory_space<vmem>>, vector<32x64xbf16>
    %c0_10 = arith.constant 0 : index
    %c0_11 = arith.constant 0 : index
    %9 = vector.load %arg3[%c0_10, %c0_11] : memref<64x256xbf16, #tpu.memory_space<vmem>>, vector<64x256xbf16>
    %cst = arith.constant dense<0.000000e+00> : vector<32x256xf32>
    %10 = tpu.matmul %8, %9, %cst {dimension_numbers = #tpu.dot_dimension_numbers<[1], [0], [0], [1], [0, 0, 1, 1], [], []>} : vector<32x64xbf16>, vector<64x256xbf16>, vector<32x256xf32> -> vector<32x256xf32>
    %c0_12 = arith.constant 0 : index
    %c0_13 = arith.constant 0 : index
    %11 = vector.load %arg2[%c0_12, %c0_13] : memref<32x256xf32, #tpu.memory_space<vmem>>, vector<32x256xf32>
    %12 = arith.addf %10, %11 : vector<32x256xf32>
    %13 = arith.truncf %12 : vector<32x256xf32> to vector<32x256xbf16>
    %c0_14 = arith.constant 0 : index
    %c0_15 = arith.constant 0 : index
    %14 = vector.load %arg4[%c0_14, %c0_15] : memref<256x768xbf16, #tpu.memory_space<vmem>>, vector<256x768xbf16>
    %cst_16 = arith.constant dense<0.000000e+00> : vector<32x768xf32>
    %15 = tpu.matmul %13, %14, %cst_16 {dimension_numbers = #tpu.dot_dimension_numbers<[1], [0], [0], [1], [0, 0, 1, 1], [], []>} : vector<32x256xbf16>, vector<256x768xbf16>, vector<32x768xf32> -> vector<32x768xf32>
    %16 = vector.broadcast %0 : vector<1x768xf32> to vector<32x768xf32>
    %17 = arith.addf %15, %16 : vector<32x768xf32>
    %18 = vector.shape_cast %17 : vector<32x768xf32> to vector<2x16x768xf32>
    %19 = vector.extract_strided_slice %18 {offsets = [0, 0, 0], sizes = [2, 16, 64], strides = [1, 1, 1]} : vector<2x16x768xf32> to vector<2x16x64xf32>
    %20 = arith.truncf %19 : vector<2x16x64xf32> to vector<2x16x64xbf16>
    %21 = vector.extract_strided_slice %18 {offsets = [0, 0, 256], sizes = [2, 16, 64], strides = [1, 1, 1]} : vector<2x16x768xf32> to vector<2x16x64xf32>
    %22 = arith.truncf %21 : vector<2x16x64xf32> to vector<2x16x64xbf16>
    %23 = vector.extract_strided_slice %18 {offsets = [0, 0, 512], sizes = [2, 16, 64], strides = [1, 1, 1]} : vector<2x16x768xf32> to vector<2x16x64xf32>
    %24 = arith.truncf %23 : vector<2x16x64xf32> to vector<2x16x64xbf16>
    %cst_17 = arith.constant dense<0.000000e+00> : vector<2x16x16xf32>
    %25 = tpu.matmul %20, %22, %cst_17 {dimension_numbers = #tpu.dot_dimension_numbers<[2], [2], [1], [1], [0, 0, 0, 1, 1, 1], [0], [0]>} : vector<2x16x64xbf16>, vector<2x16x64xbf16>, vector<2x16x16xf32> -> vector<2x16x16xf32>
    %cst_18 = arith.constant dense<0xFF800000> : vector<2x16xf32>
    %26 = vector.multi_reduction <maximumf>, %25, %cst_18 [2] : vector<2x16x16xf32> to vector<2x16xf32>
    %27 = vector.shape_cast %26 : vector<2x16xf32> to vector<2x16x1xf32>
    %28 = vector.broadcast %27 : vector<2x16x1xf32> to vector<2x16x16xf32>
    %29 = arith.subf %25, %28 : vector<2x16x16xf32>
    %30 = math.exp %29 : vector<2x16x16xf32>
    %cst_19 = arith.constant dense<0.000000e+00> : vector<2x16xf32>
    %31 = vector.multi_reduction <add>, %30, %cst_19 [2] : vector<2x16x16xf32> to vector<2x16xf32>
    %32 = vector.shape_cast %31 : vector<2x16xf32> to vector<2x16x1xf32>
    %33 = vector.broadcast %32 : vector<2x16x1xf32> to vector<2x16x16xf32>
    %34 = arith.divf %30, %33 : vector<2x16x16xf32>
    %35 = arith.truncf %34 : vector<2x16x16xf32> to vector<2x16x16xbf16>
    %cst_20 = arith.constant dense<0.000000e+00> : vector<2x16x64xf32>
    %36 = tpu.matmul %35, %24, %cst_20 {dimension_numbers = #tpu.dot_dimension_numbers<[2], [1], [1], [2], [0, 0, 0, 1, 1, 2], [0], [0]>} : vector<2x16x16xbf16>, vector<2x16x64xbf16>, vector<2x16x64xf32> -> vector<2x16x64xf32>
    %37 = vector.shape_cast %36 : vector<2x16x64xf32> to vector<32x64xf32>
    %38 = arith.truncf %37 : vector<32x64xf32> to vector<32x64xbf16>
    %c0_21 = arith.constant 0 : index
    %c0_22 = arith.constant 0 : index
    %39 = vector.load %arg5[%c0_21, %c0_22] : memref<256x256xbf16, #tpu.memory_space<vmem>>, vector<64x256xbf16>
    %cst_23 = arith.constant dense<0.000000e+00> : vector<32x256xf32>
    %40 = tpu.matmul %38, %39, %cst_23 {dimension_numbers = #tpu.dot_dimension_numbers<[1], [0], [0], [1], [0, 0, 1, 1], [], []>} : vector<32x64xbf16>, vector<64x256xbf16>, vector<32x256xf32> -> vector<32x256xf32>
    %41 = vector.extract_strided_slice %18 {offsets = [0, 0, 64], sizes = [2, 16, 64], strides = [1, 1, 1]} : vector<2x16x768xf32> to vector<2x16x64xf32>
    %42 = arith.truncf %41 : vector<2x16x64xf32> to vector<2x16x64xbf16>
    %43 = vector.extract_strided_slice %18 {offsets = [0, 0, 320], sizes = [2, 16, 64], strides = [1, 1, 1]} : vector<2x16x768xf32> to vector<2x16x64xf32>
    %44 = arith.truncf %43 : vector<2x16x64xf32> to vector<2x16x64xbf16>
    %45 = vector.extract_strided_slice %18 {offsets = [0, 0, 576], sizes = [2, 16, 64], strides = [1, 1, 1]} : vector<2x16x768xf32> to vector<2x16x64xf32>
    %46 = arith.truncf %45 : vector<2x16x64xf32> to vector<2x16x64xbf16>
    %cst_24 = arith.constant dense<0.000000e+00> : vector<2x16x16xf32>
    %47 = tpu.matmul %42, %44, %cst_24 {dimension_numbers = #tpu.dot_dimension_numbers<[2], [2], [1], [1], [0, 0, 0, 1, 1, 1], [0], [0]>} : vector<2x16x64xbf16>, vector<2x16x64xbf16>, vector<2x16x16xf32> -> vector<2x16x16xf32>
    %cst_25 = arith.constant dense<0xFF800000> : vector<2x16xf32>
    %48 = vector.multi_reduction <maximumf>, %47, %cst_25 [2] : vector<2x16x16xf32> to vector<2x16xf32>
    %49 = vector.shape_cast %48 : vector<2x16xf32> to vector<2x16x1xf32>
    %50 = vector.broadcast %49 : vector<2x16x1xf32> to vector<2x16x16xf32>
    %51 = arith.subf %47, %50 : vector<2x16x16xf32>
    %52 = math.exp %51 : vector<2x16x16xf32>
    %cst_26 = arith.constant dense<0.000000e+00> : vector<2x16xf32>
    %53 = vector.multi_reduction <add>, %52, %cst_26 [2] : vector<2x16x16xf32> to vector<2x16xf32>
    %54 = vector.shape_cast %53 : vector<2x16xf32> to vector<2x16x1xf32>
    %55 = vector.broadcast %54 : vector<2x16x1xf32> to vector<2x16x16xf32>
    %56 = arith.divf %52, %55 : vector<2x16x16xf32>
    %57 = arith.truncf %56 : vector<2x16x16xf32> to vector<2x16x16xbf16>
    %cst_27 = arith.constant dense<0.000000e+00> : vector<2x16x64xf32>
    %58 = tpu.matmul %57, %46, %cst_27 {dimension_numbers = #tpu.dot_dimension_numbers<[2], [1], [1], [2], [0, 0, 0, 1, 1, 2], [0], [0]>} : vector<2x16x16xbf16>, vector<2x16x64xbf16>, vector<2x16x64xf32> -> vector<2x16x64xf32>
    %59 = vector.shape_cast %58 : vector<2x16x64xf32> to vector<32x64xf32>
    %60 = arith.truncf %59 : vector<32x64xf32> to vector<32x64xbf16>
    %c64 = arith.constant 64 : index
    %c0_28 = arith.constant 0 : index
    %61 = vector.load %arg5[%c64, %c0_28] : memref<256x256xbf16, #tpu.memory_space<vmem>>, vector<64x256xbf16>
    %cst_29 = arith.constant dense<0.000000e+00> : vector<32x256xf32>
    %62 = tpu.matmul %60, %61, %cst_29 {dimension_numbers = #tpu.dot_dimension_numbers<[1], [0], [0], [1], [0, 0, 1, 1], [], []>} : vector<32x64xbf16>, vector<64x256xbf16>, vector<32x256xf32> -> vector<32x256xf32>
    %63 = arith.addf %40, %62 : vector<32x256xf32>
    %64 = vector.extract_strided_slice %18 {offsets = [0, 0, 128], sizes = [2, 16, 64], strides = [1, 1, 1]} : vector<2x16x768xf32> to vector<2x16x64xf32>
    %65 = arith.truncf %64 : vector<2x16x64xf32> to vector<2x16x64xbf16>
    %66 = vector.extract_strided_slice %18 {offsets = [0, 0, 384], sizes = [2, 16, 64], strides = [1, 1, 1]} : vector<2x16x768xf32> to vector<2x16x64xf32>
    %67 = arith.truncf %66 : vector<2x16x64xf32> to vector<2x16x64xbf16>
    %68 = vector.extract_strided_slice %18 {offsets = [0, 0, 640], sizes = [2, 16, 64], strides = [1, 1, 1]} : vector<2x16x768xf32> to vector<2x16x64xf32>
    %69 = arith.truncf %68 : vector<2x16x64xf32> to vector<2x16x64xbf16>
    %cst_30 = arith.constant dense<0.000000e+00> : vector<2x16x16xf32>
    %70 = tpu.matmul %65, %67, %cst_30 {dimension_numbers = #tpu.dot_dimension_numbers<[2], [2], [1], [1], [0, 0, 0, 1, 1, 1], [0], [0]>} : vector<2x16x64xbf16>, vector<2x16x64xbf16>, vector<2x16x16xf32> -> vector<2x16x16xf32>
    %cst_31 = arith.constant dense<0xFF800000> : vector<2x16xf32>
    %71 = vector.multi_reduction <maximumf>, %70, %cst_31 [2] : vector<2x16x16xf32> to vector<2x16xf32>
    %72 = vector.shape_cast %71 : vector<2x16xf32> to vector<2x16x1xf32>
    %73 = vector.broadcast %72 : vector<2x16x1xf32> to vector<2x16x16xf32>
    %74 = arith.subf %70, %73 : vector<2x16x16xf32>
    %75 = math.exp %74 : vector<2x16x16xf32>
    %cst_32 = arith.constant dense<0.000000e+00> : vector<2x16xf32>
    %76 = vector.multi_reduction <add>, %75, %cst_32 [2] : vector<2x16x16xf32> to vector<2x16xf32>
    %77 = vector.shape_cast %76 : vector<2x16xf32> to vector<2x16x1xf32>
    %78 = vector.broadcast %77 : vector<2x16x1xf32> to vector<2x16x16xf32>
    %79 = arith.divf %75, %78 : vector<2x16x16xf32>
    %80 = arith.truncf %79 : vector<2x16x16xf32> to vector<2x16x16xbf16>
    %cst_33 = arith.constant dense<0.000000e+00> : vector<2x16x64xf32>
    %81 = tpu.matmul %80, %69, %cst_33 {dimension_numbers = #tpu.dot_dimension_numbers<[2], [1], [1], [2], [0, 0, 0, 1, 1, 2], [0], [0]>} : vector<2x16x16xbf16>, vector<2x16x64xbf16>, vector<2x16x64xf32> -> vector<2x16x64xf32>
    %82 = vector.shape_cast %81 : vector<2x16x64xf32> to vector<32x64xf32>
    %83 = arith.truncf %82 : vector<32x64xf32> to vector<32x64xbf16>
    %c128 = arith.constant 128 : index
    %c0_34 = arith.constant 0 : index
    %84 = vector.load %arg5[%c128, %c0_34] : memref<256x256xbf16, #tpu.memory_space<vmem>>, vector<64x256xbf16>
    %cst_35 = arith.constant dense<0.000000e+00> : vector<32x256xf32>
    %85 = tpu.matmul %83, %84, %cst_35 {dimension_numbers = #tpu.dot_dimension_numbers<[1], [0], [0], [1], [0, 0, 1, 1], [], []>} : vector<32x64xbf16>, vector<64x256xbf16>, vector<32x256xf32> -> vector<32x256xf32>
    %86 = arith.addf %63, %85 : vector<32x256xf32>
    %87 = vector.extract_strided_slice %18 {offsets = [0, 0, 192], sizes = [2, 16, 64], strides = [1, 1, 1]} : vector<2x16x768xf32> to vector<2x16x64xf32>
    %88 = arith.truncf %87 : vector<2x16x64xf32> to vector<2x16x64xbf16>
    %89 = vector.extract_strided_slice %18 {offsets = [0, 0, 448], sizes = [2, 16, 64], strides = [1, 1, 1]} : vector<2x16x768xf32> to vector<2x16x64xf32>
    %90 = arith.truncf %89 : vector<2x16x64xf32> to vector<2x16x64xbf16>
    %91 = vector.extract_strided_slice %18 {offsets = [0, 0, 704], sizes = [2, 16, 64], strides = [1, 1, 1]} : vector<2x16x768xf32> to vector<2x16x64xf32>
    %92 = arith.truncf %91 : vector<2x16x64xf32> to vector<2x16x64xbf16>
    %cst_36 = arith.constant dense<0.000000e+00> : vector<2x16x16xf32>
    %93 = tpu.matmul %88, %90, %cst_36 {dimension_numbers = #tpu.dot_dimension_numbers<[2], [2], [1], [1], [0, 0, 0, 1, 1, 1], [0], [0]>} : vector<2x16x64xbf16>, vector<2x16x64xbf16>, vector<2x16x16xf32> -> vector<2x16x16xf32>
    %cst_37 = arith.constant dense<0xFF800000> : vector<2x16xf32>
    %94 = vector.multi_reduction <maximumf>, %93, %cst_37 [2] : vector<2x16x16xf32> to vector<2x16xf32>
    %95 = vector.shape_cast %94 : vector<2x16xf32> to vector<2x16x1xf32>
    %96 = vector.broadcast %95 : vector<2x16x1xf32> to vector<2x16x16xf32>
    %97 = arith.subf %93, %96 : vector<2x16x16xf32>
    %98 = math.exp %97 : vector<2x16x16xf32>
    %cst_38 = arith.constant dense<0.000000e+00> : vector<2x16xf32>
    %99 = vector.multi_reduction <add>, %98, %cst_38 [2] : vector<2x16x16xf32> to vector<2x16xf32>
    %100 = vector.shape_cast %99 : vector<2x16xf32> to vector<2x16x1xf32>
    %101 = vector.broadcast %100 : vector<2x16x1xf32> to vector<2x16x16xf32>
    %102 = arith.divf %98, %101 : vector<2x16x16xf32>
    %103 = arith.truncf %102 : vector<2x16x16xf32> to vector<2x16x16xbf16>
    %cst_39 = arith.constant dense<0.000000e+00> : vector<2x16x64xf32>
    %104 = tpu.matmul %103, %92, %cst_39 {dimension_numbers = #tpu.dot_dimension_numbers<[2], [1], [1], [2], [0, 0, 0, 1, 1, 2], [0], [0]>} : vector<2x16x16xbf16>, vector<2x16x64xbf16>, vector<2x16x64xf32> -> vector<2x16x64xf32>
    %105 = vector.shape_cast %104 : vector<2x16x64xf32> to vector<32x64xf32>
    %106 = arith.truncf %105 : vector<32x64xf32> to vector<32x64xbf16>
    %c192 = arith.constant 192 : index
    %c0_40 = arith.constant 0 : index
    %107 = vector.load %arg5[%c192, %c0_40] : memref<256x256xbf16, #tpu.memory_space<vmem>>, vector<64x256xbf16>
    %cst_41 = arith.constant dense<0.000000e+00> : vector<32x256xf32>
    %108 = tpu.matmul %106, %107, %cst_41 {dimension_numbers = #tpu.dot_dimension_numbers<[1], [0], [0], [1], [0, 0, 1, 1], [], []>} : vector<32x64xbf16>, vector<64x256xbf16>, vector<32x256xf32> -> vector<32x256xf32>
    %109 = arith.addf %86, %108 : vector<32x256xf32>
    %110 = vector.broadcast %1 : vector<1x256xf32> to vector<32x256xf32>
    %111 = arith.addf %109, %110 : vector<32x256xf32>
    %112 = arith.addf %12, %111 : vector<32x256xf32>
    %cst_42 = arith.constant dense<0.000000e+00> : vector<32xf32>
    %113 = vector.multi_reduction <add>, %112, %cst_42 [1] : vector<32x256xf32> to vector<32xf32>
    %114 = vector.shape_cast %113 : vector<32xf32> to vector<32x1xf32>
    %cst_43 = arith.constant 2.560000e+02 : f32
    %115 = vector.broadcast %cst_43 : f32 to vector<32x1xf32>
    %116 = arith.divf %114, %115 : vector<32x1xf32>
    %117 = vector.broadcast %116 : vector<32x1xf32> to vector<32x256xf32>
    %118 = arith.subf %112, %117 : vector<32x256xf32>
    %119 = arith.mulf %118, %118 : vector<32x256xf32>
    %cst_44 = arith.constant dense<0.000000e+00> : vector<32xf32>
    %120 = vector.multi_reduction <add>, %119, %cst_44 [1] : vector<32x256xf32> to vector<32xf32>
    %121 = vector.shape_cast %120 : vector<32xf32> to vector<32x1xf32>
    %cst_45 = arith.constant 2.560000e+02 : f32
    %122 = vector.broadcast %cst_45 : f32 to vector<32x1xf32>
    %123 = arith.divf %121, %122 : vector<32x1xf32>
    %124 = vector.broadcast %116 : vector<32x1xf32> to vector<32x256xf32>
    %125 = arith.subf %112, %124 : vector<32x256xf32>
    %cst_46 = arith.constant 9.99999974E-6 : f32
    %126 = vector.broadcast %cst_46 : f32 to vector<32x1xf32>
    %127 = arith.addf %123, %126 : vector<32x1xf32>
    %128 = math.rsqrt %127 : vector<32x1xf32>
    %129 = vector.broadcast %128 : vector<32x1xf32> to vector<32x256xf32>
    %130 = arith.mulf %125, %129 : vector<32x256xf32>
    %131 = vector.broadcast %2 : vector<1x256xf32> to vector<32x256xf32>
    %132 = arith.mulf %130, %131 : vector<32x256xf32>
    %133 = vector.broadcast %3 : vector<1x256xf32> to vector<32x256xf32>
    %134 = arith.addf %132, %133 : vector<32x256xf32>
    %135 = arith.truncf %134 : vector<32x256xf32> to vector<32x256xbf16>
    %c0_47 = arith.constant 0 : index
    %c0_48 = arith.constant 0 : index
    %136 = vector.load %arg6[%c0_47, %c0_48] : memref<256x1024xbf16, #tpu.memory_space<vmem>>, vector<256x1024xbf16>
    %cst_49 = arith.constant dense<0.000000e+00> : vector<32x1024xf32>
    %137 = tpu.matmul %135, %136, %cst_49 {dimension_numbers = #tpu.dot_dimension_numbers<[1], [0], [0], [1], [0, 0, 1, 1], [], []>} : vector<32x256xbf16>, vector<256x1024xbf16>, vector<32x1024xf32> -> vector<32x1024xf32>
    %138 = vector.broadcast %4 : vector<1x1024xf32> to vector<32x1024xf32>
    %139 = arith.addf %137, %138 : vector<32x1024xf32>
    %cst_50 = arith.constant 5.000000e-01 : f32
    %140 = vector.broadcast %cst_50 : f32 to vector<32x1024xf32>
    %141 = arith.mulf %140, %139 : vector<32x1024xf32>
    %cst_51 = arith.constant 0.707106769 : f32
    %142 = vector.broadcast %cst_51 : f32 to vector<32x1024xf32>
    %143 = arith.mulf %139, %142 : vector<32x1024xf32>
    %144 = math.erf %143 : vector<32x1024xf32>
    %cst_52 = arith.constant 1.000000e+00 : f32
    %145 = vector.broadcast %cst_52 : f32 to vector<32x1024xf32>
    %146 = arith.addf %145, %144 : vector<32x1024xf32>
    %147 = arith.mulf %141, %146 : vector<32x1024xf32>
    %148 = arith.truncf %147 : vector<32x1024xf32> to vector<32x1024xbf16>
    %c0_53 = arith.constant 0 : index
    %c0_54 = arith.constant 0 : index
    %149 = vector.load %arg7[%c0_53, %c0_54] : memref<1024x256xbf16, #tpu.memory_space<vmem>>, vector<1024x256xbf16>
    %cst_55 = arith.constant dense<0.000000e+00> : vector<32x256xf32>
    %150 = tpu.matmul %148, %149, %cst_55 {dimension_numbers = #tpu.dot_dimension_numbers<[1], [0], [0], [1], [0, 0, 1, 1], [], []>} : vector<32x1024xbf16>, vector<1024x256xbf16>, vector<32x256xf32> -> vector<32x256xf32>
    %151 = vector.broadcast %5 : vector<1x256xf32> to vector<32x256xf32>
    %152 = arith.addf %150, %151 : vector<32x256xf32>
    %153 = arith.addf %134, %152 : vector<32x256xf32>
    %cst_56 = arith.constant dense<0.000000e+00> : vector<32xf32>
    %154 = vector.multi_reduction <add>, %153, %cst_56 [1] : vector<32x256xf32> to vector<32xf32>
    %155 = vector.shape_cast %154 : vector<32xf32> to vector<32x1xf32>
    %cst_57 = arith.constant 2.560000e+02 : f32
    %156 = vector.broadcast %cst_57 : f32 to vector<32x1xf32>
    %157 = arith.divf %155, %156 : vector<32x1xf32>
    %158 = vector.broadcast %157 : vector<32x1xf32> to vector<32x256xf32>
    %159 = arith.subf %153, %158 : vector<32x256xf32>
    %160 = arith.mulf %159, %159 : vector<32x256xf32>
    %cst_58 = arith.constant dense<0.000000e+00> : vector<32xf32>
    %161 = vector.multi_reduction <add>, %160, %cst_58 [1] : vector<32x256xf32> to vector<32xf32>
    %162 = vector.shape_cast %161 : vector<32xf32> to vector<32x1xf32>
    %cst_59 = arith.constant 2.560000e+02 : f32
    %163 = vector.broadcast %cst_59 : f32 to vector<32x1xf32>
    %164 = arith.divf %162, %163 : vector<32x1xf32>
    %165 = vector.broadcast %157 : vector<32x1xf32> to vector<32x256xf32>
    %166 = arith.subf %153, %165 : vector<32x256xf32>
    %cst_60 = arith.constant 9.99999974E-6 : f32
    %167 = vector.broadcast %cst_60 : f32 to vector<32x1xf32>
    %168 = arith.addf %164, %167 : vector<32x1xf32>
    %169 = math.rsqrt %168 : vector<32x1xf32>
    %170 = vector.broadcast %169 : vector<32x1xf32> to vector<32x256xf32>
    %171 = arith.mulf %166, %170 : vector<32x256xf32>
    %172 = vector.broadcast %6 : vector<1x256xf32> to vector<32x256xf32>
    %173 = arith.mulf %171, %172 : vector<32x256xf32>
    %174 = vector.broadcast %7 : vector<1x256xf32> to vector<32x256xf32>
    %175 = arith.addf %173, %174 : vector<32x256xf32>
    %c0_61 = arith.constant 0 : index
    %c0_62 = arith.constant 0 : index
    %176 = vector.load %arg9[%c0_61, %c0_62] : memref<32x256xf32, #tpu.memory_space<vmem>>, vector<32x256xf32>
    tpu.vector_store %arg9[%c0_61, %c0_62], %175 {strides = array<i32>} : memref<32x256xf32, #tpu.memory_space<vmem>>, vector<32x256xf32>,
    return
  }
  func.func @transform_0(%arg0: i32) -> (i32, i32) {
    %c0_i32 = arith.constant 0 : i32
    %c0_i32_0 = arith.constant 0 : i32
    return %arg0, %c0_i32 : i32, i32
  }
  func.func @transform_1(%arg0: i32) -> (i32, i32) {
    %c0_i32 = arith.constant 0 : i32
    %c0_i32_0 = arith.constant 0 : i32
    %c0_i32_1 = arith.constant 0 : i32
    return %c0_i32, %c0_i32_0 : i32, i32
  }
  func.func @transform_2(%arg0: i32) -> (i32, i32) {
    %c0_i32 = arith.constant 0 : i32
    %c0_i32_0 = arith.constant 0 : i32
    %c0_i32_1 = arith.constant 0 : i32
    return %c0_i32, %c0_i32_0 : i32, i32
  }
  func.func @transform_3(%arg0: i32) -> (i32, i32) {
    %c0_i32 = arith.constant 0 : i32
    %c0_i32_0 = arith.constant 0 : i32
    %c0_i32_1 = arith.constant 0 : i32
    return %c0_i32, %c0_i32_0 : i32, i32
  }
  func.func @transform_4(%arg0: i32) -> (i32, i32) {
    %c0_i32 = arith.constant 0 : i32
    %c0_i32_0 = arith.constant 0 : i32
    %c0_i32_1 = arith.constant 0 : i32
    return %c0_i32, %c0_i32_0 : i32, i32
  }
  func.func @transform_5(%arg0: i32) -> (i32, i32) {
    %c0_i32 = arith.constant 0 : i32
    %c0_i32_0 = arith.constant 0 : i32
    %c0_i32_1 = arith.constant 0 : i32
    return %c0_i32, %c0_i32_0 : i32, i32
  }
  func.func @transform_6(%arg0: i32) -> (i32, i32) {
    %c0_i32 = arith.constant 0 : i32
    %c0_i32_0 = arith.constant 0 : i32
    %c0_i32_1 = arith.constant 0 : i32
    return %c0_i32, %c0_i32_0 : i32, i32
  }
  func.func @transform_7(%arg0: i32) -> (i32, i32) {
    %c0_i32 = arith.constant 0 : i32
    %c0_i32_0 = arith.constant 0 : i32
    %c0_i32_1 = arith.constant 0 : i32
    return %c0_i32, %c0_i32_0 : i32, i32
  }
  func.func @transform_8(%arg0: i32) -> (i32, i32) {
    %c0_i32 = arith.constant 0 : i32
    %c0_i32_0 = arith.constant 0 : i32
    return %arg0, %c0_i32 : i32, i32
  }
}

</mosaic_0001>

<bundles_post_ra>
// kernel: tpu_custom_call.1
= control target key start
LH: loop header
LB: loop body
LE: loop exit
PB: predicated region body
PF: predicated region fallthrough
CT: control target
= control target key end

     0   :  { %13 = vsyncpa [#allocation3], 0  ;;  %s7239_s0 = inlined_call_operand.hbm [shape: bf16[32,64], index: 0, kind: input, shape index: {}]   ;;  %s7240_s1 = inlined_call_operand.hbm [shape: f32[32,256], index: 1, kind: input, shape index: {}]   ;;  %s7241_s2 = inlined_call_operand.hbm [shape: bf16[64,256], index: 2, kind: input, shape index: {}]   ;;  %s7242_s3 = inlined_call_operand.hbm [shape: bf16[256,768], index: 3, kind: input, shape index: {}]   ;;  %s7243_s4 = inlined_call_operand.hbm [shape: bf16[256,256], index: 4, kind: input, shape index: {}]   ;;  %s7244_s5 = inlined_call_operand.hbm [shape: bf16[256,1024], index: 5, kind: input, shape index: {}]   ;;  %s7245_s6 = inlined_call_operand.hbm [shape: bf16[1024,256], index: 6, kind: input, shape index: {}]   ;;  %s7246_s7 = inlined_call_operand.hbm [shape: f32[8,1024], index: 7, kind: input, shape index: {}]   ;;  %s7247_s8 = inlined_call_operand.hbm [shape: f32[32,256], index: 8, kind: output, shape index: {}]  }
   0x1   :  { %14 = vsyncpa [#allocation6], 0 }
   0x2   :  { %15 = vsyncpa [#allocation9], 0 }
   0x3   :  { %16 = vsyncpa [#allocation12], 0 }
   0x4   :  { %17 = vsyncpa [#allocation15], 0 }
   0x5   :  { %18 = vsyncpa [#allocation4], 0  ;;  %s6313_s27 = smov [#allocation5]   ;;  %s6103_s9 = scalar_lea.hbm %s7240_s1, 1024 }
   0x6   :  { %s36_s28 = sshll.u32 %s6313_s27, 4  ;;  %p6104_p0 = scmp.ne.s32.totalorder %s7240_s1, %s6103_s9  ;;  %s37_s28 = int_to_ptr.vmem [resolvable:$true] %s36_s28 }
   0x7   :  { %p6107_p1 = scmp.lt.u32.totalorder %s6103_s9, %s7240_s1 }
   0x9   :  { %p6109_p2 = pnand %p6107_p1, %p6104_p0 }
   0xb   :  { %6112 = shalt.err (!%p6109_p2)
}
   0xc   :  { %s6113_s14 = scalar_lea.vmem %s37_s28, 1024  ;;  %p6118_p4 = scmp.lt.s32.totalorder %s37_s28, %s37_s28 }
   0xd   :  { %p6114_p3 = scmp.ne.s32.totalorder %s37_s28, %s6113_s14  ;;  %p6119_p5 = scmp.lt.s32.totalorder %s6113_s14, %s6113_s14 }
   0xf   :  { %p6120_p6 = por %p6119_p5, %p6118_p4 }
  0x11   :  { %p6121_p7 = pnand %p6120_p6, %p6114_p3 }
  0x13   :  { %6124 = shalt.err (!%p6121_p7)
}
  0x14   :  { %s6314_s15 = smov 256   ;;  %s6315_s16 = smov 16  }
  0x15   :  { %42 = dma.hbm_to_vmem [thread:$0]  %s7240_s1, 1024, %s37_s28, [#allocation6], %s6314_s15, %s6314_s15, %s6315_s16  }
  0x16   :  { %s6316_s19 = smov [#allocation8]   ;;  %s6125_s23 = scalar_lea.hbm %s7242_s3, 12288 }
  0x17   :  { %s60_s20 = sshll.u32 %s6316_s19, 4  ;;  %p6126_p8 = scmp.ne.s32.totalorder %s7242_s3, %s6125_s23  ;;  %s61_s20 = int_to_ptr.vmem [resolvable:$true] %s60_s20 }
  0x18   :  { %p6129_p9 = scmp.lt.u32.totalorder %s6125_s23, %s7242_s3 }
  0x1a   :  { %p6131_p10 = pnand %p6129_p9, %p6126_p8 }
  0x1c   :  { %6134 = shalt.err (!%p6131_p10)
}
  0x1d   :  { %s6135_s29 = scalar_lea.vmem %s61_s20, 12288  ;;  %p6140_p12 = scmp.lt.s32.totalorder %s61_s20, %s61_s20 }
  0x1e   :  { %p6136_p11 = scmp.ne.s32.totalorder %s61_s20, %s6135_s29  ;;  %p6141_p13 = scmp.lt.s32.totalorder %s6135_s29, %s6135_s29 }
  0x20   :  { %p6142_p0 = por %p6141_p13, %p6140_p12 }
  0x22   :  { %p6143_p1 = pnand %p6142_p0, %p6136_p11 }
  0x24   :  { %6146 = shalt.err (!%p6143_p1)
}
  0x25   :  { %s6317_s1 = smov 384   ;;  %s6318_s28 = smov 24  }
  0x26   :  { %66 = dma.hbm_to_vmem [thread:$0]  %s7242_s3, 12288, %s61_s20, [#allocation9], %s6317_s1, %s6317_s1, %s6318_s28  }
  0x27   :  { %s6319_s10 = smov [#allocation11]   ;;  %s6147_s14 = scalar_lea.hbm %s7244_s5, 16384 }
  0x28   :  { %s84_s11 = sshll.u32 %s6319_s10, 4  ;;  %p6148_p2 = scmp.ne.s32.totalorder %s7244_s5, %s6147_s14  ;;  %s85_s11 = int_to_ptr.vmem [resolvable:$true] %s84_s11 }
  0x29   :  { %p6151_p3 = scmp.lt.u32.totalorder %s6147_s14, %s7244_s5 }
  0x2b   :  { %p6153_p4 = pnand %p6151_p3, %p6148_p2 }
  0x2d   :  { %6156 = shalt.err (!%p6153_p4)
}
  0x2e   :  { %s6157_s22 = scalar_lea.vmem %s85_s11, 16384  ;;  %p6162_p6 = scmp.lt.s32.totalorder %s85_s11, %s85_s11 }
  0x2f   :  { %p6158_p5 = scmp.ne.s32.totalorder %s85_s11, %s6157_s22  ;;  %p6163_p7 = scmp.lt.s32.totalorder %s6157_s22, %s6157_s22 }
  0x31   :  { %p6164_p8 = por %p6163_p7, %p6162_p6 }
  0x33   :  { %p6165_p9 = pnand %p6164_p8, %p6158_p5 }
  0x35   :  { %6168 = shalt.err (!%p6165_p9)
}
  0x36   :  { %s6320_s3 = smov 512   ;;  %s6321_s20 = smov 32  }
  0x37   :  { %90 = dma.hbm_to_vmem [thread:$0]  %s7244_s5, 16384, %s85_s11, [#allocation12], %s6320_s3, %s6320_s3, %s6321_s20  }
  0x38   :  { %s6322_s25 = smov [#allocation2]   ;;  %s6169_s1 = scalar_lea.hbm %s7239_s0, 256 }
  0x39   :  { %s24_s26 = sshll.u32 %s6322_s25, 4  ;;  %p6170_p10 = scmp.ne.s32.totalorder %s7239_s0, %s6169_s1  ;;  %s25_s26 = int_to_ptr.vmem [resolvable:$true] %s24_s26 }
  0x3a   :  { %p6173_p11 = scmp.lt.u32.totalorder %s6169_s1, %s7239_s0 }
  0x3c   :  { %p6175_p12 = pnand %p6173_p11, %p6170_p10 }
  0x3e   :  { %6178 = shalt.err (!%p6175_p12)
}
  0x3f   :  { %s6179_s12 = scalar_lea.vmem %s25_s26, 256  ;;  %p6184_p0 = scmp.lt.s32.totalorder %s25_s26, %s25_s26 }
  0x40   :  { %p6180_p13 = scmp.ne.s32.totalorder %s25_s26, %s6179_s12  ;;  %p6185_p1 = scmp.lt.s32.totalorder %s6179_s12, %s6179_s12 }
  0x42   :  { %p6186_p2 = por %p6185_p1, %p6184_p0 }
  0x44   :  { %p6187_p3 = pnand %p6186_p2, %p6180_p13 }
  0x46   :  { %6190 = shalt.err (!%p6187_p3)
}
  0x47   :  { %s6323_s5 = smov 64   ;;  %s6324_s11 = smov 4  }
  0x48   :  { %30 = dma.hbm_to_vmem [thread:$0]  %s7239_s0, 256, %s25_s26, [#allocation3], %s6323_s5, %s6323_s5, %s6324_s11  }
  0x49   :  { %s6325_s17 = smov [#allocation7]   ;;  %s6191_s22 = scalar_lea.hbm %s7241_s2, 1024 }
  0x4a   :  { %s48_s18 = sshll.u32 %s6325_s17, 4  ;;  %p6192_p4 = scmp.ne.s32.totalorder %s7241_s2, %s6191_s22  ;;  %s49_s18 = int_to_ptr.vmem [resolvable:$true] %s48_s18 }
  0x4b   :  { %p6195_p5 = scmp.lt.u32.totalorder %s6191_s22, %s7241_s2 }
  0x4d   :  { %p6197_p6 = pnand %p6195_p5, %p6192_p4 }
  0x4f   :  { %6200 = shalt.err (!%p6197_p6)
}
  0x50   :  { %s6201_s25 = scalar_lea.vmem %s49_s18, 1024  ;;  %p6206_p8 = scmp.lt.s32.totalorder %s49_s18, %s49_s18 }
  0x51   :  { %p6202_p7 = scmp.ne.s32.totalorder %s49_s18, %s6201_s25  ;;  %p6207_p9 = scmp.lt.s32.totalorder %s6201_s25, %s6201_s25 }
  0x53   :  { %p6208_p10 = por %p6207_p9, %p6206_p8 }
  0x55   :  { %p6209_p11 = pnand %p6208_p10, %p6202_p7 }
  0x57   :  { %6212 = shalt.err (!%p6209_p11)
}
  0x58   :  { %s6326_s0 = smov 128   ;;  %s6327_s26 = smov 8  }
  0x59   :  { %54 = dma.hbm_to_vmem [thread:$0]  %s7241_s2, 1024, %s49_s18, [#allocation6], %s6326_s0, %s6326_s0, %s6327_s26  }
  0x5a   :  { %s6328_s1 = smov [#allocation10]   ;;  %s6329_s30 = smov [#allocation13]  }
  0x5b   :  { %s72_s28 = sshll.u32 %s6328_s1, 4  ;;  %s96_s9 = sshll.u32 %s6329_s30, 4  ;;  %s73_s28 = int_to_ptr.vmem [resolvable:$true] %s72_s28  ;;  %s97_s9 = int_to_ptr.vmem [resolvable:$true] %s96_s9 }
  0x5c   :  { %s6213_s11 = scalar_lea.hbm %s7243_s4, 4096 }
  0x5d   :  { %p6214_p12 = scmp.ne.s32.totalorder %s7243_s4, %s6213_s11  ;;  %p6217_p13 = scmp.lt.u32.totalorder %s6213_s11, %s7243_s4 }
  0x5f   :  { %p6219_p0 = pnand %p6217_p13, %p6214_p12 }
  0x61   :  { %6222 = shalt.err (!%p6219_p0)
}
  0x62   :  { %s6223_s2 = scalar_lea.vmem %s73_s28, 4096  ;;  %p6228_p2 = scmp.lt.s32.totalorder %s73_s28, %s73_s28 }
  0x63   :  { %p6224_p1 = scmp.ne.s32.totalorder %s73_s28, %s6223_s2  ;;  %p6229_p3 = scmp.lt.s32.totalorder %s6223_s2, %s6223_s2 }
  0x65   :  { %p6230_p4 = por %p6229_p3, %p6228_p2 }
  0x67   :  { %p6231_p5 = pnand %p6230_p4, %p6224_p1 }
  0x69   :  { %6234 = shalt.err (!%p6231_p5)
}
  0x6a   :  { %78 = dma.hbm_to_vmem [thread:$0]  %s7243_s4, 4096, %s73_s28, [#allocation9], %s6326_s0, %s6326_s0, %s6327_s26  }
  0x6b   :  { %s6235_s20 = scalar_lea.hbm %s7245_s6, 16384 }
  0x6c   :  { %p6236_p6 = scmp.ne.s32.totalorder %s7245_s6, %s6235_s20  ;;  %p6239_p7 = scmp.lt.u32.totalorder %s6235_s20, %s7245_s6 }
  0x6e   :  { %p6241_p8 = pnand %p6239_p7, %p6236_p6 }
  0x70   :  { %6244 = shalt.err (!%p6241_p8)
}
  0x71   :  { %s6245_s29 = scalar_lea.vmem %s97_s9, 16384  ;;  %p6250_p10 = scmp.lt.s32.totalorder %s97_s9, %s97_s9 }
  0x72   :  { %p6246_p9 = scmp.ne.s32.totalorder %s97_s9, %s6245_s29  ;;  %p6251_p11 = scmp.lt.s32.totalorder %s6245_s29, %s6245_s29 }
  0x74   :  { %p6252_p12 = por %p6251_p11, %p6250_p10 }
  0x76   :  { %p6253_p13 = pnand %p6252_p12, %p6246_p9 }
  0x78   :  { %6256 = shalt.err (!%p6253_p13)
}
  0x79   :  { %102 = dma.hbm_to_vmem [thread:$0]  %s7245_s6, 16384, %s97_s9, [#allocation12], %s6326_s0, %s6326_s0, %s6327_s26  }
  0x7a   :  { %s6330_s28 = smov [#allocation14]   ;;  %s6257_s11 = scalar_lea.hbm %s7246_s7, 1024 }
  0x7b   :  { %s109_s30 = sshll.u32 %s6330_s28, 4  ;;  %p6258_p0 = scmp.ne.s32.totalorder %s7246_s7, %s6257_s11  ;;  %s110_s30 = int_to_ptr.vmem [resolvable:$true] %s109_s30 }
  0x7c   :  { %p6261_p1 = scmp.lt.u32.totalorder %s6257_s11, %s7246_s7 }
  0x7e   :  { %p6263_p2 = pnand %p6261_p1, %p6258_p0 }
  0x80   :  { %6266 = shalt.err (!%p6263_p2)
}
  0x81   :  { %s6267_s2 = scalar_lea.vmem %s110_s30, 1024  ;;  %p6272_p4 = scmp.lt.s32.totalorder %s110_s30, %s110_s30 }
  0x82   :  { %p6268_p3 = scmp.ne.s32.totalorder %s110_s30, %s6267_s2  ;;  %p6273_p5 = scmp.lt.s32.totalorder %s6267_s2, %s6267_s2 }
  0x84   :  { %p6274_p6 = por %p6273_p5, %p6272_p4 }
  0x86   :  { %p6275_p7 = pnand %p6274_p6, %p6268_p3 }
  0x88   :  { %6278 = shalt.err (!%p6275_p7)
}
  0x89   :  { %112 = dma.hbm_to_vmem [thread:$0]  %s7246_s7, 1024, %s110_s30, [#allocation15]  }
  0x8a   :  { %6301 = dma.done.wait [#allocation3], 256  }
  0x8b   :  { %6302 = vsyncadd [#allocation3], 4294967040 }
  0x8c   :  { %6303 = dma.done.wait [#allocation6], 2048  }
  0x8d   :  { %6304 = vsyncadd [#allocation6], 4294965248 }
  0x8e   :  { %6305 = dma.done.wait [#allocation9], 16384  }
  0x8f   :  { %6306 = vsyncadd [#allocation9], 4294950912 }
  0x90   :  { %6307 = dma.done.wait [#allocation12], 32768  }
  0x91   :  { %6308 = vsyncadd [#allocation12], 4294934528 }
  0x92   :  { %6309 = dma.done.wait [#allocation15], 1024  }
  0x93   :  { %6310 = vsyncadd [#allocation15], 4294966272  ;;  %v6331_v0 = vmov 0   ;;  %v5561_v1 = vld [vmem:[#allocation7 + $0x4] ss:$8 sps:$4 sm:$0xff]   ;;  %v5573_v10 = vld [vmem:[#allocation2] sm:$0xff]  }
  0x94   :  { %266 = vmatprep.mubr.bf16.mxu0 %v6331_v0  ;;  %v5563_v2 = vld [vmem:[#allocation7] ss:$8 sps:$4 sm:$0xff]   ;;  %234 = vmatprep.subr.bf16.mxu0 %v5561_v1  ;;  %v5564_v3 = vld [vmem:[#allocation7 + $0x14] ss:$8 sps:$4 sm:$0xff]   ;;  %v5566_v4 = vld [vmem:[#allocation7 + $0x10] ss:$8 sps:$4 sm:$0xff]  }
  0x95   :  { %235 = vmatpush1.bf16.msra.mxu0 %v5563_v2  ;;  %v5567_v5 = vld [vmem:[#allocation7 + $0x24] ss:$8 sps:$4 sm:$0xff]   ;;  %v5569_v6 = vld [vmem:[#allocation7 + $0x20] ss:$8 sps:$4 sm:$0xff]   ;;  %v5570_v7 = vld [vmem:[#allocation7 + $0x34] ss:$8 sps:$4 sm:$0xff]  }
  0x96   :  { %236 = vmatprep.subr.bf16.mxu0 %v5564_v3  ;;  %v5572_v8 = vld [vmem:[#allocation7 + $0x30] ss:$8 sps:$4 sm:$0xff]   ;;  %v5577_v9 = vld [vmem:[#allocation8 + $0x4] ss:$24 sps:$4 sm:$0xff]   ;;  %vm227_vm0 = vcmask 523264   ;;  %v170_v46 = vld [vmem:[#allocation5 + $0x8] sm:$0xff] }
  0x97   :  { %v5575_v11 = vld [vmem:[#allocation8] ss:$24 sps:$4 sm:$0xff]   ;;  %v5580_v12 = vld [vmem:[#allocation8 + $0x34] ss:$24 sps:$4 sm:$0xff]   ;;  %v5578_v13 = vld [vmem:[#allocation8 + $0x30] ss:$24 sps:$4 sm:$0xff]  }
  0x98   :  { %v5583_v14 = vld [vmem:[#allocation8 + $0x64] ss:$24 sps:$4 sm:$0xff]   ;;  %v5581_v16 = vld [vmem:[#allocation8 + $0x60] ss:$24 sps:$4 sm:$0xff]   ;;  %v5586_v17 = vld [vmem:[#allocation8 + $0x94] ss:$24 sps:$4 sm:$0xff]  }
  0x99   :  { %237 = vmatpush1.bf16.msra.mxu0 %v5566_v4  ;;  %v5574_v15 = vld [vmem:[#allocation2 + $0x8] sm:$0xff]   ;;  %v5584_v18 = vld [vmem:[#allocation8 + $0x90] ss:$24 sps:$4 sm:$0xff]   ;;  %v5592_v21 = vld [vmem:[#allocation8 + $0xf4] ss:$24 sps:$4 sm:$0xff]   ;;  %vm6333_vm1 = vmmov 0  }
  0x9a   :  { %238 = vmatprep.subr.bf16.mxu0 %v5567_v5  ;;  %v5589_v19 = vld [vmem:[#allocation8 + $0xc4] ss:$24 sps:$4 sm:$0xff]   ;;  %v5587_v20 = vld [vmem:[#allocation8 + $0xc0] ss:$24 sps:$4 sm:$0xff]   ;;  %v5590_v22 = vld [vmem:[#allocation8 + $0xf0] ss:$24 sps:$4 sm:$0xff]  }
  0x9b   :  { %v5595_v23 = vld [vmem:[#allocation8 + $0x124] ss:$24 sps:$4 sm:$0xff]   ;;  %v5593_v24 = vld [vmem:[#allocation8 + $0x120] ss:$24 sps:$4 sm:$0xff]   ;;  %v5598_v25 = vld [vmem:[#allocation8 + $0x154] ss:$24 sps:$4 sm:$0xff]  }
  0x9c   :  { %v5596_v26 = vld [vmem:[#allocation8 + $0x150] ss:$24 sps:$4 sm:$0xff]   ;;  %v5601_v27 = vld [vmem:[#allocation8 + $0x184] ss:$24 sps:$4 sm:$0xff]   ;;  %v5599_v28 = vld [vmem:[#allocation8 + $0x180] ss:$24 sps:$4 sm:$0xff]  }
  0x9d   :  { %239 = vmatpush1.bf16.msra.mxu0 %v5569_v6  ;;  %v5604_v29 = vld [vmem:[#allocation8 + $0x1b4] ss:$24 sps:$4 sm:$0xff]   ;;  %v5602_v30 = vld [vmem:[#allocation8 + $0x1b0] ss:$24 sps:$4 sm:$0xff]   ;;  %v5607_v31 = vld [vmem:[#allocation8 + $0x1e4] ss:$24 sps:$4 sm:$0xff]  }
  0x9e   :  { %240 = vmatprep.subr.bf16.mxu0 %v5570_v7  ;;  %v5605_v32 = vld [vmem:[#allocation8 + $0x1e0] ss:$24 sps:$4 sm:$0xff]   ;;  %v5610_v33 = vld [vmem:[#allocation8 + $0x214] ss:$24 sps:$4 sm:$0xff]   ;;  %v5608_v34 = vld [vmem:[#allocation8 + $0x210] ss:$24 sps:$4 sm:$0xff]  }
  0x9f   :  { %v5613_v35 = vld [vmem:[#allocation8 + $0x244] ss:$24 sps:$4 sm:$0xff]   ;;  %v5611_v36 = vld [vmem:[#allocation8 + $0x240] ss:$24 sps:$4 sm:$0xff]   ;;  %v5616_v37 = vld [vmem:[#allocation8 + $0x274] ss:$24 sps:$4 sm:$0xff]  }
  0xa0   :  { %v5614_v38 = vld [vmem:[#allocation8 + $0x270] ss:$24 sps:$4 sm:$0xff]   ;;  %v5619_v39 = vld [vmem:[#allocation8 + $0x2a4] ss:$24 sps:$4 sm:$0xff]   ;;  %v5617_v40 = vld [vmem:[#allocation8 + $0x2a0] ss:$24 sps:$4 sm:$0xff]  }
  0xa1   :  { %241 = vmatpush1.bf16.msra.mxu0 %v5572_v8  ;;  %v5622_v41 = vld [vmem:[#allocation8 + $0x2d4] ss:$24 sps:$4 sm:$0xff]   ;;  %v5620_v42 = vld [vmem:[#allocation8 + $0x2d0] ss:$24 sps:$4 sm:$0xff]   ;;  %v172_v48 = vld [vmem:[#allocation5 + $0x18] sm:$0xff]  ;;  %vm1157_vm2 = vcmask 130048  }
  0xa2   :  { %898 = vmatprep.subr.bf16.mxu0 %v5577_v9  ;;  %v5625_v43 = vld [vmem:[#allocation8 + $0xc] ss:$24 sps:$4 sm:$0xff]   ;;  %v171_v45 = vld [vmem:[#allocation5 + $0x10] sm:$0xff]  ;;  %v5623_v58 = vld [vmem:[#allocation8 + $0x8] ss:$24 sps:$4 sm:$0xff]   ;;  %s6334_s7 = smov [#allocation16]  }
  0xa3   :  { %v169_v49 = vld [vmem:[#allocation5] sm:$0xff]  ;;  %v174_v60 = vld [vmem:[#allocation5 + $0x28] sm:$0xff]  ;;  %v5628_v61 = vld [vmem:[#allocation8 + $0x3c] ss:$24 sps:$4 sm:$0xff]  }
  0xa4   :  { %4945 = vmatmul.mubr.msk.bf16.vlgmr.msra.gmra.mrb[0].mxu0 %vm227_vm0, %v5573_v10  ;;  %v173_v57 = vld [vmem:[#allocation5 + $0x20] sm:$0xff]  ;;  %v175_v63 = vld [vmem:[#allocation5 + $0x30] sm:$0xff]  ;;  %v176_v3 = vld [vmem:[#allocation5 + $0x38] sm:$0xff] }
  0xa5   :  { %276 = vmatprep.mubr.bf16.mxu0 %v6331_v0  ;;  %899 = vmatpush1.bf16.msra.mxu0 %v5575_v11  ;;  %v5626_v6 = vld [vmem:[#allocation8 + $0x38] ss:$24 sps:$4 sm:$0xff]   ;;  %v5631_v9 = vld [vmem:[#allocation8 + $0x6c] ss:$24 sps:$4 sm:$0xff]  }
  0xa6   :  { %900 = vmatprep.subr.bf16.mxu0 %v5580_v12 }
  0xa9   :  { %901 = vmatpush1.bf16.msra.mxu0 %v5578_v13  ;;  %v5629_v13 = vld [vmem:[#allocation8 + $0x68] ss:$24 sps:$4 sm:$0xff]  }
  0xaa   :  { %902 = vmatprep.subr.bf16.mxu0 %v5583_v14  ;;  %v5634_v14 = vld [vmem:[#allocation8 + $0x9c] ss:$24 sps:$4 sm:$0xff]  }
  0xac   :  { %4946 = vmatmul.mubr.msk.bf16.gmra.mrb[4].mxu0 %vm227_vm0, %v5574_v15  ;;  %v5632_v15 = vld [vmem:[#allocation8 + $0x98] ss:$24 sps:$4 sm:$0xff]  }
  0xad   :  { %903 = vmatpush1.bf16.msra.mxu0 %v5581_v16  ;;  %v5637_v16 = vld [vmem:[#allocation8 + $0xcc] ss:$24 sps:$4 sm:$0xff]  }
  0xae   :  { %904 = vmatprep.subr.bf16.mxu0 %v5586_v17  ;;  %v5635_v17 = vld [vmem:[#allocation8 + $0xc8] ss:$24 sps:$4 sm:$0xff]  }
  0xb1   :  { %905 = vmatpush1.bf16.msra.mxu0 %v5584_v18  ;;  %v5640_v18 = vld [vmem:[#allocation8 + $0xfc] ss:$24 sps:$4 sm:$0xff]  }
  0xb2   :  { %906 = vmatprep.subr.bf16.mxu0 %v5589_v19  ;;  %v5638_v19 = vld [vmem:[#allocation8 + $0xf8] ss:$24 sps:$4 sm:$0xff]  }
  0xb5   :  { %907 = vmatpush1.bf16.msra.mxu0 %v5587_v20  ;;  %v5643_v20 = vld [vmem:[#allocation8 + $0x12c] ss:$24 sps:$4 sm:$0xff]  }
  0xb6   :  { %908 = vmatprep.subr.bf16.mxu0 %v5592_v21  ;;  %v5641_v21 = vld [vmem:[#allocation8 + $0x128] ss:$24 sps:$4 sm:$0xff]  }
  0xb9   :  { %909 = vmatpush1.bf16.msra.mxu0 %v5590_v22  ;;  %v5646_v22 = vld [vmem:[#allocation8 + $0x15c] ss:$24 sps:$4 sm:$0xff]  }
  0xba   :  { %910 = vmatprep.subr.bf16.mxu0 %v5595_v23  ;;  %v5644_v23 = vld [vmem:[#allocation8 + $0x158] ss:$24 sps:$4 sm:$0xff]  }
  0xbd   :  { %911 = vmatpush1.bf16.msra.mxu0 %v5593_v24  ;;  %v5649_v24 = vld [vmem:[#allocation8 + $0x18c] ss:$24 sps:$4 sm:$0xff]  }
  0xbe   :  { %912 = vmatprep.subr.bf16.mxu0 %v5598_v25  ;;  %v5647_v25 = vld [vmem:[#allocation8 + $0x188] ss:$24 sps:$4 sm:$0xff]  }
  0xc1   :  { %913 = vmatpush1.bf16.msra.mxu0 %v5596_v26  ;;  %v5652_v26 = vld [vmem:[#allocation8 + $0x1bc] ss:$24 sps:$4 sm:$0xff]  }
  0xc2   :  { %914 = vmatprep.subr.bf16.mxu0 %v5601_v27  ;;  %v5650_v27 = vld [vmem:[#allocation8 + $0x1b8] ss:$24 sps:$4 sm:$0xff]  }
  0xc5   :  { %915 = vmatpush1.bf16.msra.mxu0 %v5599_v28  ;;  %v5655_v28 = vld [vmem:[#allocation8 + $0x1ec] ss:$24 sps:$4 sm:$0xff]  }
  0xc6   :  { %916 = vmatprep.subr.bf16.mxu0 %v5604_v29  ;;  %v5653_v29 = vld [vmem:[#allocation8 + $0x1e8] ss:$24 sps:$4 sm:$0xff]  }
  0xc9   :  { %917 = vmatpush1.bf16.msra.mxu0 %v5602_v30  ;;  %v5658_v30 = vld [vmem:[#allocation8 + $0x21c] ss:$24 sps:$4 sm:$0xff]  }
  0xca   :  { %918 = vmatprep.subr.bf16.mxu0 %v5607_v31  ;;  %v5656_v31 = vld [vmem:[#allocation8 + $0x218] ss:$24 sps:$4 sm:$0xff]  }
  0xcd   :  { %919 = vmatpush1.bf16.msra.mxu0 %v5605_v32  ;;  %v5661_v32 = vld [vmem:[#allocation8 + $0x24c] ss:$24 sps:$4 sm:$0xff]  }
  0xce   :  { %920 = vmatprep.subr.bf16.mxu0 %v5610_v33  ;;  %v5659_v33 = vld [vmem:[#allocation8 + $0x248] ss:$24 sps:$4 sm:$0xff]  }
  0xd1   :  { %921 = vmatpush1.bf16.msra.mxu0 %v5608_v34  ;;  %v5664_v34 = vld [vmem:[#allocation8 + $0x27c] ss:$24 sps:$4 sm:$0xff]  }
  0xd2   :  { %922 = vmatprep.subr.bf16.mxu0 %v5613_v35  ;;  %v5662_v35 = vld [vmem:[#allocation8 + $0x278] ss:$24 sps:$4 sm:$0xff]  }
  0xd5   :  { %923 = vmatpush1.bf16.msra.mxu0 %v5611_v36  ;;  %v5667_v36 = vld [vmem:[#allocation8 + $0x2ac] ss:$24 sps:$4 sm:$0xff]  }
  0xd6   :  { %924 = vmatprep.subr.bf16.mxu0 %v5616_v37  ;;  %v5665_v37 = vld [vmem:[#allocation8 + $0x2a8] ss:$24 sps:$4 sm:$0xff]  }
  0xd9   :  { %925 = vmatpush1.bf16.msra.mxu0 %v5614_v38  ;;  %v5670_v38 = vld [vmem:[#allocation8 + $0x2dc] ss:$24 sps:$4 sm:$0xff]  }
  0xda   :  { %926 = vmatprep.subr.bf16.mxu0 %v5619_v39  ;;  %v5668_v39 = vld [vmem:[#allocation8 + $0x2d8] ss:$24 sps:$4 sm:$0xff]  }
  0xdd   :  { %927 = vmatpush1.bf16.msra.mxu0 %v5617_v40  ;;  %v5673_v40 = vld [vmem:[#allocation8 + $0x14] ss:$24 sps:$4 sm:$0xff]  }
  0xde   :  { %928 = vmatprep.subr.bf16.mxu0 %v5622_v41  ;;  %v5671_v41 = vld [vmem:[#allocation8 + $0x10] ss:$24 sps:$4 sm:$0xff]  }
  0xe1   :  { %929 = vmatpush1.bf16.msra.mxu0 %v5620_v42  ;;  %v5676_v42 = vld [vmem:[#allocation8 + $0x44] ss:$24 sps:$4 sm:$0xff]  }
  0xe2   :  { %951 = vmatprep.subr.bf16.mxu0 %v5625_v43  ;;  %v5674_v43 = vld [vmem:[#allocation8 + $0x40] ss:$24 sps:$4 sm:$0xff]  }
 0x177   :  { %v268_v44 = vpop.f32.mrb[0].mxu0 }
 0x178   :  { %v270_v47 = vpop.f32.mrb[1].mxu0  ;;  %v6500_v55 = vadd.f32 %v268_v44, %v169_v49  ;;  %v5679_v44 = vld [vmem:[#allocation8 + $0x74] ss:$24 sps:$4 sm:$0xff]   ;;  %v5683_v49 = vld [vmem:[#allocation8 + $0xd0] ss:$24 sps:$4 sm:$0xff]  }
 0x179   :  { %v272_v50 = vpop.f32.mrb[2].mxu0  ;;  %v6496_v53 = vadd.f32 %v270_v47, %v170_v46  ;;  %v5682_v46 = vld [vmem:[#allocation8 + $0xa4] ss:$24 sps:$4 sm:$0xff]   ;;  %v5680_v47 = vld [vmem:[#allocation8 + $0xa0] ss:$24 sps:$4 sm:$0xff]  }
 0x17a   :  { %v6494_v51 = vadd.f32 %v272_v50, %v171_v45  ;;  %v274_v52 = vpop.f32.mrb[3].mxu0  ;;  %v5677_v45 = vld [vmem:[#allocation8 + $0x70] ss:$24 sps:$4 sm:$0xff]   ;;  %v5688_v50 = vld [vmem:[#allocation8 + $0x104] ss:$24 sps:$4 sm:$0xff]  }
 0x17b   :  { %v6498_v54 = vadd.f32 %v274_v52, %v172_v48  ;;  %v5685_v48 = vld [vmem:[#allocation8 + $0xd4] ss:$24 sps:$4 sm:$0xff]   ;;  %v5686_v52 = vld [vmem:[#allocation8 + $0x100] ss:$24 sps:$4 sm:$0xff]  }
 0x17c   :  { %v6508_v59 = vpack.c.bf16 %v6494_v51, %v6500_v55 }
 0x17d   :  { %v6504_v56 = vpack.c.bf16 %v6498_v54, %v6496_v53 }
 0x17f   :  { %v278_v62 = vpop.f32.mrb[4].mxu0  ;;  %930 = vmatprep.mubr.bf16.mxu0 %v6504_v56 }
 0x180   :  { %v6511_v1 = vadd.f32 %v278_v62, %v173_v57  ;;  %v280_v2 = vpop.f32.mrb[5].mxu0  ;;  %931 = vmatmul.mubr.bf16.vlgmr.msra.gmra.mrb[8].mxu0 %v6508_v59  ;;  %v5691_v57 = vld [vmem:[#allocation8 + $0x134] ss:$24 sps:$4 sm:$0xff]  }
 0x181   :  { %v6514_v4 = vadd.f32 %v280_v2, %v174_v60  ;;  %952 = vmatpush1.bf16.msra.mxu0 %v5623_v58  ;;  %v282_v5 = vpop.f32.mrb[6].mxu0  ;;  %v5689_v58 = vld [vmem:[#allocation8 + $0x130] ss:$24 sps:$4 sm:$0xff]   ;;  %v5694_v60 = vld [vmem:[#allocation8 + $0x164] ss:$24 sps:$4 sm:$0xff]  }
 0x182   :  { %v6516_v7 = vadd.f32 %v282_v5, %v175_v63  ;;  %v284_v8 = vpop.f32.mrb[7].mxu0  ;;  %953 = vmatprep.subr.bf16.mxu0 %v5628_v61  ;;  %v5692_v61 = vld [vmem:[#allocation8 + $0x160] ss:$24 sps:$4 sm:$0xff]   ;;  %v5697_v62 = vld [vmem:[#allocation8 + $0x194] ss:$24 sps:$4 sm:$0xff]  }
 0x183   :  { %v6518_v10 = vadd.f32 %v284_v8, %v176_v3  ;;  %v5700_v63 = vld [vmem:[#allocation8 + $0x1c4] ss:$24 sps:$4 sm:$0xff]   ;;  %v5698_v2 = vld [vmem:[#allocation8 + $0x1c0] ss:$24 sps:$4 sm:$0xff]   ;;  %v5703_v3 = vld [vmem:[#allocation8 + $0x1f4] ss:$24 sps:$4 sm:$0xff]  }
 0x184   :  { %v6522_v11 = vpack.c.bf16 %v6516_v7, %v6511_v1  ;;  %v5701_v5 = vld [vmem:[#allocation8 + $0x1f0] ss:$24 sps:$4 sm:$0xff]   ;;  %v5704_v8 = vld [vmem:[#allocation8 + $0x220] ss:$24 sps:$4 sm:$0xff]  }
 0x185   :  { %v6526_v12 = vpack.c.bf16 %v6518_v10, %v6514_v4  ;;  %954 = vmatpush1.bf16.msra.mxu0 %v5626_v6  ;;  %v5706_v6 = vld [vmem:[#allocation8 + $0x224] ss:$24 sps:$4 sm:$0xff]  }
 0x186   :  { %955 = vmatprep.subr.bf16.mxu0 %v5631_v9  ;;  %v5709_v9 = vld [vmem:[#allocation8 + $0x254] ss:$24 sps:$4 sm:$0xff]  }
 0x187   :  { %940 = vmatprep.mubr.bf16.mxu0 %v6526_v12 }
 0x188   :  { %941 = vmatmul.mubr.bf16.gmra.mrb[12].mxu0 %v6522_v11 }
 0x189   :  { %956 = vmatpush1.bf16.msra.mxu0 %v5629_v13  ;;  %983 = vmatprep.mubr.bf16.mxu0 %v6504_v56  ;;  %v5707_v13 = vld [vmem:[#allocation8 + $0x250] ss:$24 sps:$4 sm:$0xff]  }
 0x18a   :  { %957 = vmatprep.subr.bf16.mxu0 %v5634_v14  ;;  %v5712_v14 = vld [vmem:[#allocation8 + $0x284] ss:$24 sps:$4 sm:$0xff]  }
 0x18d   :  { %958 = vmatpush1.bf16.msra.mxu0 %v5632_v15  ;;  %v5710_v15 = vld [vmem:[#allocation8 + $0x280] ss:$24 sps:$4 sm:$0xff]  }
 0x18e   :  { %959 = vmatprep.subr.bf16.mxu0 %v5637_v16  ;;  %v5715_v16 = vld [vmem:[#allocation8 + $0x2b4] ss:$24 sps:$4 sm:$0xff]  }
 0x191   :  { %960 = vmatpush1.bf16.msra.mxu0 %v5635_v17  ;;  %v5713_v17 = vld [vmem:[#allocation8 + $0x2b0] ss:$24 sps:$4 sm:$0xff]  }
 0x192   :  { %961 = vmatprep.subr.bf16.mxu0 %v5640_v18  ;;  %v5718_v18 = vld [vmem:[#allocation8 + $0x2e4] ss:$24 sps:$4 sm:$0xff]  }
 0x195   :  { %962 = vmatpush1.bf16.msra.mxu0 %v5638_v19  ;;  %v5716_v19 = vld [vmem:[#allocation8 + $0x2e0] ss:$24 sps:$4 sm:$0xff]  }
 0x196   :  { %963 = vmatprep.subr.bf16.mxu0 %v5643_v20  ;;  %v6332_v20 = vmov 0.0  }
 0x197   :  { %5399 = vmatprep.subr.bf16.mxu1 %v6332_v20  ;;  %5401 = vmatprep.mubr.msk.bf16.mxu1 %vm6333_vm1, %v6332_v20 }
 0x199   :  { %964 = vmatpush1.bf16.msra.mxu0 %v5641_v21  ;;  %v388_v21 = vlaneseq }
 0x19a   :  { %965 = vmatprep.subr.bf16.mxu0 %v5646_v22 }
 0x19b   :  { %v6544_v22 = vshrl.u32 %v388_v21, 7 }
 0x19d   :  { %966 = vmatpush1.bf16.msra.mxu0 %v5644_v23  ;;  %v139_v23 = vld [vmem:[#allocation14] ss:$8 sm:$0x30] }
 0x19e   :  { %967 = vmatprep.subr.bf16.mxu0 %v5649_v24  ;;  %v6552_v24 = vsub.s32 1, %v6544_v22 }
 0x1a1   :  { %968 = vmatpush1.bf16.msra.mxu0 %v5647_v25 }
 0x1a2   :  { %969 = vmatprep.subr.bf16.mxu0 %v5652_v26 }
 0x1a5   :  { %970 = vmatpush1.bf16.msra.mxu0 %v5650_v27 }
 0x1a6   :  { %971 = vmatprep.subr.bf16.mxu0 %v5655_v28 }
 0x1a9   :  { %972 = vmatpush1.bf16.msra.mxu0 %v5653_v29 }
 0x1aa   :  { %973 = vmatprep.subr.bf16.mxu0 %v5658_v30 }
 0x1ad   :  { %974 = vmatpush1.bf16.msra.mxu0 %v5656_v31 }
 0x1ae   :  { %975 = vmatprep.subr.bf16.mxu0 %v5661_v32 }
 0x1b1   :  { %976 = vmatpush1.bf16.msra.mxu0 %v5659_v33 }
 0x1b2   :  { %977 = vmatprep.subr.bf16.mxu0 %v5664_v34 }
 0x1b5   :  { %978 = vmatpush1.bf16.msra.mxu0 %v5662_v35 }
 0x1b6   :  { %979 = vmatprep.subr.bf16.mxu0 %v5667_v36 }
 0x1b9   :  { %980 = vmatpush1.bf16.msra.mxu0 %v5665_v37 }
 0x1ba   :  { %981 = vmatprep.subr.bf16.mxu0 %v5670_v38 }
 0x1bd   :  { %982 = vmatpush1.bf16.msra.mxu0 %v5668_v39 }
 0x1be   :  { %1004 = vmatprep.subr.bf16.mxu0 %v5673_v40 }
 0x1c0   :  { %984 = vmatmul.mubr.bf16.vlgmr.msra.gmra.mrb[16].mxu0 %v6508_v59 }
 0x1c1   :  { %993 = vmatprep.mubr.bf16.mxu0 %v6526_v12  ;;  %1005 = vmatpush1.bf16.msra.mxu0 %v5671_v41 }
 0x1c2   :  { %1006 = vmatprep.subr.bf16.mxu0 %v5676_v42 }
 0x1c5   :  { %1007 = vmatpush1.bf16.msra.mxu0 %v5674_v43 }
 0x1c6   :  { %1008 = vmatprep.subr.bf16.mxu0 %v5679_v44 }
 0x1c8   :  { %994 = vmatmul.mubr.bf16.gmra.mrb[20].mxu0 %v6522_v11 }
 0x1c9   :  { %1009 = vmatpush1.bf16.msra.mxu0 %v5677_v45  ;;  %1036 = vmatprep.mubr.bf16.mxu0 %v6504_v56  ;;  %v5695_v56 = vld [vmem:[#allocation8 + $0x190] ss:$24 sps:$4 sm:$0xff]  }
 0x1ca   :  { %1010 = vmatprep.subr.bf16.mxu0 %v5682_v46 }
 0x1cd   :  { %1011 = vmatpush1.bf16.msra.mxu0 %v5680_v47  ;;  %v398_v47 = vsub.s32 2, %v6544_v22 }
 0x1ce   :  { %1012 = vmatprep.subr.bf16.mxu0 %v5685_v48  ;;  %v402_v48 = vsub.s32 3, %v6544_v22 }
 0x1d1   :  { %1013 = vmatpush1.bf16.msra.mxu0 %v5683_v49 }
 0x1d2   :  { %1014 = vmatprep.subr.bf16.mxu0 %v5688_v50 }
 0x1d5   :  { %1015 = vmatpush1.bf16.msra.mxu0 %v5686_v52 }
 0x1d6   :  { %1016 = vmatprep.subr.bf16.mxu0 %v5691_v57 }
 0x1d9   :  { %1017 = vmatpush1.bf16.msra.mxu0 %v5689_v58 }
 0x1da   :  { %1018 = vmatprep.subr.bf16.mxu0 %v5694_v60 }
 0x1dd   :  { %1019 = vmatpush1.bf16.msra.mxu0 %v5692_v61 }
 0x1de   :  { %1020 = vmatprep.subr.bf16.mxu0 %v5697_v62 }
 0x1e1   :  { %1021 = vmatpush1.bf16.msra.mxu0 %v5695_v56 }
 0x1e2   :  { %1022 = vmatprep.subr.bf16.mxu0 %v5700_v63 }
 0x1e5   :  { %1023 = vmatpush1.bf16.msra.mxu0 %v5698_v2 }
 0x1e6   :  { %1024 = vmatprep.subr.bf16.mxu0 %v5703_v3 }
 0x1e9   :  { %1025 = vmatpush1.bf16.msra.mxu0 %v5701_v5 }
 0x1ea   :  { %1026 = vmatprep.subr.bf16.mxu0 %v5706_v6 }
 0x1ed   :  { %1027 = vmatpush1.bf16.msra.mxu0 %v5704_v8 }
 0x1ee   :  { %1028 = vmatprep.subr.bf16.mxu0 %v5709_v9 }
 0x1f1   :  { %1029 = vmatpush1.bf16.msra.mxu0 %v5707_v13 }
 0x1f2   :  { %1030 = vmatprep.subr.bf16.mxu0 %v5712_v14 }
 0x1f5   :  { %1031 = vmatpush1.bf16.msra.mxu0 %v5710_v15 }
 0x1f6   :  { %1032 = vmatprep.subr.bf16.mxu0 %v5715_v16 }
 0x1f9   :  { %1033 = vmatpush1.bf16.msra.mxu0 %v5713_v17 }
 0x1fa   :  { %1034 = vmatprep.subr.bf16.mxu0 %v5718_v18 }
 0x1fd   :  { %1035 = vmatpush1.bf16.msra.mxu0 %v5716_v19 }
 0x1fe   :  { %5387 = vmatprep.subr.bf16.mxu0 %v6332_v20 }
 0x200   :  { %1037 = vmatmul.mubr.bf16.vlgmr.msra.gmra.mrb[24].mxu0 %v6508_v59  ;;  %v138_v59 = vld [vmem:[#allocation14] ss:$8 sm:$0xf] }
 0x201   :  { %1046 = vmatprep.mubr.bf16.mxu0 %v6526_v12  ;;  %v6546_v12 = vor.u32 %v139_v23, %v138_v59  ;;  %v406_v59 = vsub.s32 4, %v6544_v22  ;;  %v410_v23 = vsub.s32 5, %v6544_v22 }
 0x203   :  { %v395_v27 = vrot.slane %v6546_v12, %v6552_v24  ;;  %v399_v49 = vrot.slane %v6546_v12, %v398_v47  ;;  %v403_v52 = vrot.slane %v6546_v12, %v402_v48 }
 0x208   :  { %1047 = vmatmul.mubr.bf16.gmra.mrb[28].mxu0 %v6522_v11  ;;  %v6549_v11 = vsub.s32 0, %v6544_v22 }
 0x209   :  { %5389 = vmatprep.mubr.msk.bf16.mxu0 %vm6333_vm1, %v6332_v20 }
 0x20a   :  { %v391_v25 = vrot.slane %v6546_v12, %v6549_v11 }
 0x253   :  { %v932_v26 = vpop.f32.mrb[8].mxu0 }
 0x254   :  { %v934_v28 = vpop.f32.mrb[9].mxu0  ;;  %v933_v30 = vadd.f32 %v932_v26, %v391_v25 }
 0x255   :  { %v936_v29 = vpop.f32.mrb[10].mxu0  ;;  %v935_v33 = vadd.f32 %v934_v28, %v395_v27 }
 0x256   :  { %v937_v31 = vadd.f32 %v936_v29, %v391_v25  ;;  %v938_v32 = vpop.f32.mrb[11].mxu0 }
 0x257   :  { %v939_v34 = vadd.f32 %v938_v32, %v395_v27 }
 0x258   :  { %v6558_v35 = vpack.c.bf16 %v937_v31, %v933_v30 }
 0x259   :  { %v6560_v36 = vpack.c.bf16 %v939_v34, %v935_v33 }
 0x25b   :  { %v942_v37 = vpop.f32.mrb[12].mxu0 }
 0x25c   :  { %v943_v38 = vadd.f32 %v942_v37, %v391_v25  ;;  %v944_v39 = vpop.f32.mrb[13].mxu0 }
 0x25d   :  { %v945_v40 = vadd.f32 %v944_v39, %v395_v27  ;;  %v946_v41 = vpop.f32.mrb[14].mxu0 }
 0x25e   :  { %v947_v42 = vadd.f32 %v946_v41, %v391_v25  ;;  %v948_v43 = vpop.f32.mrb[15].mxu0  ;;  %v407_v25 = vrot.slane %v6546_v12, %v406_v59 }
 0x25f   :  { %v949_v44 = vadd.f32 %v948_v43, %v395_v27  ;;  %v411_v27 = vrot.slane %v6546_v12, %v410_v23 }
 0x260   :  { %v6562_v45 = vpack.c.bf16 %v947_v42, %v943_v38 }
 0x261   :  { %v6564_v46 = vpack.c.bf16 %v949_v44, %v945_v40 }
 0x293   :  { %v985_v50 = vpop.f32.mrb[16].mxu0 }
 0x294   :  { %v987_v57 = vpop.f32.mrb[17].mxu0  ;;  %v986_v60 = vadd.f32 %v985_v50, %v399_v49 }
 0x295   :  { %v989_v58 = vpop.f32.mrb[18].mxu0  ;;  %v988_v56 = vadd.f32 %v987_v57, %v403_v52 }
 0x296   :  { %v990_v61 = vadd.f32 %v989_v58, %v399_v49  ;;  %v991_v62 = vpop.f32.mrb[19].mxu0 }
 0x297   :  { %v992_v63 = vadd.f32 %v991_v62, %v403_v52 }
 0x298   :  { %v1059_v2 = vpack.c.bf16 %v990_v61, %v986_v60 }
 0x299   :  { %v6574_v3 = vpack.c.bf16 %v992_v63, %v988_v56 }
 0x29a   :  { %v1067_v5 = vsel %vm227_vm0, %v1059_v2, 0 }
 0x29b   :  { %v995_v6 = vpop.f32.mrb[20].mxu0  ;;  %5388 = vmatpush3.bf16.xpose.msra.mxu0 %v1067_v5 }
 0x29c   :  { %v997_v8 = vpop.f32.mrb[21].mxu0  ;;  %5393 = vmatprep.subr.bf16.mxu0 %v6332_v20  ;;  %v996_v13 = vadd.f32 %v995_v6, %v399_v49 }
 0x29d   :  { %v999_v9 = vpop.f32.mrb[22].mxu0  ;;  %v998_v16 = vadd.f32 %v997_v8, %v403_v52 }
 0x29e   :  { %v1000_v14 = vadd.f32 %v999_v9, %v399_v49  ;;  %v1001_v15 = vpop.f32.mrb[23].mxu0 }
 0x29f   :  { %v1002_v17 = vadd.f32 %v1001_v15, %v403_v52 }
 0x2a0   :  { %v6578_v18 = vpack.c.bf16 %v1000_v14, %v996_v13 }
 0x2a1   :  { %v6580_v19 = vpack.c.bf16 %v1002_v17, %v998_v16 }
 0x2a2   :  { %5390 = vmatmul.mubr.msk.bf16.vlgmr.msra.gmra.mrb[32].mxu0 %vm227_vm0, %v6558_v35  ;;  %v1114_v21 = vsel %vm227_vm0, %v6578_v18, 0 }
 0x2a3   :  { %5394 = vmatpush3.bf16.xpose.msra.mxu0 %v1114_v21  ;;  %5395 = vmatprep.mubr.msk.bf16.mxu0 %vm6333_vm1, %v6332_v20 }
 0x2a4   :  { %5405 = vmatprep.subr.bf16.mxu0 %v6332_v20 }
 0x2aa   :  { %5396 = vmatmul.mubr.msk.bf16.vlgmr.msra.gmra.mrb[36].mxu0 %vm227_vm0, %v6562_v45 }
 0x2ab   :  { %5407 = vmatprep.mubr.msk.bf16.mxu0 %vm6333_vm1, %v6332_v20 }
 0x2d3   :  { %v1038_v26 = vpop.f32.mrb[24].mxu0 }
 0x2d4   :  { %v1040_v28 = vpop.f32.mrb[25].mxu0  ;;  %v1039_v30 = vadd.f32 %v1038_v26, %v407_v25 }
 0x2d5   :  { %v1042_v29 = vpop.f32.mrb[26].mxu0  ;;  %v1041_v33 = vadd.f32 %v1040_v28, %v411_v27 }
 0x2d6   :  { %v1043_v31 = vadd.f32 %v1042_v29, %v407_v25  ;;  %v1044_v32 = vpop.f32.mrb[27].mxu0 }
 0x2d7   :  { %v1045_v34 = vadd.f32 %v1044_v32, %v411_v27 }
 0x2d8   :  { %v6601_v37 = vpack.c.bf16 %v1043_v31, %v1039_v30 }
 0x2d9   :  { %v6603_v38 = vpack.c.bf16 %v1045_v34, %v1041_v33 }
 0x2da   :  { %5400 = vmatpush3.bf16.msra.mxu1 %v6601_v37 }
 0x2db   :  { %v1048_v39 = vpop.f32.mrb[28].mxu0  ;;  %5429 = vmatprep.subr.bf16.mxu1 %v6332_v20 }
 0x2dc   :  { %v1050_v40 = vpop.f32.mrb[29].mxu0  ;;  %v1049_v12 = vadd.f32 %v1048_v39, %v407_v25 }
 0x2dd   :  { %v1051_v41 = vadd.f32 %v1050_v40, %v411_v27  ;;  %v1052_v42 = vpop.f32.mrb[30].mxu0 }
 0x2de   :  { %v1053_v43 = vadd.f32 %v1052_v42, %v407_v25  ;;  %v1054_v44 = vpop.f32.mrb[31].mxu0 }
 0x2df   :  { %v1055_v49 = vadd.f32 %v1054_v44, %v411_v27 }
 0x2e0   :  { %v6607_v50 = vpack.c.bf16 %v1053_v43, %v1049_v12 }
 0x2e1   :  { %v6609_v52 = vpack.c.bf16 %v1055_v49, %v1051_v41 }
 0x2e2   :  { %5406 = vmatpush3.bf16.msra.mxu0 %v6607_v50 }
 0x2e3   :  { %5411 = vmatprep.subr.bf16.mxu0 %v6332_v20 }
 0x375   :  { %v6613_v57 = vpop.f32.mrb[32].mxu0 }
 0x376   :  { %v5391_v58 = vpop.f32.mrb[33].mxu0  ;;  %v1158_v9 = vsel %vm1157_vm2, %v6613_v57, -inf }
 0x377   :  { %v1106_v60 = vpop.f32.mrb[34].mxu0 }
 0x378   :  { %v5392_v61 = vpop.f32.mrb[35].mxu0 }
 0x37d   :  { %v1150_v62 = vpop.f32.mrb[36].mxu0 }
 0x37e   :  { %v5397_v56 = vpop.f32.mrb[37].mxu0  ;;  %v1164_v63 = vsel %vm1157_vm2, %v1150_v62, -inf }
 0x37f   :  { %1165 = vmax.xlane.f32.xlu0 %v1164_v63  ;;  %v1153_v5 = vpop.f32.mrb[38].mxu0 }
 0x380   :  { %v5398_v6 = vpop.f32.mrb[39].mxu0  ;;  %v1167_v8 = vsel %vm1157_vm2, %v1153_v5, -inf }
 0x383   :  { %1168 = vmax.xlane.f32.xlu0 %v1167_v8 }
 0x399   :  { %1306 = vrot.lane.b32.xlu0 %v1059_v2, %s6323_s5  ;;  %v1161_v2 = vsel %vm1157_vm2, %v1106_v60, -inf }
 0x3b8   :  { %1159 = vmax.xlane.f32.xlu0 %v1158_v9 }
 0x40c   :  { %v1166_v13 = vpop.xlane.xlu0 %1165 }
 0x40d   :  { %v1172_v14 = vsub.f32 %v1150_v62, %v1166_v13 }
 0x40f   :  { %v1178_v15 = vmul.f32 1.442695, %v1172_v14 }
 0x410   :  { %v1169_v16 = vpop.xlane.xlu0 %1168 }
 0x411   :  { %5959 = vpow2.f32 %v1178_v15  ;;  %v1173_v17 = vsub.f32 %v1153_v5, %v1169_v16 }
 0x413   :  { %v1180_v21 = vmul.f32 1.442695, %v1173_v17 }
 0x414   :  { %v1307_v39 = vpop.permute.xlu0 %1306 }
 0x415   :  { %5961 = vpow2.f32 %v1180_v21  ;;  %v1312_v41 = vsel %vm227_vm0, %v1307_v39, 0 }
 0x41b   :  { %v5960_v25 = vpop.eup %5959 }
 0x41c   :  { %v1188_v26 = vsel %vm1157_vm2, %v5960_v25, 0.0 }
 0x41d   :  { %1189 = vadd.xlane.f32.xlu1 %v1188_v26 }
 0x41f   :  { %v5962_v27 = vpop.eup %5961 }
 0x420   :  { %v1191_v28 = vsel %vm1157_vm2, %v5962_v27, 0.0 }
 0x421   :  { %1192 = vadd.xlane.f32.xlu1 %v1191_v28 }
 0x432   :  { %1303 = vrot.lane.b32.xlu1 %v6558_v35, %s6323_s5 }
 0x436   :  { %1359 = vrot.lane.b32.xlu1 %v6578_v18, %s6323_s5 }
 0x43a   :  { %1356 = vrot.lane.b32.xlu1 %v6562_v45, %s6323_s5 }
 0x445   :  { %v1160_v62 = vpop.xlane.xlu0 %1159 }
 0x446   :  { %v1170_v8 = vsub.f32 %v6613_v57, %v1160_v62 }
 0x448   :  { %v1174_v9 = vmul.f32 1.442695, %v1170_v8 }
 0x45e   :  { %1162 = vmax.xlane.f32.xlu1 %v1161_v2 }
 0x4aa   :  { %v1190_v29 = vpop.xlane.xlu1 %1189 }
 0x4ab   :  { %5963 = vrcp.f32 %v1190_v29 }
 0x4ae   :  { %v1193_v30 = vpop.xlane.xlu1 %1192 }
 0x4af   :  { %5965 = vrcp.f32 %v1193_v30 }
 0x4b2   :  { %v1304_v35 = vpop.permute.xlu1 %1303 }
 0x4b5   :  { %v5964_v31 = vpop.eup %5963 }
 0x4b6   :  { %v1199_v33 = vmul.f32 %v5964_v31, %v5960_v25  ;;  %v1360_v45 = vpop.permute.xlu1 %1359 }
 0x4b7   :  { %v1365_v18 = vsel %vm227_vm0, %v1360_v45, 0 }
 0x4b9   :  { %v5966_v32 = vpop.eup %5965 }
 0x4ba   :  { %v1201_v34 = vmul.f32 %v5966_v32, %v5962_v27  ;;  %v1357_v42 = vpop.permute.xlu1 %1356 }
 0x4bc   :  { %v1203_v40 = vpack.c.bf16 %v1201_v34, %v1199_v33 }
 0x4be   :  { %5408 = vmatmul.mubr.msk.bf16.vlgmr.msra.gmra.mrb[40].mxu0 %vm1157_vm2, %v1203_v40 }
 0x4bf   :  { %5412 = vmatpush3.bf16.xpose.msra.mxu0 %v1312_v41  ;;  %5413 = vmatprep.mubr.msk.bf16.mxu0 %vm6333_vm1, %v6332_v20 }
 0x4c0   :  { %5417 = vmatprep.subr.bf16.mxu0 %v6332_v20 }
 0x4c6   :  { %5414 = vmatmul.mubr.msk.bf16.vlgmr.msra.gmra.mrb[44].mxu0 %vm227_vm0, %v1304_v35 }
 0x4c7   :  { %5418 = vmatpush3.bf16.xpose.msra.mxu0 %v1365_v18  ;;  %5419 = vmatprep.mubr.msk.bf16.mxu0 %vm6333_vm1, %v6332_v20 }
 0x4c8   :  { %5423 = vmatprep.subr.bf16.mxu0 %v6332_v20 }
 0x4ce   :  { %5420 = vmatmul.mubr.msk.bf16.vlgmr.msra.gmra.mrb[48].mxu0 %vm227_vm0, %v1357_v42 }
 0x4cf   :  { %5425 = vmatprep.mubr.msk.bf16.mxu0 %vm6333_vm1, %v6332_v20 }
 0x4eb   :  { %v1163_v12 = vpop.xlane.xlu1 %1162 }
 0x4ec   :  { %v1171_v43 = vsub.f32 %v1106_v60, %v1163_v12 }
 0x4ee   :  { %v1176_v44 = vmul.f32 1.442695, %v1171_v43 }
 0x4f0   :  { %5967 = vpow2.f32 %v1176_v44 }
 0x4f1   :  { %5969 = vpow2.f32 %v1174_v9 }
 0x4fa   :  { %v5968_v49 = vpop.eup %5967 }
 0x4fb   :  { %v1185_v58 = vsel %vm1157_vm2, %v5968_v49, 0.0  ;;  %v5970_v28 = vpop.eup %5969 }
 0x4fc   :  { %1186 = vadd.xlane.f32.xlu1 %v1185_v58  ;;  %v1182_v57 = vsel %vm1157_vm2, %v5970_v28, 0.0 }
 0x589   :  { %v1187_v32 = vpop.xlane.xlu1 %1186 }
 0x591   :  { %v6643_v61 = vpop.f32.mrb[40].mxu0 }
 0x592   :  { %v5409_v56 = vpop.f32.mrb[41].mxu0 }
 0x593   :  { %v6645_v63 = vpop.f32.mrb[42].mxu0 }
 0x594   :  { %v1293_v5 = vpack.c.bf16 %v6645_v63, %v6643_v61  ;;  %v5410_v6 = vpop.f32.mrb[43].mxu0  ;;  %v5758_v61 = vld [vmem:[#allocation10 + $0xd0] ss:$8 sps:$4 sm:$0xff]   ;;  %v5763_v63 = vld [vmem:[#allocation10 + $0xe4] ss:$8 sps:$4 sm:$0xff]  }
 0x599   :  { %v6650_v60 = vpop.f32.mrb[44].mxu0 }
 0x59a   :  { %v5415_v13 = vpop.f32.mrb[45].mxu0 }
 0x59b   :  { %v6652_v14 = vpop.f32.mrb[46].mxu0 }
 0x59c   :  { %v5416_v15 = vpop.f32.mrb[47].mxu0 }
 0x59d   :  { %v1768_v15 = vsel %vm227_vm0, %v6574_v3, 0 }
 0x5a1   :  { %v1401_v16 = vpop.f32.mrb[48].mxu0 }
 0x5a2   :  { %v5421_v17 = vpop.f32.mrb[49].mxu0  ;;  %v1414_v21 = vsel %vm1157_vm2, %v1401_v16, -inf }
 0x5a3   :  { %1415 = vmax.xlane.f32.xlu0 %v1414_v21  ;;  %v1404_v25 = vpop.f32.mrb[50].mxu0 }
 0x5a4   :  { %v5422_v26 = vpop.f32.mrb[51].mxu0  ;;  %v1417_v27 = vsel %vm1157_vm2, %v1404_v25, -inf }
 0x5a7   :  { %1418 = vmax.xlane.f32.xlu0 %v1417_v27 }
 0x5ab   :  { %1183 = vadd.xlane.f32.xlu0 %v1182_v57 }
 0x630   :  { %v1416_v2 = vpop.xlane.xlu0 %1415 }
 0x631   :  { %v1422_v29 = vsub.f32 %v1401_v16, %v1416_v2 }
 0x633   :  { %v1428_v30 = vmul.f32 1.442695, %v1422_v29 }
 0x634   :  { %v1419_v31 = vpop.xlane.xlu0 %1418 }
 0x635   :  { %5971 = vpow2.f32 %v1428_v30  ;;  %v1423_v33 = vsub.f32 %v1404_v25, %v1419_v31 }
 0x636   :  { %5973 = vrcp.f32 %v1187_v32 }
 0x637   :  { %v1430_v34 = vmul.f32 1.442695, %v1423_v33 }
 0x638   :  { %v1184_v39 = vpop.xlane.xlu0 %1183 }
 0x639   :  { %5975 = vpow2.f32 %v1430_v34 }
 0x63a   :  { %5977 = vrcp.f32 %v1184_v39 }
 0x63f   :  { %v5972_v40 = vpop.eup %5971 }
 0x640   :  { %v1438_v35 = vsel %vm1157_vm2, %v5972_v40, 0.0  ;;  %v5974_v41 = vpop.eup %5973 }
 0x641   :  { %1439 = vadd.xlane.f32.xlu0 %v1438_v35  ;;  %v1197_v43 = vmul.f32 %v5974_v41, %v5968_v49 }
 0x643   :  { %v5976_v45 = vpop.eup %5975 }
 0x644   :  { %v5978_v18 = vpop.eup %5977  ;;  %v1441_v42 = vsel %vm1157_vm2, %v5976_v45, 0.0 }
 0x645   :  { %1442 = vadd.xlane.f32.xlu1 %v1441_v42  ;;  %v1195_v12 = vmul.f32 %v5978_v18, %v5970_v28 }
 0x647   :  { %v1202_v44 = vpack.c.bf16 %v1197_v43, %v1195_v12 }
 0x649   :  { %5402 = vmatmul.mubr.msk.bf16.vlgmr.msra.gmra.mrb[0].mxu1 %vm1157_vm2, %v1202_v44 }
 0x64a   :  { %5431 = vmatprep.mubr.msk.bf16.mxu1 %vm6333_vm1, %v6332_v20 }
 0x657   :  { %1503 = vrot.lane.b32.xlu0 %v6607_v50, %s6323_s5  ;;  %v1815_v50 = vsel %vm227_vm0, %v6580_v19, 0 }
 0x6ce   :  { %v1440_v58 = vpop.xlane.xlu0 %1439 }
 0x6cf   :  { %5979 = vrcp.f32 %v1440_v58 }
 0x6d2   :  { %v1443_v62 = vpop.xlane.xlu1 %1442  ;;  %v1504_v56 = vpop.permute.xlu0 %1503 }
 0x6d3   :  { %5981 = vrcp.f32 %v1443_v62  ;;  %5430 = vmatpush3.bf16.msra.mxu1 %v1504_v56 }
 0x6d4   :  { %5435 = vmatprep.subr.bf16.mxu1 %v6332_v20 }
 0x6d9   :  { %v5980_v6 = vpop.eup %5979 }
 0x6da   :  { %v1449_v49 = vmul.f32 %v5980_v6, %v5972_v40 }
 0x6dd   :  { %v5982_v8 = vpop.eup %5981 }
 0x6de   :  { %v1451_v9 = vmul.f32 %v5982_v8, %v5976_v45 }
 0x6e0   :  { %v1453_v13 = vpack.c.bf16 %v1451_v9, %v1449_v49 }
 0x6e2   :  { %5432 = vmatmul.mubr.msk.bf16.vlgmr.msra.gmra.mrb[4].mxu1 %vm1157_vm2, %v1453_v13 }
 0x6e3   :  { %5436 = vmatpush3.bf16.xpose.msra.mxu1 %v1768_v15  ;;  %5437 = vmatprep.mubr.msk.bf16.mxu1 %vm6333_vm1, %v6332_v20 }
 0x6e4   :  { %5441 = vmatprep.subr.bf16.mxu1 %v6332_v20 }
 0x6ea   :  { %5438 = vmatmul.mubr.msk.bf16.vlgmr.msra.gmra.mrb[8].mxu1 %vm227_vm0, %v6560_v36 }
 0x6eb   :  { %5442 = vmatpush3.bf16.xpose.msra.mxu1 %v1815_v50  ;;  %5443 = vmatprep.mubr.msk.bf16.mxu1 %vm6333_vm1, %v6332_v20 }
 0x6ec   :  { %5447 = vmatprep.subr.bf16.mxu1 %v6332_v20 }
 0x6f2   :  { %5444 = vmatmul.mubr.msk.bf16.vlgmr.msra.gmra.mrb[12].mxu1 %vm227_vm0, %v6564_v46 }
 0x6f3   :  { %5448 = vmatpush3.bf16.msra.mxu1 %v6603_v38  ;;  %5449 = vmatprep.mubr.msk.bf16.mxu1 %vm6333_vm1, %v6332_v20 }
 0x6f4   :  { %5453 = vmatprep.subr.bf16.mxu1 %v6332_v20 }
 0x71c   :  { %v6684_v16 = vpop.f32.mrb[0].mxu1 }
 0x71d   :  { %v5403_v17 = vpop.f32.mrb[1].mxu1 }
 0x71e   :  { %v6686_v21 = vpop.f32.mrb[2].mxu1 }
 0x71f   :  { %v1292_v25 = vpack.c.bf16 %v6686_v21, %v6684_v16  ;;  %v5404_v26 = vpop.f32.mrb[3].mxu1  ;;  %v5757_v16 = vld [vmem:[#allocation10 + $0xc4] ss:$8 sps:$4 sm:$0xff]   ;;  %v5755_v21 = vld [vmem:[#allocation10 + $0xc0] ss:$8 sps:$4 sm:$0xff]  }
 0x7b5   :  { %v6690_v27 = vpop.f32.mrb[4].mxu1 }
 0x7b6   :  { %v5433_v28 = vpop.f32.mrb[5].mxu1 }
 0x7b7   :  { %v6692_v57 = vpop.f32.mrb[6].mxu1 }
 0x7b8   :  { %v1551_v2 = vpack.c.bf16 %v6692_v57, %v6690_v27  ;;  %v5434_v29 = vpop.f32.mrb[7].mxu1  ;;  %v5751_v27 = vld [vmem:[#allocation10 + $0xa4] ss:$8 sps:$4 sm:$0xff]   ;;  %v5749_v57 = vld [vmem:[#allocation10 + $0xa0] ss:$8 sps:$4 sm:$0xff]  }
 0x7bd   :  { %v1804_v30 = vpop.f32.mrb[8].mxu1 }
 0x7be   :  { %v5439_v31 = vpop.f32.mrb[9].mxu1  ;;  %v1858_v32 = vsel %vm1157_vm2, %v1804_v30, -inf }
 0x7bf   :  { %1859 = vmax.xlane.f32.xlu1 %v1858_v32  ;;  %v1807_v33 = vpop.f32.mrb[10].mxu1 }
 0x7c0   :  { %v5440_v34 = vpop.f32.mrb[11].mxu1  ;;  %v1861_v39 = vsel %vm1157_vm2, %v1807_v33, -inf }
 0x7c1   :  { %v1408_v34 = vsel %vm1157_vm2, %v6650_v60, -inf }
 0x7c3   :  { %1862 = vmax.xlane.f32.xlu1 %v1861_v39 }
 0x7c5   :  { %v1851_v40 = vpop.f32.mrb[12].mxu1 }
 0x7c6   :  { %v5445_v35 = vpop.f32.mrb[13].mxu1  ;;  %v1864_v41 = vsel %vm1157_vm2, %v1851_v40, -inf }
 0x7c7   :  { %1865 = vmax.xlane.f32.xlu1 %v1864_v41  ;;  %v1854_v45 = vpop.f32.mrb[14].mxu1 }
 0x7c8   :  { %v5446_v18 = vpop.f32.mrb[15].mxu1  ;;  %v1867_v42 = vsel %vm1157_vm2, %v1854_v45, -inf }
 0x7cb   :  { %1868 = vmax.xlane.f32.xlu1 %v1867_v42 }
 0x84c   :  { %v1860_v12 = vpop.xlane.xlu1 %1859 }
 0x84d   :  { %v1870_v43 = vsub.f32 %v1804_v30, %v1860_v12 }
 0x84f   :  { %v1874_v44 = vmul.f32 1.442695, %v1870_v43 }
 0x850   :  { %v1863_v58 = vpop.xlane.xlu1 %1862 }
 0x851   :  { %5983 = vpow2.f32 %v1874_v44  ;;  %v1871_v62 = vsub.f32 %v1807_v33, %v1863_v58  ;;  %v1411_v33 = vsel %vm1157_vm2, %v6652_v14, -inf }
 0x853   :  { %v1876_v56 = vmul.f32 1.442695, %v1871_v62 }
 0x854   :  { %v1866_v6 = vpop.xlane.xlu1 %1865 }
 0x855   :  { %5985 = vpow2.f32 %v1876_v56  ;;  %v1872_v8 = vsub.f32 %v1851_v40, %v1866_v6 }
 0x857   :  { %v1878_v49 = vmul.f32 1.442695, %v1872_v8 }
 0x858   :  { %v1869_v9 = vpop.xlane.xlu1 %1868 }
 0x859   :  { %5987 = vpow2.f32 %v1878_v49  ;;  %v1873_v13 = vsub.f32 %v1854_v45, %v1869_v9 }
 0x85b   :  { %v5984_v15 = vpop.eup %5983  ;;  %v1880_v50 = vmul.f32 1.442695, %v1873_v13 }
 0x85c   :  { %v1882_v17 = vsel %vm1157_vm2, %v5984_v15, 0.0 }
 0x85d   :  { %5989 = vpow2.f32 %v1880_v50  ;;  %1883 = vadd.xlane.f32.xlu1 %v1882_v17 }
 0x85f   :  { %v5986_v26 = vpop.eup %5985 }
 0x860   :  { %v1885_v28 = vsel %vm1157_vm2, %v5986_v26, 0.0 }
 0x861   :  { %1886 = vadd.xlane.f32.xlu1 %v1885_v28 }
 0x863   :  { %v5988_v29 = vpop.eup %5987 }
 0x864   :  { %v1888_v30 = vsel %vm1157_vm2, %v5988_v29, 0.0 }
 0x865   :  { %1889 = vadd.xlane.f32.xlu0 %v1888_v30 }
 0x867   :  { %v5990_v31 = vpop.eup %5989 }
 0x868   :  { %v1891_v32 = vsel %vm1157_vm2, %v5990_v31, 0.0 }
 0x869   :  { %1892 = vadd.xlane.f32.xlu1 %v1891_v32 }
 0x87a   :  { %2113 = vrot.lane.b32.xlu1 %v6574_v3, %s6323_s5 }
 0x87b   :  { %2163 = vrot.lane.b32.xlu0 %v6564_v46, %s6323_s5 }
 0x87e   :  { %2110 = vrot.lane.b32.xlu1 %v6560_v36, %s6323_s5 }
 0x882   :  { %2166 = vrot.lane.b32.xlu1 %v6580_v19, %s6323_s5 }
 0x89a   :  { %1412 = vmax.xlane.f32.xlu0 %v1411_v33 }
 0x8a6   :  { %1409 = vmax.xlane.f32.xlu1 %v1408_v34 }
 0x8ea   :  { %v1884_v39 = vpop.xlane.xlu1 %1883 }
 0x8eb   :  { %5991 = vrcp.f32 %v1884_v39 }
 0x8ee   :  { %v1887_v3 = vpop.xlane.xlu1 %1886 }
 0x8ef   :  { %5993 = vrcp.f32 %v1887_v3 }
 0x8f2   :  { %v1890_v40 = vpop.xlane.xlu0 %1889 }
 0x8f3   :  { %5995 = vrcp.f32 %v1890_v40 }
 0x8f5   :  { %v5992_v35 = vpop.eup %5991 }
 0x8f6   :  { %v1893_v46 = vpop.xlane.xlu1 %1892  ;;  %v1895_v41 = vmul.f32 %v5992_v35, %v5984_v15  ;;  %v2164_v49 = vpop.permute.xlu0 %2163 }
 0x8f7   :  { %5997 = vrcp.f32 %v1893_v46 }
 0x8f9   :  { %v5994_v36 = vpop.eup %5993 }
 0x8fa   :  { %v1897_v19 = vmul.f32 %v5994_v36, %v5986_v26  ;;  %v2114_v42 = vpop.permute.xlu1 %2113 }
 0x8fb   :  { %v2119_v56 = vsel %vm227_vm0, %v2114_v42, 0 }
 0x8fc   :  { %v1902_v45 = vpack.c.bf16 %v1897_v19, %v1895_v41 }
 0x8fd   :  { %v5996_v18 = vpop.eup %5995 }
 0x8fe   :  { %5450 = vmatmul.mubr.msk.bf16.vlgmr.msra.gmra.mrb[16].mxu1 %vm1157_vm2, %v1902_v45  ;;  %v1899_v43 = vmul.f32 %v5996_v18, %v5988_v29  ;;  %v2111_v62 = vpop.permute.xlu1 %2110 }
 0x8ff   :  { %5454 = vmatpush3.bf16.msra.mxu1 %v6609_v52  ;;  %5455 = vmatprep.mubr.msk.bf16.mxu1 %vm6333_vm1, %v6332_v20 }
 0x900   :  { %5459 = vmatprep.subr.bf16.mxu1 %v6332_v20 }
 0x901   :  { %v5998_v12 = vpop.eup %5997 }
 0x902   :  { %v1901_v44 = vmul.f32 %v5998_v12, %v5990_v31  ;;  %v2167_v6 = vpop.permute.xlu1 %2166 }
 0x903   :  { %v2172_v8 = vsel %vm227_vm0, %v2167_v6, 0 }
 0x904   :  { %v1903_v58 = vpack.c.bf16 %v1901_v44, %v1899_v43 }
 0x906   :  { %5456 = vmatmul.mubr.msk.bf16.vlgmr.msra.gmra.mrb[20].mxu1 %vm1157_vm2, %v1903_v58 }
 0x907   :  { %5461 = vmatprep.mubr.msk.bf16.mxu1 %vm6333_vm1, %v6332_v20 }
 0x908   :  { %5460 = vmatpush3.bf16.xpose.msra.mxu1 %v2119_v56 }
 0x909   :  { %5465 = vmatprep.subr.bf16.mxu1 %v6332_v20 }
 0x90f   :  { %5462 = vmatmul.mubr.msk.bf16.vlgmr.msra.gmra.mrb[24].mxu1 %vm227_vm0, %v2111_v62 }
 0x910   :  { %5466 = vmatpush3.bf16.xpose.msra.mxu1 %v2172_v8  ;;  %5467 = vmatprep.mubr.msk.bf16.mxu1 %vm6333_vm1, %v6332_v20 }
 0x911   :  { %5471 = vmatprep.subr.bf16.mxu1 %v6332_v20 }
 0x917   :  { %5468 = vmatmul.mubr.msk.bf16.vlgmr.msra.gmra.mrb[28].mxu1 %vm227_vm0, %v2164_v49 }
 0x918   :  { %5473 = vmatprep.mubr.msk.bf16.mxu1 %vm6333_vm1, %v6332_v20 }
 0x927   :  { %v1413_v29 = vpop.xlane.xlu0 %1412 }
 0x928   :  { %v1421_v31 = vsub.f32 %v6652_v14, %v1413_v29 }
 0x92a   :  { %v1426_v40 = vmul.f32 1.442695, %v1421_v31 }
 0x933   :  { %v1410_v15 = vpop.xlane.xlu1 %1409 }
 0x934   :  { %v1420_v28 = vsub.f32 %v6650_v60, %v1410_v15 }
 0x936   :  { %v1424_v32 = vmul.f32 1.442695, %v1420_v28 }
 0x938   :  { %5999 = vpow2.f32 %v1424_v32 }
 0x939   :  { %6001 = vpow2.f32 %v1426_v40 }
 0x942   :  { %v6000_v19 = vpop.eup %5999 }
 0x943   :  { %v1432_v42 = vsel %vm1157_vm2, %v6000_v19, 0.0  ;;  %v6002_v12 = vpop.eup %6001 }
 0x944   :  { %v1435_v62 = vsel %vm1157_vm2, %v6002_v12, 0.0 }
 0x9d1   :  { %v6734_v9 = vpop.f32.mrb[16].mxu1 }
 0x9d2   :  { %v5451_v13 = vpop.f32.mrb[17].mxu1 }
 0x9d3   :  { %v6736_v50 = vpop.f32.mrb[18].mxu1 }
 0x9d4   :  { %v1992_v17 = vpack.c.bf16 %v6736_v50, %v6734_v9  ;;  %v5452_v26 = vpop.f32.mrb[19].mxu1 }
 0x9d9   :  { %v6741_v30 = vpop.f32.mrb[20].mxu1 }
 0x9da   :  { %v5457_v33 = vpop.f32.mrb[21].mxu1 }
 0x9db   :  { %v6744_v34 = vpop.f32.mrb[22].mxu1 }
 0x9dc   :  { %v1993_v39 = vpack.c.bf16 %v6744_v34, %v6741_v30  ;;  %v5458_v3 = vpop.f32.mrb[23].mxu1 }
 0x9e2   :  { %v2155_v46 = vpop.f32.mrb[24].mxu1 }
 0x9e3   :  { %v5463_v35 = vpop.f32.mrb[25].mxu1  ;;  %v2215_v60 = vsel %vm1157_vm2, %v2155_v46, -inf }
 0x9e4   :  { %2216 = vmax.xlane.f32.xlu1 %v2215_v60  ;;  %v2158_v36 = vpop.f32.mrb[26].mxu1 }
 0x9e5   :  { %v5464_v41 = vpop.f32.mrb[27].mxu1  ;;  %v2218_v14 = vsel %vm1157_vm2, %v2158_v36, -inf }
 0x9e8   :  { %2219 = vmax.xlane.f32.xlu1 %v2218_v14 }
 0x9ea   :  { %v2208_v45 = vpop.f32.mrb[28].mxu1 }
 0x9eb   :  { %v5469_v18 = vpop.f32.mrb[29].mxu1  ;;  %v2221_v56 = vsel %vm1157_vm2, %v2208_v45, -inf }
 0x9ec   :  { %1433 = vadd.xlane.f32.xlu1 %v1432_v42  ;;  %v2211_v43 = vpop.f32.mrb[30].mxu1 }
 0x9ed   :  { %v5470_v44 = vpop.f32.mrb[31].mxu1  ;;  %v2224_v58 = vsel %vm1157_vm2, %v2211_v43, -inf }
 0x9ee   :  { %2225 = vmax.xlane.f32.xlu0 %v2224_v58 }
 0x9f0   :  { %1436 = vadd.xlane.f32.xlu1 %v1435_v62 }
 0x9f4   :  { %2222 = vmax.xlane.f32.xlu1 %v2221_v56  ;;  %v5719_v56 = vld [vmem:[#allocation10 + $0x40] ss:$8 sps:$4 sm:$0xff]  }
 0xa05   :  { %1455 = vrot.lane.b32.xlu1 %v6601_v37, %s6323_s5 }
 0xa71   :  { %v2217_v6 = vpop.xlane.xlu1 %2216 }
 0xa72   :  { %v2227_v8 = vsub.f32 %v2155_v46, %v2217_v6  ;;  %v5721_v6 = vld [vmem:[#allocation10 + $0x44] ss:$8 sps:$4 sm:$0xff]  }
 0xa74   :  { %v2231_v49 = vmul.f32 1.442695, %v2227_v8  ;;  %v5722_v8 = vld [vmem:[#allocation10 + $0x50] ss:$8 sps:$4 sm:$0xff]  }
 0xa75   :  { %v2220_v13 = vpop.xlane.xlu1 %2219 }
 0xa76   :  { %6003 = vpow2.f32 %v2231_v49  ;;  %v2228_v15 = vsub.f32 %v2158_v36, %v2220_v13  ;;  %v5724_v49 = vld [vmem:[#allocation10 + $0x54] ss:$8 sps:$4 sm:$0xff]   ;;  %v5727_v13 = vld [vmem:[#allocation10 + $0x64] ss:$8 sps:$4 sm:$0xff]  }
 0xa78   :  { %v2233_v26 = vmul.f32 1.442695, %v2228_v15  ;;  %v5733_v15 = vld [vmem:[#allocation10 + $0x4] ss:$8 sps:$4 sm:$0xff]  }
 0xa79   :  { %v1434_v28 = vpop.xlane.xlu1 %1433 }
 0xa7a   :  { %6005 = vpow2.f32 %v2233_v26 }
 0xa7b   :  { %6007 = vrcp.f32 %v1434_v28  ;;  %v2226_v44 = vpop.xlane.xlu0 %2225 }
 0xa7c   :  { %v2230_v58 = vsub.f32 %v2211_v43, %v2226_v44  ;;  %v5728_v43 = vld [vmem:[#allocation10 + $0x70] ss:$8 sps:$4 sm:$0xff]  }
 0xa7d   :  { %v1437_v29 = vpop.xlane.xlu1 %1436 }
 0xa7e   :  { %6009 = vrcp.f32 %v1437_v29  ;;  %v2237_v62 = vmul.f32 1.442695, %v2230_v58 }
 0xa80   :  { %v6004_v31 = vpop.eup %6003 }
 0xa81   :  { %v2223_v32 = vpop.xlane.xlu1 %2222  ;;  %v2239_v33 = vsel %vm1157_vm2, %v6004_v31, 0.0 }
 0xa82   :  { %v2229_v3 = vsub.f32 %v2208_v45, %v2223_v32  ;;  %2240 = vadd.xlane.f32.xlu0 %v2239_v33 }
 0xa84   :  { %v6006_v40 = vpop.eup %6005  ;;  %v2235_v37 = vmul.f32 1.442695, %v2229_v3 }
 0xa85   :  { %v1456_v35 = vpop.permute.xlu1 %1455  ;;  %v2242_v46 = vsel %vm1157_vm2, %v6006_v40, 0.0  ;;  %v6008_v60 = vpop.eup %6007 }
 0xa86   :  { %6011 = vpow2.f32 %v2235_v37  ;;  %5424 = vmatpush3.bf16.msra.mxu0 %v1456_v35  ;;  %2243 = vadd.xlane.f32.xlu0 %v2242_v46  ;;  %v1445_v41 = vmul.f32 %v6008_v60, %v6000_v19 }
 0xa87   :  { %6013 = vpow2.f32 %v2237_v62  ;;  %1606 = vmatprep.subr.bf16.mxu0 %v5721_v6  ;;  %v5731_v62 = vld [vmem:[#allocation10] ss:$8 sps:$4 sm:$0xff]   ;;  %v5736_v6 = vld [vmem:[#allocation10 + $0x14] ss:$8 sps:$4 sm:$0xff]  }
 0xa88   :  { %v6010_v36 = vpop.eup %6009 }
 0xa89   :  { %v1447_v14 = vmul.f32 %v6010_v36, %v6002_v12 }
 0xa8b   :  { %v1452_v18 = vpack.c.bf16 %v1447_v14, %v1445_v41 }
 0xa8d   :  { %5426 = vmatmul.mubr.msk.bf16.vlgmr.msra.gmra.mrb[52].mxu0 %vm1157_vm2, %v1452_v18 }
 0xa8e   :  { %1638 = vmatprep.mubr.bf16.mxu0 %v6331_v0  ;;  %1607 = vmatpush1.bf16.msra.mxu0 %v5719_v56 }
 0xa8f   :  { %1608 = vmatprep.subr.bf16.mxu0 %v5724_v49  ;;  %v5740_v49 = vld [vmem:[#allocation10 + $0x30] ss:$8 sps:$4 sm:$0xff]  }
 0xa90   :  { %v6012_v42 = vpop.eup %6011 }
 0xa91   :  { %v2245_v45 = vsel %vm1157_vm2, %v6012_v42, 0.0  ;;  %v6014_v19 = vpop.eup %6013 }
 0xa92   :  { %2246 = vadd.xlane.f32.xlu1 %v2245_v45  ;;  %v2248_v12 = vsel %vm1157_vm2, %v6014_v19, 0.0  ;;  %1609 = vmatpush1.bf16.msra.mxu0 %v5722_v8  ;;  %v5739_v8 = vld [vmem:[#allocation10 + $0x24] ss:$8 sps:$4 sm:$0xff]  }
 0xa93   :  { %1610 = vmatprep.subr.bf16.mxu0 %v5727_v13  ;;  %v5745_v13 = vld [vmem:[#allocation10 + $0x84] ss:$8 sps:$4 sm:$0xff]  }
 0xa9c   :  { %2262 = vrot.lane.b32.xlu0 %v6603_v38, %s6323_s5  ;;  %v5725_v38 = vld [vmem:[#allocation10 + $0x60] ss:$8 sps:$4 sm:$0xff]  }
 0xa9d   :  { %1611 = vmatpush1.bf16.msra.mxu0 %v5725_v38  ;;  %v5743_v38 = vld [vmem:[#allocation10 + $0x80] ss:$8 sps:$4 sm:$0xff]  }
 0xaa3   :  { %2310 = vrot.lane.b32.xlu1 %v6609_v52, %s6323_s5  ;;  %v5730_v52 = vld [vmem:[#allocation10 + $0x74] ss:$8 sps:$4 sm:$0xff]   ;;  %s4919_s5 = sshll.u32 %s6334_s7, 4  ;;  %s4920_s5 = int_to_ptr.vmem [resolvable:$true] %s4919_s5 }
 0xaa4   :  { %1612 = vmatprep.subr.bf16.mxu0 %v5730_v52  ;;  %v5748_v52 = vld [vmem:[#allocation10 + $0x94] ss:$8 sps:$4 sm:$0xff]   ;;  %s6279_s26 = scalar_lea.vmem %s4920_s5, 1024  ;;  %p6284_p9 = scmp.lt.s32.totalorder %s4920_s5, %s4920_s5 }
 0xaa5   :  { %1613 = vmatpush1.bf16.msra.mxu0 %v5728_v43  ;;  %v5746_v43 = vld [vmem:[#allocation10 + $0x90] ss:$8 sps:$4 sm:$0xff]   ;;  %p6280_p8 = scmp.ne.s32.totalorder %s4920_s5, %s6279_s26  ;;  %p6285_p10 = scmp.lt.s32.totalorder %s6279_s26, %s6279_s26 }
 0xaa6   :  { %1705 = vmatprep.subr.bf16.mxu0 %v5733_v15  ;;  %v5752_v15 = vld [vmem:[#allocation10 + $0xb0] ss:$8 sps:$4 sm:$0xff]  }
 0xaa7   :  { %p6286_p11 = por %p6285_p10, %p6284_p9 }
 0xaa9   :  { %p6287_p12 = pnand %p6286_p11, %p6280_p8 }
 0xabb   :  { %2249 = vadd.xlane.f32.xlu0 %v2248_v12 }
 0xb0f   :  { %v2241_v26 = vpop.xlane.xlu0 %2240 }
 0xb10   :  { %6015 = vrcp.f32 %v2241_v26  ;;  %v5766_v26 = vld [vmem:[#allocation10 + $0xf4] ss:$8 sps:$4 sm:$0xff]  }
 0xb13   :  { %v2244_v28 = vpop.xlane.xlu0 %2243 }
 0xb14   :  { %6017 = vrcp.f32 %v2244_v28  ;;  %v5764_v28 = vld [vmem:[#allocation10 + $0xf0] ss:$8 sps:$4 sm:$0xff]  }
 0xb17   :  { %v2263_v29 = vpop.permute.xlu0 %2262 }
 0xb18   :  { %5472 = vmatpush3.bf16.msra.mxu1 %v2263_v29 }
 0xb19   :  { %5477 = vmatprep.subr.bf16.mxu1 %v6332_v20 }
 0xb1a   :  { %v6016_v32 = vpop.eup %6015 }
 0xb1b   :  { %v2252_v3 = vmul.f32 %v6016_v32, %v6004_v31 }
 0xb1e   :  { %v6018_v33 = vpop.eup %6017 }
 0xb1f   :  { %v2254_v37 = vmul.f32 %v6018_v33, %v6006_v40  ;;  %v2247_v35 = vpop.xlane.xlu1 %2246 }
 0xb20   :  { %6019 = vrcp.f32 %v2247_v35 }
 0xb21   :  { %v2259_v46 = vpack.c.bf16 %v2254_v37, %v2252_v3  ;;  %v142_v37 = vld [vmem:[#allocation14 + $0x1] ss:$8 sm:$0x3] }
 0xb22   :  { %v2478_v35 = vrot.slane %v142_v37, %v6549_v11 }
 0xb23   :  { %v2311_v60 = vpop.permute.xlu1 %2310  ;;  %5474 = vmatmul.mubr.msk.bf16.vlgmr.msra.gmra.mrb[32].mxu1 %vm1157_vm2, %v2259_v46  ;;  %v2482_v46 = vrot.slane %v142_v37, %v6552_v24 }
 0xb24   :  { %5478 = vmatpush3.bf16.msra.mxu1 %v2311_v60  ;;  %5479 = vmatprep.mubr.msk.bf16.mxu1 %vm6333_vm1, %v6332_v20  ;;  %v5734_v20 = vld [vmem:[#allocation10 + $0x10] ss:$8 sps:$4 sm:$0xff]  }
 0xb2a   :  { %v6020_v41 = vpop.eup %6019 }
 0xb2b   :  { %v2256_v18 = vmul.f32 %v6020_v41, %v6012_v42  ;;  %v5737_v42 = vld [vmem:[#allocation10 + $0x20] ss:$8 sps:$4 sm:$0xff]  }
 0xb48   :  { %v2250_v36 = vpop.xlane.xlu0 %2249 }
 0xb49   :  { %6021 = vrcp.f32 %v2250_v36 }
 0xb53   :  { %v6022_v14 = vpop.eup %6021 }
 0xb54   :  { %v2258_v45 = vmul.f32 %v6022_v14, %v6014_v19  ;;  %v5742_v19 = vld [vmem:[#allocation10 + $0x34] ss:$8 sps:$4 sm:$0xff]  }
 0xb56   :  { %v2260_v44 = vpack.c.bf16 %v2258_v45, %v2256_v18 }
 0xb58   :  { %5480 = vmatmul.mubr.msk.bf16.vlgmr.msra.gmra.mrb[36].mxu1 %vm1157_vm2, %v2260_v44 }
 0xb60   :  { %v1495_v31 = vpop.f32.mrb[52].mxu0 }
 0xb61   :  { %v5427_v40 = vpop.f32.mrb[53].mxu0 }
 0xb62   :  { %v1498_v58 = vpop.f32.mrb[54].mxu0 }
 0xb63   :  { %v1550_v12 = vpack.c.bf16 %v1498_v58, %v1495_v31  ;;  %v5428_v56 = vpop.f32.mrb[55].mxu0 }
 0xb65   :  { %5059 = vmatmul.mubr.msk.bf16.vlgmr.msra.gmra.mrb[56].mxu0 %vm227_vm0, %v1550_v12 }
 0xb66   :  { %1706 = vmatpush1.bf16.msra.mxu0 %v5731_v62  ;;  %1648 = vmatprep.mubr.bf16.mxu0 %v6331_v0 }
 0xb67   :  { %1707 = vmatprep.subr.bf16.mxu0 %v5736_v6 }
 0xb6a   :  { %1708 = vmatpush1.bf16.msra.mxu0 %v5734_v20 }
 0xb6b   :  { %1709 = vmatprep.subr.bf16.mxu0 %v5739_v8 }
 0xb6d   :  { %5060 = vmatmul.mubr.msk.bf16.gmra.mrb[60].mxu0 %vm227_vm0, %v1551_v2  ;;  %v5754_v2 = vld [vmem:[#allocation10 + $0xb4] ss:$8 sps:$4 sm:$0xff]  }
 0xb6e   :  { %1710 = vmatpush1.bf16.msra.mxu0 %v5737_v42  ;;  %1737 = vmatprep.mubr.bf16.mxu0 %v6331_v0 }
 0xb6f   :  { %1711 = vmatprep.subr.bf16.mxu0 %v5742_v19 }
 0xb72   :  { %1712 = vmatpush1.bf16.msra.mxu0 %v5740_v49 }
 0xb73   :  { %2048 = vmatprep.subr.bf16.mxu0 %v5745_v13 }
 0xb75   :  { %5069 = vmatmul.mubr.msk.bf16.vlgmr.msra.gmra.mrb[56].mxu0 %vm227_vm0, %v1292_v25  ;;  %v5760_v25 = vld [vmem:[#allocation10 + $0xd4] ss:$8 sps:$4 sm:$0xff]  }
 0xb76   :  { %2049 = vmatpush1.bf16.msra.mxu0 %v5743_v38  ;;  %1747 = vmatprep.mubr.bf16.mxu0 %v6331_v0 }
 0xb77   :  { %2050 = vmatprep.subr.bf16.mxu0 %v5748_v52 }
 0xb7a   :  { %2051 = vmatpush1.bf16.msra.mxu0 %v5746_v43  ;;  %v2608_v43 = vld [vmem:[#allocation11] sm:$0xff] }
 0xb7b   :  { %2052 = vmatprep.subr.bf16.mxu0 %v5751_v27  ;;  %v2612_v27 = vld [vmem:[#allocation11 + $0x20] sm:$0xff] }
 0xb7d   :  { %5070 = vmatmul.mubr.msk.bf16.gmra.mrb[60].mxu0 %vm227_vm0, %v1293_v5  ;;  %v5761_v5 = vld [vmem:[#allocation10 + $0xe0] ss:$8 sps:$4 sm:$0xff]  }
 0xb7e   :  { %2053 = vmatpush1.bf16.msra.mxu0 %v5749_v57  ;;  %2080 = vmatprep.mubr.bf16.mxu0 %v6331_v0  ;;  %v2609_v57 = vld [vmem:[#allocation11 + $0x8] sm:$0xff] }
 0xb7f   :  { %2054 = vmatprep.subr.bf16.mxu0 %v5754_v2  ;;  %v5100_v2 = vcombine.high %v2608_v43, %v2612_v27 }
 0xb81   :  { %3417 = vmatprep.subr.bf16.mxu1 %v5100_v2 }
 0xb82   :  { %2055 = vmatpush1.bf16.msra.mxu0 %v5752_v15  ;;  %v2613_v15 = vld [vmem:[#allocation11 + $0x28] sm:$0xff] }
 0xb83   :  { %2413 = vmatprep.subr.bf16.mxu0 %v5757_v16  ;;  %v2616_v16 = vld [vmem:[#allocation11 + $0x40] sm:$0xff] }
 0xb85   :  { %5083 = vmatmul.mubr.msk.bf16.vlgmr.msra.gmra.mrb[56].mxu0 %vm227_vm0, %v1992_v17 }
 0xb86   :  { %2090 = vmatprep.mubr.bf16.mxu0 %v6331_v0  ;;  %2414 = vmatpush1.bf16.msra.mxu0 %v5755_v21  ;;  %v5101_v21 = vcombine.low %v2609_v57, %v2613_v15 }
 0xb87   :  { %2415 = vmatprep.subr.bf16.mxu0 %v5760_v25  ;;  %v5102_v25 = vcombine.high %v2609_v57, %v2613_v15  ;;  %v2664_v15 = vld [vmem:[#allocation11 + $0x1c0] sm:$0xff] }
 0xb8a   :  { %2416 = vmatpush1.bf16.msra.mxu0 %v5758_v61  ;;  %v2617_v61 = vld [vmem:[#allocation11 + $0x48] sm:$0xff] }
 0xb8b   :  { %2417 = vmatprep.subr.bf16.mxu0 %v5763_v63  ;;  %v2621_v63 = vld [vmem:[#allocation11 + $0x68] sm:$0xff] }
 0xb8d   :  { %5084 = vmatmul.mubr.msk.bf16.gmra.mrb[60].mxu0 %vm227_vm0, %v1993_v39 }
 0xb8e   :  { %2418 = vmatpush1.bf16.msra.mxu0 %v5761_v5  ;;  %2445 = vmatprep.mubr.bf16.mxu0 %v6331_v0  ;;  %v2624_v5 = vld [vmem:[#allocation11 + $0x80] sm:$0xff] }
 0xb8f   :  { %2419 = vmatprep.subr.bf16.mxu0 %v5766_v26  ;;  %v5110_v26 = vcombine.high %v2617_v61, %v2621_v63 }
 0xb92   :  { %2420 = vmatpush1.bf16.msra.mxu0 %v5764_v28  ;;  %v2628_v28 = vld [vmem:[#allocation11 + $0xa0] sm:$0xff] }
 0xb93   :  { %3470 = vmatprep.subr.bf16.mxu0 %v5102_v25  ;;  %v5115_v37 = vcombine.low %v2624_v5, %v2628_v28 }
 0xbf6   :  { %v2302_v9 = vpop.f32.mrb[32].mxu1 }
 0xbf7   :  { %v5475_v50 = vpop.f32.mrb[33].mxu1 }
 0xbf8   :  { %v2305_v17 = vpop.f32.mrb[34].mxu1  ;;  %v2629_v50 = vld [vmem:[#allocation11 + $0xa8] sm:$0xff] }
 0xbf9   :  { %v2357_v29 = vpack.c.bf16 %v2305_v17, %v2302_v9  ;;  %v5476_v32 = vpop.f32.mrb[35].mxu1  ;;  %v2625_v9 = vld [vmem:[#allocation11 + $0x88] sm:$0xff] }
 0xbfa   :  { %v5116_v32 = vcombine.high %v2624_v5, %v2628_v28  ;;  %v2672_v5 = vld [vmem:[#allocation11 + $0x200] sm:$0xff]  ;;  %v2673_v28 = vld [vmem:[#allocation11 + $0x208] sm:$0xff] }
 0xbfb   :  { %5097 = vmatmul.mubr.msk.bf16.vlgmr.msra.gmra.mrb[56].mxu0 %vm227_vm0, %v2357_v29  ;;  %v5109_v29 = vcombine.low %v2617_v61, %v2621_v63 }
 0xbfc   :  { %2455 = vmatprep.mubr.bf16.mxu0 %v6331_v0  ;;  %3471 = vmatpush1.bf16.msra.mxu0 %v5101_v21  ;;  %v2669_v21 = vld [vmem:[#allocation11 + $0x1e8] sm:$0xff] }
 0xbfd   :  { %3472 = vmatprep.subr.bf16.mxu0 %v5110_v26  ;;  %v2676_v26 = vld [vmem:[#allocation11 + $0x220] sm:$0xff] }
 0xc00   :  { %3473 = vmatpush1.bf16.msra.mxu0 %v5109_v29  ;;  %v5164_v29 = vcombine.high %v2672_v5, %v2676_v26 }
 0xc2b   :  { %v2350_v33 = vpop.f32.mrb[36].mxu1 }
 0xc2c   :  { %v5481_v3 = vpop.f32.mrb[37].mxu1 }
 0xc2d   :  { %v2353_v30 = vpop.f32.mrb[38].mxu1  ;;  %v2632_v3 = vld [vmem:[#allocation11 + $0xc0] sm:$0xff] }
 0xc2e   :  { %v2358_v34 = vpack.c.bf16 %v2353_v30, %v2350_v33  ;;  %v5482_v39 = vpop.f32.mrb[39].mxu1  ;;  %v5118_v33 = vcombine.high %v2625_v9, %v2629_v50  ;;  %v2636_v30 = vld [vmem:[#allocation11 + $0xe0] sm:$0xff] }
 0xc2f   :  { %v2637_v39 = vld [vmem:[#allocation11 + $0xe8] sm:$0xff] }
 0xc30   :  { %5098 = vmatmul.mubr.msk.bf16.gmra.mrb[60].mxu0 %vm227_vm0, %v2358_v34  ;;  %v2633_v34 = vld [vmem:[#allocation11 + $0xc8] sm:$0xff]  ;;  %3474 = vmatprep.subr.bf16.mxu0 %v5118_v33  ;;  %v2680_v33 = vld [vmem:[#allocation11 + $0x240] sm:$0xff] }
 0xcce   :  { %v2447_v60 = vpop.f32.mrb[56].mxu0 }
 0xccf   :  { %v2485_v36 = vadd.f32 %v2478_v35, %v2447_v60  ;;  %v2449_v41 = vpop.f32.mrb[57].mxu0  ;;  %v5126_v60 = vcombine.high %v2633_v34, %v2637_v39 }
 0xcd0   :  { %v2486_v14 = vadd.f32 %v2482_v46, %v2449_v41  ;;  %v2451_v18 = vpop.f32.mrb[58].mxu0  ;;  %v2644_v41 = vld [vmem:[#allocation11 + $0x120] sm:$0xff] }
 0xcd1   :  { %v6804_v45 = vadd.f32 %v2485_v36, %v6500_v55  ;;  %v2487_v0 = vadd.f32 %v2478_v35, %v2451_v18  ;;  %v2453_v44 = vpop.f32.mrb[59].mxu0  ;;  %v2640_v36 = vld [vmem:[#allocation11 + $0x100] sm:$0xff]  ;;  %v2645_v18 = vld [vmem:[#allocation11 + $0x128] sm:$0xff] }
 0xcd2   :  { %v6807_v31 = vadd.f32 %v2486_v14, %v6496_v53  ;;  %v2488_v40 = vadd.f32 %v2482_v46, %v2453_v44  ;;  %v2641_v14 = vld [vmem:[#allocation11 + $0x108] sm:$0xff]  ;;  %v5125_v44 = vcombine.low %v2633_v34, %v2637_v39  ;;  %v5163_v39 = vcombine.low %v2672_v5, %v2676_v26 }
 0xcd3   :  { %v6810_v58 = vadd.f32 %v2487_v0, %v6494_v51  ;;  %v5123_v0 = vcombine.low %v2632_v3, %v2636_v30  ;;  %v2685_v34 = vld [vmem:[#allocation11 + $0x268] sm:$0xff] }
 0xcd4   :  { %v6813_v62 = vadd.f32 %v2488_v40, %v6498_v54  ;;  %v2501_v12 = vadd.f32 %v6807_v31, %v6804_v45  ;;  %v5132_v40 = vcombine.high %v2640_v36, %v2644_v41 }
 0xcd6   :  { %2502 = vadd.xlane.f32.xlu0 %v2501_v12  ;;  %v2504_v55 = vadd.f32 %v6813_v62, %v6810_v58  ;;  %v5134_v12 = vcombine.high %v2641_v14, %v2645_v18 }
 0xcda   :  { %2505 = vadd.xlane.f32.xlu0 %v2504_v55  ;;  %v2648_v55 = vld [vmem:[#allocation11 + $0x140] sm:$0xff] }
 0xd03   :  { %v2457_v56 = vpop.f32.mrb[60].mxu0 }
 0xd04   :  { %v2489_v6 = vadd.f32 %v2478_v35, %v2457_v56  ;;  %v2459_v20 = vpop.f32.mrb[61].mxu0  ;;  %v2652_v56 = vld [vmem:[#allocation11 + $0x160] sm:$0xff] }
 0xd05   :  { %v2490_v53 = vadd.f32 %v2482_v46, %v2459_v20  ;;  %v2461_v8 = vpop.f32.mrb[62].mxu0  ;;  %v2653_v20 = vld [vmem:[#allocation11 + $0x168] sm:$0xff] }
 0xd06   :  { %v6820_v42 = vadd.f32 %v2489_v6, %v6511_v1  ;;  %v2491_v51 = vadd.f32 %v2478_v35, %v2461_v8  ;;  %v2463_v19 = vpop.f32.mrb[63].mxu0  ;;  %v5117_v35 = vcombine.low %v2625_v9, %v2629_v50  ;;  %v2649_v6 = vld [vmem:[#allocation11 + $0x148] sm:$0xff]  ;;  %v5133_v8 = vcombine.low %v2641_v14, %v2645_v18 }
 0xd07   :  { %v6823_v54 = vadd.f32 %v2490_v53, %v6514_v4  ;;  %v2492_v49 = vadd.f32 %v2482_v46, %v2463_v19  ;;  %v5099_v4 = vcombine.low %v2608_v43, %v2612_v27  ;;  %v5124_v46 = vcombine.high %v2632_v3, %v2636_v30  ;;  %v2661_v43 = vld [vmem:[#allocation11 + $0x1a8] sm:$0xff]  ;;  %v2684_v3 = vld [vmem:[#allocation11 + $0x260] sm:$0xff] }
 0xd08   :  { %v6826_v13 = vadd.f32 %v2491_v51, %v6516_v7  ;;  %v2620_v7 = vld [vmem:[#allocation11 + $0x60] sm:$0xff]  ;;  %3475 = vmatpush1.bf16.msra.mxu0 %v5117_v35  ;;  %v5131_v53 = vcombine.low %v2640_v36, %v2644_v41  ;;  %v5140_v51 = vcombine.high %v2648_v55, %v2652_v56  ;;  %v5142_v19 = vcombine.high %v2649_v6, %v2653_v20  ;;  %v2677_v9 = vld [vmem:[#allocation11 + $0x228] sm:$0xff] }
 0xd09   :  { %v6829_v38 = vadd.f32 %v2492_v49, %v6518_v10  ;;  %v2507_v52 = vadd.f32 %v6823_v54, %v6820_v42  ;;  %v5108_v10 = vcombine.high %v2616_v16, %v2620_v7  ;;  %3418 = vmatpush1.bf16.msra.mxu1 %v5099_v4  ;;  %v5107_v17 = vcombine.low %v2616_v16, %v2620_v7  ;;  %v2656_v49 = vld [vmem:[#allocation11 + $0x180] sm:$0xff]  ;;  %v2665_v7 = vld [vmem:[#allocation11 + $0x1c8] sm:$0xff] }
 0xd0a   :  { %3476 = vmatprep.subr.bf16.mxu0 %v5126_v60  ;;  %v5139_v27 = vcombine.low %v2648_v55, %v2652_v56  ;;  %v5141_v57 = vcombine.low %v2649_v6, %v2653_v20  ;;  %v2668_v16 = vld [vmem:[#allocation11 + $0x1e0] sm:$0xff]  ;;  %v5158_v63 = vcombine.high %v2665_v7, %v2669_v21  ;;  %v2681_v30 = vld [vmem:[#allocation11 + $0x248] sm:$0xff]  ;;  %v5172_v35 = vcombine.high %v2680_v33, %v2684_v3 }
 0xd0b   :  { %2508 = vadd.xlane.f32.xlu0 %v2507_v52  ;;  %v2510_v1 = vadd.f32 %v6829_v38, %v6826_v13  ;;  %3419 = vmatprep.subr.bf16.mxu1 %v5108_v10  ;;  %v2660_v52 = vld [vmem:[#allocation11 + $0x1a0] sm:$0xff]  ;;  %v5156_v61 = vcombine.high %v2664_v15, %v2668_v16  ;;  %v5155_v50 = vcombine.low %v2664_v15, %v2668_v16 }
 0xd0c   :  { %3477 = vmatpush1.bf16.msra.mxu0 %v5125_v44  ;;  %v5148_v4 = vcombine.high %v2656_v49, %v2660_v52  ;;  %v5147_v25 = vcombine.low %v2656_v49, %v2660_v52  ;;  %v5171_v60 = vcombine.low %v2680_v33, %v2684_v3  ;;  %v5173_v36 = vcombine.low %v2681_v30, %v2685_v34  ;;  %v2693_v52 = vld [vmem:[#allocation11 + $0x2a8] sm:$0xff] }
 0xd0d   :  { %2511 = vadd.xlane.f32.xlu1 %v2510_v1  ;;  %3420 = vmatpush1.bf16.msra.mxu1 %v5107_v17  ;;  %v2657_v1 = vld [vmem:[#allocation11 + $0x188] sm:$0xff]  ;;  %v5157_v17 = vcombine.low %v2665_v7, %v2669_v21  ;;  %v2704_v21 = vld [vmem:[#allocation11 + $0x300] sm:$0xff] }
 0xd0e   :  { %3421 = vmatprep.subr.bf16.mxu1 %v5116_v32  ;;  %3478 = vmatprep.subr.bf16.mxu0 %v5134_v12  ;;  %v5150_v2 = vcombine.high %v2657_v1, %v2661_v43  ;;  %v5149_v10 = vcombine.low %v2657_v1, %v2661_v43  ;;  %v5166_v32 = vcombine.high %v2673_v28, %v2677_v9 }
 0xd10   :  { %3479 = vmatpush1.bf16.msra.mxu0 %v5133_v8  ;;  %v2688_v8 = vld [vmem:[#allocation11 + $0x280] sm:$0xff] }
 0xd11   :  { %3422 = vmatpush1.bf16.msra.mxu1 %v5115_v37  ;;  %3480 = vmatprep.subr.bf16.mxu0 %v5142_v19  ;;  %v5165_v37 = vcombine.low %v2673_v28, %v2677_v9  ;;  %v2689_v19 = vld [vmem:[#allocation11 + $0x288] sm:$0xff]  ;;  %v2712_v9 = vld [vmem:[#allocation11 + $0x340] sm:$0xff] }
 0xd12   :  { %3423 = vmatprep.subr.bf16.mxu1 %v5124_v46  ;;  %v5174_v46 = vcombine.high %v2681_v30, %v2685_v34  ;;  %v5181_v1 = vcombine.low %v2689_v19, %v2693_v52  ;;  %v5182_v43 = vcombine.high %v2689_v19, %v2693_v52  ;;  %v2720_v34 = vld [vmem:[#allocation11 + $0x380] sm:$0xff] }
 0xd14   :  { %3481 = vmatpush1.bf16.msra.mxu0 %v5141_v57  ;;  %v2697_v57 = vld [vmem:[#allocation11 + $0x2c8] sm:$0xff] }
 0xd15   :  { %3424 = vmatpush1.bf16.msra.mxu1 %v5123_v0  ;;  %3482 = vmatprep.subr.bf16.mxu0 %v5150_v2  ;;  %v2701_v2 = vld [vmem:[#allocation11 + $0x2e8] sm:$0xff] }
 0xd16   :  { %3425 = vmatprep.subr.bf16.mxu1 %v5132_v40  ;;  %v5189_v16 = vcombine.low %v2697_v57, %v2701_v2  ;;  %v5190_v7 = vcombine.high %v2697_v57, %v2701_v2 }
 0xd18   :  { %3483 = vmatpush1.bf16.msra.mxu0 %v5149_v10  ;;  %v2705_v10 = vld [vmem:[#allocation11 + $0x308] sm:$0xff] }
 0xd19   :  { %3426 = vmatpush1.bf16.msra.mxu1 %v5131_v53  ;;  %3484 = vmatprep.subr.bf16.mxu0 %v5158_v63  ;;  %v2709_v63 = vld [vmem:[#allocation11 + $0x328] sm:$0xff] }
 0xd1a   :  { %3427 = vmatprep.subr.bf16.mxu1 %v5140_v51  ;;  %v2692_v51 = vld [vmem:[#allocation11 + $0x2a0] sm:$0xff]  ;;  %v5197_v26 = vcombine.low %v2705_v10, %v2709_v63  ;;  %v5198_v28 = vcombine.high %v2705_v10, %v2709_v63 }
 0xd1b   :  { %v5180_v49 = vcombine.high %v2688_v8, %v2692_v51 }
 0xd1c   :  { %3485 = vmatpush1.bf16.msra.mxu0 %v5157_v17  ;;  %v2713_v17 = vld [vmem:[#allocation11 + $0x348] sm:$0xff] }
 0xd1d   :  { %3428 = vmatpush1.bf16.msra.mxu1 %v5139_v27  ;;  %3486 = vmatprep.subr.bf16.mxu0 %v5166_v32  ;;  %v2700_v27 = vld [vmem:[#allocation11 + $0x2e0] sm:$0xff]  ;;  %v2717_v32 = vld [vmem:[#allocation11 + $0x368] sm:$0xff] }
 0xd1e   :  { %3429 = vmatprep.subr.bf16.mxu1 %v5148_v4  ;;  %v5205_v3 = vcombine.low %v2713_v17, %v2717_v32  ;;  %v5206_v30 = vcombine.high %v2713_v17, %v2717_v32 }
 0xd20   :  { %3487 = vmatpush1.bf16.msra.mxu0 %v5165_v37  ;;  %v2721_v37 = vld [vmem:[#allocation11 + $0x388] sm:$0xff] }
 0xd21   :  { %3430 = vmatpush1.bf16.msra.mxu1 %v5147_v25  ;;  %3488 = vmatprep.subr.bf16.mxu0 %v5174_v46  ;;  %v2708_v25 = vld [vmem:[#allocation11 + $0x320] sm:$0xff]  ;;  %v2725_v46 = vld [vmem:[#allocation11 + $0x3a8] sm:$0xff] }
 0xd22   :  { %3431 = vmatprep.subr.bf16.mxu1 %v5156_v61  ;;  %v5196_v61 = vcombine.high %v2704_v21, %v2708_v25  ;;  %v5195_v5 = vcombine.low %v2704_v21, %v2708_v25 }
 0xd24   :  { %3489 = vmatpush1.bf16.msra.mxu0 %v5173_v36  ;;  %v5213_v36 = vcombine.low %v2721_v37, %v2725_v46 }
 0xd25   :  { %3432 = vmatpush1.bf16.msra.mxu1 %v5155_v50  ;;  %3490 = vmatprep.subr.bf16.mxu0 %v5182_v43  ;;  %v2716_v50 = vld [vmem:[#allocation11 + $0x360] sm:$0xff] }
 0xd26   :  { %3433 = vmatprep.subr.bf16.mxu1 %v5164_v29  ;;  %v5204_v29 = vcombine.high %v2712_v9, %v2716_v50  ;;  %v5203_v33 = vcombine.low %v2712_v9, %v2716_v50 }
 0xd28   :  { %3491 = vmatpush1.bf16.msra.mxu0 %v5181_v1 }
 0xd29   :  { %3434 = vmatpush1.bf16.msra.mxu1 %v5163_v39  ;;  %3492 = vmatprep.subr.bf16.mxu0 %v5190_v7  ;;  %v2724_v39 = vld [vmem:[#allocation11 + $0x3a0] sm:$0xff] }
 0xd2a   :  { %3435 = vmatprep.subr.bf16.mxu1 %v5172_v35  ;;  %v5212_v35 = vcombine.high %v2720_v34, %v2724_v39 }
 0xd2c   :  { %3493 = vmatpush1.bf16.msra.mxu0 %v5189_v16 }
 0xd2d   :  { %3436 = vmatpush1.bf16.msra.mxu1 %v5171_v60  ;;  %3494 = vmatprep.subr.bf16.mxu0 %v5198_v28  ;;  %v5211_v60 = vcombine.low %v2720_v34, %v2724_v39  ;;  %v144_v28 = vld [vmem:[#allocation14 + $0x2] ss:$8 sm:$0x3] }
 0xd2e   :  { %3437 = vmatprep.subr.bf16.mxu1 %v5180_v49  ;;  %v6863_v49 = vld [vmem:[#allocation11 + $0x38] sm:$0xff]  ;;  %v6894_v32 = vrot.slane %v144_v28, %v6552_v24 }
 0xd30   :  { %3495 = vmatpush1.bf16.msra.mxu0 %v5197_v26 }
 0xd31   :  { %3496 = vmatprep.subr.bf16.mxu0 %v5206_v30 }
 0xd34   :  { %3497 = vmatpush1.bf16.msra.mxu0 %v5205_v3 }
 0xd63   :  { %v2503_v41 = vpop.xlane.xlu0 %2502 }
 0xd64   :  { %v2514_v14 = vmul.f32 0.00390625, %v2503_v41  ;;  %v5214_v41 = vcombine.high %v2721_v37, %v2725_v46 }
 0xd66   :  { %v6836_v18 = vsub.f32 %v6804_v45, %v2514_v14  ;;  %v6839_v0 = vsub.f32 %v6807_v31, %v2514_v14  ;;  %v2728_v14 = vld [vmem:[#allocation11 + $0x3c0] sm:$0xff]  ;;  %3498 = vmatprep.subr.bf16.mxu0 %v5214_v41 }
 0xd67   :  { %v2506_v44 = vpop.xlane.xlu0 %2505  ;;  %3499 = vmatpush1.bf16.msra.mxu0 %v5213_v36 }
 0xd68   :  { %v2515_v40 = vmul.f32 0.00390625, %v2506_v44  ;;  %v2526_v12 = vmul.f32 %v6836_v18, %v6836_v18  ;;  %v2527_v55 = vmul.f32 %v6839_v0, %v6839_v0  ;;  %v2732_v44 = vld [vmem:[#allocation11 + $0x3e0] sm:$0xff] }
 0xd6a   :  { %v6846_v56 = vsub.f32 %v6810_v58, %v2515_v40  ;;  %v6849_v6 = vsub.f32 %v6813_v62, %v2515_v40  ;;  %v2534_v20 = vadd.f32 %v2527_v55, %v2526_v12  ;;  %v5179_v58 = vcombine.low %v2688_v8, %v2692_v51  ;;  %v2696_v62 = vld [vmem:[#allocation11 + $0x2c0] sm:$0xff]  ;;  %v2729_v40 = vld [vmem:[#allocation11 + $0x3c8] sm:$0xff]  ;;  %v6857_v8 = vld [vmem:[#allocation11 + $0x30] sm:$0xff] }
 0xd6b   :  { %v5188_v4 = vcombine.high %v2696_v62, %v2700_v27  ;;  %v5187_v15 = vcombine.low %v2696_v62, %v2700_v27  ;;  %v5220_v12 = vcombine.high %v2728_v14, %v2732_v44  ;;  %v2733_v55 = vld [vmem:[#allocation11 + $0x3e8] sm:$0xff]  ;;  %v6859_v51 = vld [vmem:[#allocation11 + $0x18] sm:$0xff] }
 0xd6c   :  { %2535 = vadd.xlane.f32.xlu0 %v2534_v20  ;;  %v2528_v45 = vmul.f32 %v6846_v56, %v6846_v56  ;;  %v2529_v31 = vmul.f32 %v6849_v6, %v6849_v6  ;;  %3438 = vmatpush1.bf16.msra.mxu1 %v5179_v58  ;;  %v5219_v20 = vcombine.low %v2728_v14, %v2732_v44  ;;  %v2619_v44 = vld [vmem:[#allocation11 + $0x58] sm:$0xff] }
 0xd6d   :  { %3439 = vmatprep.subr.bf16.mxu1 %v5188_v4  ;;  %v5105_v58 = vcombine.low %v6859_v51, %v6863_v49  ;;  %v5106_v1 = vcombine.high %v6859_v51, %v6863_v49  ;;  %v2642_v51 = vld [vmem:[#allocation11 + $0x110] sm:$0xff] }
 0xd6e   :  { %v2537_v53 = vadd.f32 %v2529_v31, %v2528_v45  ;;  %v5222_v45 = vcombine.high %v2729_v40, %v2733_v55  ;;  %v5221_v31 = vcombine.low %v2729_v40, %v2733_v55  ;;  %v2623_v40 = vld [vmem:[#allocation11 + $0x78] sm:$0xff]  ;;  %v2646_v49 = vld [vmem:[#allocation11 + $0x130] sm:$0xff] }
 0xd70   :  { %2538 = vadd.xlane.f32.xlu0 %v2537_v53  ;;  %3440 = vmatpush1.bf16.msra.mxu1 %v5187_v15  ;;  %v6855_v53 = vld [vmem:[#allocation11 + $0x10] sm:$0xff] }
 0xd71   :  { %3441 = vmatprep.subr.bf16.mxu1 %v5196_v61  ;;  %3500 = vmatprep.subr.bf16.mxu0 %v5222_v45  ;;  %v5104_v19 = vcombine.high %v6855_v53, %v6857_v8  ;;  %v5103_v52 = vcombine.low %v6855_v53, %v6857_v8  ;;  %v5114_v45 = vcombine.high %v2619_v44, %v2623_v40 }
 0xd72   :  { %3501 = vmatpush1.bf16.msra.mxu0 %v5221_v31  ;;  %v2626_v31 = vld [vmem:[#allocation11 + $0x90] sm:$0xff] }
 0xd73   :  { %3576 = vmatprep.subr.bf16.mxu0 %v5106_v1  ;;  %v2627_v1 = vld [vmem:[#allocation11 + $0x98] sm:$0xff] }
 0xd74   :  { %3442 = vmatpush1.bf16.msra.mxu1 %v5195_v5 }
 0xd75   :  { %3443 = vmatprep.subr.bf16.mxu1 %v5204_v29  ;;  %v146_v29 = vld [vmem:[#allocation14 + $0x3] ss:$8 sm:$0x3] }
 0xd76   :  { %v6900_v30 = vrot.slane %v146_v29, %v6552_v24  ;;  %v6903_v34 = vrot.slane %v146_v29, %v6549_v11 }
 0xd78   :  { %3444 = vmatpush1.bf16.msra.mxu1 %v5203_v33  ;;  %v6897_v33 = vrot.slane %v144_v28, %v6549_v11  ;;  %v2654_v28 = vld [vmem:[#allocation11 + $0x170] sm:$0xff] }
 0xd79   :  { %3445 = vmatprep.subr.bf16.mxu1 %v5212_v35 }
 0xd7c   :  { %3446 = vmatpush1.bf16.msra.mxu1 %v5211_v60  ;;  %v2618_v60 = vld [vmem:[#allocation11 + $0x50] sm:$0xff] }
 0xd7d   :  { %3447 = vmatprep.subr.bf16.mxu1 %v5220_v12 }
 0xd80   :  { %3448 = vmatpush1.bf16.msra.mxu1 %v5219_v20 }
 0xd81   :  { %3523 = vmatprep.subr.bf16.mxu1 %v5104_v19  ;;  %v2630_v19 = vld [vmem:[#allocation11 + $0xb0] sm:$0xff] }
 0xd98   :  { %v2509_v43 = vpop.xlane.xlu0 %2508 }
 0xd99   :  { %v2516_v62 = vmul.f32 0.00390625, %v2509_v43  ;;  %v2631_v43 = vld [vmem:[#allocation11 + $0xb8] sm:$0xff] }
 0xd9a   :  { %v2512_v27 = vpop.xlane.xlu1 %2511 }
 0xd9b   :  { %v6872_v57 = vsub.f32 %v6820_v42, %v2516_v62  ;;  %v6875_v4 = vsub.f32 %v6823_v54, %v2516_v62  ;;  %v2517_v2 = vmul.f32 0.00390625, %v2512_v27  ;;  %v5113_v27 = vcombine.low %v2619_v44, %v2623_v40  ;;  %v2666_v40 = vld [vmem:[#allocation11 + $0x1d0] sm:$0xff] }
 0xd9d   :  { %v6878_v15 = vsub.f32 %v6826_v13, %v2517_v2  ;;  %v6881_v16 = vsub.f32 %v6829_v38, %v2517_v2  ;;  %v2530_v7 = vmul.f32 %v6872_v57, %v6872_v57  ;;  %v2531_v21 = vmul.f32 %v6875_v4, %v6875_v4 }
 0xd9e   :  { %v5120_v2 = vcombine.high %v2626_v31, %v2630_v19 }
 0xd9f   :  { %v2540_v25 = vadd.f32 %v2531_v21, %v2530_v7  ;;  %v2532_v42 = vmul.f32 %v6878_v15, %v6878_v15  ;;  %v2533_v54 = vmul.f32 %v6881_v16, %v6881_v16  ;;  %v5122_v7 = vcombine.high %v2627_v1, %v2631_v43  ;;  %v2634_v21 = vld [vmem:[#allocation11 + $0xd0] sm:$0xff] }
 0xda1   :  { %2541 = vadd.xlane.f32.xlu0 %v2540_v25  ;;  %v2543_v10 = vadd.f32 %v2533_v54, %v2532_v42  ;;  %v2638_v25 = vld [vmem:[#allocation11 + $0xf0] sm:$0xff]  ;;  %v2635_v42 = vld [vmem:[#allocation11 + $0xd8] sm:$0xff] }
 0xda2   :  { %v2639_v54 = vld [vmem:[#allocation11 + $0xf8] sm:$0xff]  ;;  %v5128_v53 = vcombine.high %v2634_v21, %v2638_v25 }
 0xda3   :  { %v5130_v8 = vcombine.high %v2635_v42, %v2639_v54 }
 0xda5   :  { %2544 = vadd.xlane.f32.xlu0 %v2543_v10  ;;  %v5119_v10 = vcombine.low %v2626_v31, %v2630_v19  ;;  %v2671_v31 = vld [vmem:[#allocation11 + $0x1f8] sm:$0xff] }
 0xdf9   :  { %v2536_v13 = vpop.xlane.xlu0 %2535 }
 0xdfa   :  { %v2546_v61 = vmul.f32 0.00390625, %v2536_v13  ;;  %v5121_v13 = vcombine.low %v2627_v1, %v2631_v43 }
 0xdfc   :  { %v2550_v38 = vadd.f32 1e-05, %v2546_v61  ;;  %v5127_v61 = vcombine.low %v2634_v21, %v2638_v25  ;;  %v2679_v21 = vld [vmem:[#allocation11 + $0x238] sm:$0xff] }
 0xdfd   :  { %v2539_v63 = vpop.xlane.xlu0 %2538 }
 0xdfe   :  { %6023 = vrsqrt.f32 %v2550_v38  ;;  %v2547_v5 = vmul.f32 0.00390625, %v2539_v63  ;;  %v5129_v38 = vcombine.low %v2635_v42, %v2639_v54  ;;  %v5136_v63 = vcombine.high %v2642_v51, %v2646_v49 }
 0xe00   :  { %v2551_v26 = vadd.f32 1e-05, %v2547_v5 }
 0xe02   :  { %6025 = vrsqrt.f32 %v2551_v26  ;;  %v2650_v26 = vld [vmem:[#allocation11 + $0x150] sm:$0xff] }
 0xe08   :  { %v6024_v9 = vpop.eup %6023 }
 0xe09   :  { %v2558_v50 = vmul.f32 %v6024_v9, %v6836_v18  ;;  %v2559_v17 = vmul.f32 %v6024_v9, %v6839_v0  ;;  %v2651_v9 = vld [vmem:[#allocation11 + $0x158] sm:$0xff] }
 0xe0b   :  { %v2578_v0 = vmul.f32 %v6894_v32, %v2559_v17  ;;  %v2577_v37 = vmul.f32 %v6897_v33, %v2558_v50  ;;  %v2655_v50 = vld [vmem:[#allocation11 + $0x178] sm:$0xff]  ;;  %v5135_v17 = vcombine.low %v2642_v51, %v2646_v49  ;;  %v2686_v49 = vld [vmem:[#allocation11 + $0x270] sm:$0xff] }
 0xe0c   :  { %v6026_v3 = vpop.eup %6025 }
 0xe0d   :  { %v2560_v39 = vmul.f32 %v6026_v3, %v6846_v56  ;;  %v2561_v18 = vmul.f32 %v6026_v3, %v6849_v6  ;;  %v6912_v36 = vadd.f32 %v6900_v30, %v2578_v0  ;;  %v6918_v14 = vadd.f32 %v6903_v34, %v2577_v37  ;;  %v2622_v6 = vld [vmem:[#allocation11 + $0x70] sm:$0xff]  ;;  %v2659_v37 = vld [vmem:[#allocation11 + $0x198] sm:$0xff] }
 0xe0e   :  { %v5112_v20 = vcombine.high %v2618_v60, %v2622_v6  ;;  %v5111_v62 = vcombine.low %v2618_v60, %v2622_v6  ;;  %v5144_v3 = vcombine.high %v2650_v26, %v2654_v28  ;;  %v2662_v0 = vld [vmem:[#allocation11 + $0x1b0] sm:$0xff]  ;;  %v5145_v60 = vcombine.low %v2651_v9, %v2655_v50 }
 0xe0f   :  { %v2580_v35 = vmul.f32 %v6894_v32, %v2561_v18  ;;  %v2579_v46 = vmul.f32 %v6897_v33, %v2560_v39  ;;  %v5146_v39 = vcombine.high %v2651_v9, %v2655_v50  ;;  %v2658_v18 = vld [vmem:[#allocation11 + $0x190] sm:$0xff] }
 0xe10   :  { %v5152_v6 = vcombine.high %v2658_v18, %v2662_v0  ;;  %v5151_v19 = vcombine.low %v2658_v18, %v2662_v0  ;;  %v2690_v9 = vld [vmem:[#allocation11 + $0x290] sm:$0xff] }
 0xe11   :  { %v6915_v41 = vadd.f32 %v6900_v30, %v2580_v35  ;;  %v6921_v56 = vadd.f32 %v6903_v34, %v2579_v46  ;;  %v2663_v35 = vld [vmem:[#allocation11 + $0x1b8] sm:$0xff]  ;;  %v5143_v46 = vcombine.low %v2650_v26, %v2654_v28 }
 0xe12   :  { %v5154_v44 = vcombine.high %v2659_v37, %v2663_v35  ;;  %v5153_v1 = vcombine.low %v2659_v37, %v2663_v35  ;;  %v2698_v35 = vld [vmem:[#allocation11 + $0x2d0] sm:$0xff] }
 0xe13   :  { %v6925_v12 = vpack.c.bf16 %v6915_v41, %v6912_v36  ;;  %v6929_v55 = vpack.c.bf16 %v6921_v56, %v6918_v14 }
 0xe15   :  { %3449 = vmatprep.mubr.bf16.mxu1 %v6925_v12  ;;  %3502 = vmatprep.mubr.bf16.mxu0 %v6925_v12 }
 0xe16   :  { %3450 = vmatmul.mubr.bf16.vlgmr.msra.gmra.mrb[40].mxu1 %v6929_v55  ;;  %3503 = vmatmul.mubr.bf16.vlgmr.msra.gmra.mrb[64].mxu0 %v6929_v55 }
 0xe17   :  { %3524 = vmatpush1.bf16.msra.mxu1 %v5103_v52  ;;  %3577 = vmatpush1.bf16.msra.mxu0 %v5105_v58  ;;  %v2643_v52 = vld [vmem:[#allocation11 + $0x118] sm:$0xff] }
 0xe18   :  { %3525 = vmatprep.subr.bf16.mxu1 %v5112_v20  ;;  %3578 = vmatprep.subr.bf16.mxu0 %v5114_v45  ;;  %v2647_v58 = vld [vmem:[#allocation11 + $0x138] sm:$0xff]  ;;  %v2670_v20 = vld [vmem:[#allocation11 + $0x1f0] sm:$0xff] }
 0xe19   :  { %v5138_v5 = vcombine.high %v2643_v52, %v2647_v58  ;;  %v5137_v29 = vcombine.low %v2643_v52, %v2647_v58  ;;  %v2667_v45 = vld [vmem:[#allocation11 + $0x1d8] sm:$0xff]  ;;  %v5160_v43 = vcombine.high %v2666_v40, %v2670_v20  ;;  %v5159_v54 = vcombine.low %v2666_v40, %v2670_v20 }
 0xe1a   :  { %v2683_v52 = vld [vmem:[#allocation11 + $0x258] sm:$0xff] }
 0xe1b   :  { %3526 = vmatpush1.bf16.msra.mxu1 %v5111_v62  ;;  %3579 = vmatpush1.bf16.msra.mxu0 %v5113_v27  ;;  %v5162_v62 = vcombine.high %v2667_v45, %v2671_v31  ;;  %v2674_v27 = vld [vmem:[#allocation11 + $0x210] sm:$0xff]  ;;  %v2687_v58 = vld [vmem:[#allocation11 + $0x278] sm:$0xff] }
 0xe1c   :  { %3527 = vmatprep.subr.bf16.mxu1 %v5120_v2  ;;  %3580 = vmatprep.subr.bf16.mxu0 %v5122_v7  ;;  %v2678_v2 = vld [vmem:[#allocation11 + $0x230] sm:$0xff]  ;;  %v2675_v7 = vld [vmem:[#allocation11 + $0x218] sm:$0xff]  ;;  %v5178_v28 = vcombine.high %v2683_v52, %v2687_v58  ;;  %v5177_v18 = vcombine.low %v2683_v52, %v2687_v58 }
 0xe1f   :  { %3528 = vmatpush1.bf16.msra.mxu1 %v5119_v10  ;;  %3581 = vmatpush1.bf16.msra.mxu0 %v5121_v13  ;;  %v5161_v10 = vcombine.low %v2667_v45, %v2671_v31  ;;  %v5168_v13 = vcombine.high %v2674_v27, %v2678_v2  ;;  %v2706_v31 = vld [vmem:[#allocation11 + $0x310] sm:$0xff] }
 0xe20   :  { %3529 = vmatprep.subr.bf16.mxu1 %v5128_v53  ;;  %3582 = vmatprep.subr.bf16.mxu0 %v5130_v8  ;;  %v5170_v53 = vcombine.high %v2675_v7, %v2679_v21  ;;  %v2682_v8 = vld [vmem:[#allocation11 + $0x250] sm:$0xff] }
 0xe21   :  { %v5176_v26 = vcombine.high %v2682_v8, %v2686_v49 }
 0xe23   :  { %3530 = vmatpush1.bf16.msra.mxu1 %v5127_v61  ;;  %3583 = vmatpush1.bf16.msra.mxu0 %v5129_v38 }
 0xe24   :  { %3531 = vmatprep.subr.bf16.mxu1 %v5136_v63  ;;  %3584 = vmatprep.subr.bf16.mxu0 %v5138_v5  ;;  %v5167_v63 = vcombine.low %v2674_v27, %v2678_v2  ;;  %v5169_v5 = vcombine.low %v2675_v7, %v2679_v21 }
 0xe27   :  { %3532 = vmatpush1.bf16.msra.mxu1 %v5135_v17  ;;  %3585 = vmatpush1.bf16.msra.mxu0 %v5137_v29  ;;  %v2694_v17 = vld [vmem:[#allocation11 + $0x2b0] sm:$0xff]  ;;  %v2691_v29 = vld [vmem:[#allocation11 + $0x298] sm:$0xff] }
 0xe28   :  { %3533 = vmatprep.subr.bf16.mxu1 %v5144_v3  ;;  %3586 = vmatprep.subr.bf16.mxu0 %v5146_v39  ;;  %v2695_v3 = vld [vmem:[#allocation11 + $0x2b8] sm:$0xff]  ;;  %v5175_v39 = vcombine.low %v2682_v8, %v2686_v49  ;;  %v5184_v0 = vcombine.high %v2690_v9, %v2694_v17 }
 0xe29   :  { %v5186_v37 = vcombine.high %v2691_v29, %v2695_v3  ;;  %v5185_v40 = vcombine.low %v2691_v29, %v2695_v3  ;;  %v2719_v8 = vld [vmem:[#allocation11 + $0x378] sm:$0xff] }
 0xe2a   :  { %v2723_v29 = vld [vmem:[#allocation11 + $0x398] sm:$0xff] }
 0xe2b   :  { %3534 = vmatpush1.bf16.msra.mxu1 %v5143_v46  ;;  %3587 = vmatpush1.bf16.msra.mxu0 %v5145_v60  ;;  %v2702_v46 = vld [vmem:[#allocation11 + $0x2f0] sm:$0xff]  ;;  %v2699_v60 = vld [vmem:[#allocation11 + $0x2d8] sm:$0xff] }
 0xe2c   :  { %3535 = vmatprep.subr.bf16.mxu1 %v5152_v6  ;;  %3588 = vmatprep.subr.bf16.mxu0 %v5154_v44  ;;  %v2703_v6 = vld [vmem:[#allocation11 + $0x2f8] sm:$0xff]  ;;  %v5183_v44 = vcombine.low %v2690_v9, %v2694_v17  ;;  %v5192_v20 = vcombine.high %v2698_v35, %v2702_v46  ;;  %v5191_v7 = vcombine.low %v2698_v35, %v2702_v46  ;;  %v2722_v9 = vld [vmem:[#allocation11 + $0x390] sm:$0xff] }
 0xe2d   :  { %v5194_v45 = vcombine.high %v2699_v60, %v2703_v6  ;;  %v5193_v21 = vcombine.low %v2699_v60, %v2703_v6 }
 0xe2e   :  { %v2542_v25 = vpop.xlane.xlu0 %2541 }
 0xe2f   :  { %3536 = vmatpush1.bf16.msra.mxu1 %v5151_v19  ;;  %3589 = vmatpush1.bf16.msra.mxu0 %v5153_v1  ;;  %v2548_v42 = vmul.f32 0.00390625, %v2542_v25  ;;  %v2710_v1 = vld [vmem:[#allocation11 + $0x330] sm:$0xff] }
 0xe30   :  { %3537 = vmatprep.subr.bf16.mxu1 %v5160_v43  ;;  %3590 = vmatprep.subr.bf16.mxu0 %v5162_v62  ;;  %v2707_v43 = vld [vmem:[#allocation11 + $0x318] sm:$0xff]  ;;  %v5200_v25 = vcombine.high %v2706_v31, %v2710_v1  ;;  %v5199_v52 = vcombine.low %v2706_v31, %v2710_v1  ;;  %v5767_v31 = vld [vmem:[#allocation13] ss:$8 sps:$4 sm:$0xff]   ;;  %v5775_v1 = vld [vmem:[#allocation13 + $0x24] ss:$8 sps:$4 sm:$0xff]  }
 0xe31   :  { %v2552_v51 = vadd.f32 1e-05, %v2548_v42  ;;  %v2711_v62 = vld [vmem:[#allocation11 + $0x338] sm:$0xff] }
 0xe32   :  { %v2545_v61 = vpop.xlane.xlu0 %2544  ;;  %v5202_v42 = vcombine.high %v2707_v43, %v2711_v62  ;;  %v5201_v58 = vcombine.low %v2707_v43, %v2711_v62  ;;  %v5773_v43 = vld [vmem:[#allocation13 + $0x20] ss:$8 sps:$4 sm:$0xff]   ;;  %v5778_v62 = vld [vmem:[#allocation13 + $0x34] ss:$8 sps:$4 sm:$0xff]  }
 0xe33   :  { %6027 = vrsqrt.f32 %v2552_v51  ;;  %3538 = vmatpush1.bf16.msra.mxu1 %v5159_v54  ;;  %3591 = vmatpush1.bf16.msra.mxu0 %v5161_v10  ;;  %v2549_v38 = vmul.f32 0.00390625, %v2545_v61  ;;  %v2714_v54 = vld [vmem:[#allocation11 + $0x350] sm:$0xff] }
 0xe34   :  { %3539 = vmatprep.subr.bf16.mxu1 %v5168_v13  ;;  %3592 = vmatprep.subr.bf16.mxu0 %v5170_v53  ;;  %v2718_v10 = vld [vmem:[#allocation11 + $0x370] sm:$0xff]  ;;  %v2715_v53 = vld [vmem:[#allocation11 + $0x358] sm:$0xff] }
 0xe35   :  { %v2553_v50 = vadd.f32 1e-05, %v2549_v38  ;;  %v5208_v61 = vcombine.high %v2714_v54, %v2718_v10  ;;  %v5210_v38 = vcombine.high %v2715_v53, %v2719_v8  ;;  %v5209_v17 = vcombine.low %v2715_v53, %v2719_v8  ;;  %v5791_v53 = vld [vmem:[#allocation13 + $0x80] ss:$8 sps:$4 sm:$0xff]   ;;  %v5796_v8 = vld [vmem:[#allocation13 + $0x94] ss:$8 sps:$4 sm:$0xff]  }
 0xe37   :  { %6029 = vrsqrt.f32 %v2553_v50  ;;  %3540 = vmatpush1.bf16.msra.mxu1 %v5167_v63  ;;  %3593 = vmatpush1.bf16.msra.mxu0 %v5169_v5  ;;  %v5207_v50 = vcombine.low %v2714_v54, %v2718_v10  ;;  %v5790_v54 = vld [vmem:[#allocation13 + $0x74] ss:$8 sps:$4 sm:$0xff]   ;;  %v5788_v10 = vld [vmem:[#allocation13 + $0x70] ss:$8 sps:$4 sm:$0xff]  }
 0xe38   :  { %3541 = vmatprep.subr.bf16.mxu1 %v5176_v26  ;;  %3594 = vmatprep.subr.bf16.mxu0 %v5178_v28 }
 0xe3b   :  { %3542 = vmatpush1.bf16.msra.mxu1 %v5175_v39  ;;  %3595 = vmatpush1.bf16.msra.mxu0 %v5177_v18  ;;  %v2730_v39 = vld [vmem:[#allocation11 + $0x3d0] sm:$0xff] }
 0xe3c   :  { %3543 = vmatprep.subr.bf16.mxu1 %v5184_v0  ;;  %3596 = vmatprep.subr.bf16.mxu0 %v5186_v37  ;;  %v2734_v18 = vld [vmem:[#allocation11 + $0x3f0] sm:$0xff]  ;;  %v2735_v0 = vld [vmem:[#allocation11 + $0x3f8] sm:$0xff] }
 0xe3d   :  { %v6028_v19 = vpop.eup %6027  ;;  %v5224_v6 = vcombine.high %v2730_v39, %v2734_v18 }
 0xe3e   :  { %v2562_v27 = vmul.f32 %v6028_v19, %v6872_v57  ;;  %v2563_v2 = vmul.f32 %v6028_v19, %v6875_v4  ;;  %v5772_v19 = vld [vmem:[#allocation13 + $0x14] ss:$8 sps:$4 sm:$0xff]  }
 0xe3f   :  { %3544 = vmatpush1.bf16.msra.mxu1 %v5183_v44  ;;  %3597 = vmatpush1.bf16.msra.mxu0 %v5185_v40  ;;  %v5223_v40 = vcombine.low %v2730_v39, %v2734_v18 }
 0xe40   :  { %3545 = vmatprep.subr.bf16.mxu1 %v5192_v20  ;;  %3598 = vmatprep.subr.bf16.mxu0 %v5194_v45  ;;  %v2582_v57 = vmul.f32 %v6894_v32, %v2563_v2  ;;  %v2581_v4 = vmul.f32 %v6897_v33, %v2562_v27  ;;  %v5769_v45 = vld [vmem:[#allocation13 + $0x4] ss:$8 sps:$4 sm:$0xff]   ;;  %v5776_v27 = vld [vmem:[#allocation13 + $0x30] ss:$8 sps:$4 sm:$0xff]  }
 0xe41   :  { %v6030_v13 = vpop.eup %6029  ;;  %v5781_v2 = vld [vmem:[#allocation13 + $0x44] ss:$8 sps:$4 sm:$0xff]  }
 0xe42   :  { %v2564_v51 = vmul.f32 %v6030_v13, %v6878_v15  ;;  %v2565_v49 = vmul.f32 %v6030_v13, %v6881_v16  ;;  %v6950_v15 = vadd.f32 %v6900_v30, %v2582_v57  ;;  %v6956_v26 = vadd.f32 %v6903_v34, %v2581_v4  ;;  %v5793_v13 = vld [vmem:[#allocation13 + $0x84] ss:$8 sps:$4 sm:$0xff]   ;;  %v5797_v57 = vld [vmem:[#allocation13 + $0xa0] ss:$8 sps:$4 sm:$0xff]   ;;  %v5802_v4 = vld [vmem:[#allocation13 + $0xb4] ss:$8 sps:$4 sm:$0xff]  }
 0xe43   :  { %3546 = vmatpush1.bf16.msra.mxu1 %v5191_v7  ;;  %3599 = vmatpush1.bf16.msra.mxu0 %v5193_v21  ;;  %v5779_v7 = vld [vmem:[#allocation13 + $0x40] ss:$8 sps:$4 sm:$0xff]   ;;  %v5782_v21 = vld [vmem:[#allocation13 + $0x50] ss:$8 sps:$4 sm:$0xff]  }
 0xe44   :  { %3547 = vmatprep.subr.bf16.mxu1 %v5200_v25  ;;  %3600 = vmatprep.subr.bf16.mxu0 %v5202_v42  ;;  %v2584_v63 = vmul.f32 %v6894_v32, %v2565_v49  ;;  %v2583_v5 = vmul.f32 %v6897_v33, %v2564_v51  ;;  %v2726_v32 = vld [vmem:[#allocation11 + $0x3b0] sm:$0xff]  ;;  %v2727_v33 = vld [vmem:[#allocation11 + $0x3b8] sm:$0xff]  ;;  %v5787_v25 = vld [vmem:[#allocation13 + $0x64] ss:$8 sps:$4 sm:$0xff]  }
 0xe45   :  { %v5216_v37 = vcombine.high %v2722_v9, %v2726_v32  ;;  %v5218_v35 = vcombine.high %v2723_v29, %v2727_v33  ;;  %v5215_v46 = vcombine.low %v2722_v9, %v2726_v32  ;;  %v5217_v60 = vcombine.low %v2723_v29, %v2727_v33  ;;  %v5785_v42 = vld [vmem:[#allocation13 + $0x60] ss:$8 sps:$4 sm:$0xff]   ;;  %v5794_v51 = vld [vmem:[#allocation13 + $0x90] ss:$8 sps:$4 sm:$0xff]   ;;  %v5799_v49 = vld [vmem:[#allocation13 + $0xa4] ss:$8 sps:$4 sm:$0xff]  }
 0xe46   :  { %v6953_v16 = vadd.f32 %v6900_v30, %v2584_v63  ;;  %v6959_v28 = vadd.f32 %v6903_v34, %v2583_v5  ;;  %v2731_v34 = vld [vmem:[#allocation11 + $0x3d8] sm:$0xff]  ;;  %v5811_v5 = vld [vmem:[#allocation13 + $0xe4] ss:$8 sps:$4 sm:$0xff]   ;;  %v5809_v9 = vld [vmem:[#allocation13 + $0xe0] ss:$8 sps:$4 sm:$0xff]  }
 0xe47   :  { %3548 = vmatpush1.bf16.msra.mxu1 %v5199_v52  ;;  %3601 = vmatpush1.bf16.msra.mxu0 %v5201_v58  ;;  %v5226_v44 = vcombine.high %v2731_v34, %v2735_v0  ;;  %v5225_v20 = vcombine.low %v2731_v34, %v2735_v0  ;;  %v5800_v52 = vld [vmem:[#allocation13 + $0xb0] ss:$8 sps:$4 sm:$0xff]   ;;  %v5805_v58 = vld [vmem:[#allocation13 + $0xc4] ss:$8 sps:$4 sm:$0xff]  }
 0xe48   :  { %7249 = vst [vmem:[#allocation23_spill] sm:$0xff] %v6953_v16  ;;  %3549 = vmatprep.subr.bf16.mxu1 %v5208_v61  ;;  %3602 = vmatprep.subr.bf16.mxu0 %v5210_v38  ;;  %v2607_v30 = vpack.c.bf16 %v6953_v16, %v6950_v15  ;;  %v2606_v3 = vpack.c.bf16 %v6959_v28, %v6956_v26  ;;  %v5803_v61 = vld [vmem:[#allocation13 + $0xc0] ss:$8 sps:$4 sm:$0xff]   ;;  %v5808_v38 = vld [vmem:[#allocation13 + $0xd4] ss:$8 sps:$4 sm:$0xff]  }
 0xe49   :  { %v5806_v63 = vld [vmem:[#allocation13 + $0xd0] ss:$8 sps:$4 sm:$0xff]   ;;  %v5817_v32 = vld [vmem:[#allocation13 + $0x104] ss:$8 sps:$4 sm:$0xff]  }
 0xe4a   :  { %3459 = vmatprep.mubr.bf16.mxu1 %v2607_v30  ;;  %3512 = vmatprep.mubr.bf16.mxu0 %v2607_v30  ;;  %v148_v29 = vld [vmem:[#allocation14 + $0x4] ss:$8 sm:$0xf] }
 0xe4b   :  { %3550 = vmatpush1.bf16.msra.mxu1 %v5207_v50  ;;  %3603 = vmatpush1.bf16.msra.mxu0 %v5209_v17  ;;  %v5814_v50 = vld [vmem:[#allocation13 + $0xf4] ss:$8 sps:$4 sm:$0xff]   ;;  %v5812_v17 = vld [vmem:[#allocation13 + $0xf0] ss:$8 sps:$4 sm:$0xff]  }
 0xe4c   :  { %3460 = vmatmul.mubr.bf16.gmra.mrb[44].mxu1 %v2606_v3  ;;  %3513 = vmatmul.mubr.bf16.gmra.mrb[68].mxu0 %v2606_v3  ;;  %v149_v33 = vld [vmem:[#allocation14 + $0x4] ss:$8 sm:$0xf0] }
 0xe4d   :  { %3555 = vmatprep.mubr.bf16.mxu1 %v6925_v12  ;;  %3608 = vmatprep.mubr.bf16.mxu0 %v6925_v12  ;;  %v5770_v12 = vld [vmem:[#allocation13 + $0x10] ss:$8 sps:$4 sm:$0xff]  }
 0xe4e   :  { %3551 = vmatprep.subr.bf16.mxu1 %v5216_v37  ;;  %3604 = vmatprep.subr.bf16.mxu0 %v5218_v35 }
 0xe4f   :  { %3552 = vmatpush1.bf16.msra.mxu1 %v5215_v46  ;;  %3605 = vmatpush1.bf16.msra.mxu0 %v5217_v60 }
 0xe50   :  { %3553 = vmatprep.subr.bf16.mxu1 %v5224_v6  ;;  %3606 = vmatprep.subr.bf16.mxu0 %v5226_v44 }
 0xe53   :  { %3554 = vmatpush1.bf16.msra.mxu1 %v5223_v40  ;;  %3607 = vmatpush1.bf16.msra.mxu0 %v5225_v20 }
 0xe54   :  { %4584 = vmatprep.subr.bf16.mxu1 %v5769_v45 }
 0xe56   :  { %3556 = vmatmul.mubr.bf16.vlgmr.msra.gmra.mrb[48].mxu1 %v6929_v55  ;;  %3609 = vmatmul.mubr.bf16.vlgmr.msra.gmra.mrb[72].mxu0 %v6929_v55  ;;  %v5784_v55 = vld [vmem:[#allocation13 + $0x54] ss:$8 sps:$4 sm:$0xff]  }
 0xe57   :  { %3565 = vmatprep.mubr.bf16.mxu1 %v2607_v30  ;;  %3618 = vmatprep.mubr.bf16.mxu0 %v2607_v30  ;;  %v6969_v30 = vor.u32 %v149_v33, %v148_v29 }
 0xe58   :  { %4585 = vmatpush1.bf16.msra.mxu1 %v5767_v31 }
 0xe59   :  { %4586 = vmatprep.subr.bf16.mxu1 %v5772_v19  ;;  %v6978_v39 = vrot.slane %v6969_v30, %v398_v47  ;;  %v6982_v18 = vrot.slane %v6969_v30, %v6552_v24  ;;  %v6987_v34 = vrot.slane %v6969_v30, %v402_v48 }
 0xe5c   :  { %4587 = vmatpush1.bf16.msra.mxu1 %v5770_v12 }
 0xe5d   :  { %4588 = vmatprep.subr.bf16.mxu1 %v5775_v1 }
 0xe5e   :  { %3566 = vmatmul.mubr.bf16.gmra.mrb[52].mxu1 %v2606_v3  ;;  %3619 = vmatmul.mubr.bf16.gmra.mrb[76].mxu0 %v2606_v3  ;;  %v6973_v3 = vrot.slane %v6969_v30, %v6549_v11 }
 0xe60   :  { %4589 = vmatpush1.bf16.msra.mxu1 %v5773_v43 }
 0xe61   :  { %4590 = vmatprep.subr.bf16.mxu1 %v5778_v62 }
 0xe64   :  { %4591 = vmatpush1.bf16.msra.mxu1 %v5776_v27 }
 0xe65   :  { %4592 = vmatprep.subr.bf16.mxu1 %v5781_v2 }
 0xe68   :  { %4593 = vmatpush1.bf16.msra.mxu1 %v5779_v7 }
 0xe69   :  { %4594 = vmatprep.subr.bf16.mxu1 %v5784_v55 }
 0xe6c   :  { %4595 = vmatpush1.bf16.msra.mxu1 %v5782_v21 }
 0xe6d   :  { %4596 = vmatprep.subr.bf16.mxu1 %v5787_v25 }
 0xe70   :  { %4597 = vmatpush1.bf16.msra.mxu1 %v5785_v42 }
 0xe71   :  { %4598 = vmatprep.subr.bf16.mxu1 %v5790_v54 }
 0xe74   :  { %4599 = vmatpush1.bf16.msra.mxu1 %v5788_v10 }
 0xe75   :  { %4600 = vmatprep.subr.bf16.mxu1 %v5793_v13 }
 0xe78   :  { %4601 = vmatpush1.bf16.msra.mxu1 %v5791_v53 }
 0xe79   :  { %4602 = vmatprep.subr.bf16.mxu1 %v5796_v8 }
 0xe7c   :  { %4603 = vmatpush1.bf16.msra.mxu1 %v5794_v51 }
 0xe7d   :  { %4604 = vmatprep.subr.bf16.mxu1 %v5799_v49 }
 0xe80   :  { %4605 = vmatpush1.bf16.msra.mxu1 %v5797_v57 }
 0xe81   :  { %4606 = vmatprep.subr.bf16.mxu1 %v5802_v4 }
 0xe84   :  { %4607 = vmatpush1.bf16.msra.mxu1 %v5800_v52 }
 0xe85   :  { %4608 = vmatprep.subr.bf16.mxu1 %v5805_v58 }
 0xe88   :  { %4609 = vmatpush1.bf16.msra.mxu1 %v5803_v61 }
 0xe89   :  { %4610 = vmatprep.subr.bf16.mxu1 %v5808_v38 }
 0xe8c   :  { %4611 = vmatpush1.bf16.msra.mxu1 %v5806_v63 }
 0xe8d   :  { %4612 = vmatprep.subr.bf16.mxu1 %v5811_v5 }
 0xe90   :  { %4613 = vmatpush1.bf16.msra.mxu1 %v5809_v9 }
 0xe91   :  { %4614 = vmatprep.subr.bf16.mxu1 %v5814_v50 }
 0xe94   :  { %4615 = vmatpush1.bf16.msra.mxu1 %v5812_v17 }
 0xe95   :  { %4637 = vmatprep.subr.bf16.mxu1 %v5817_v32 }
 0xee9   :  { %v3451_v0 = vpop.f32.mrb[40].mxu1  ;;  %v3504_v37 = vpop.f32.mrb[64].mxu0 }
 0xeea   :  { %v3452_v35 = vadd.f32 %v3451_v0, %v6973_v3  ;;  %v3505_v46 = vadd.f32 %v3504_v37, %v6978_v39  ;;  %v3453_v60 = vpop.f32.mrb[41].mxu1  ;;  %v3506_v6 = vpop.f32.mrb[65].mxu0 }
 0xeeb   :  { %v3454_v47 = vadd.f32 %v3453_v60, %v6982_v18  ;;  %v3507_v44 = vadd.f32 %v3506_v6, %v6987_v34  ;;  %v3455_v40 = vpop.f32.mrb[42].mxu1  ;;  %v3508_v20 = vpop.f32.mrb[66].mxu0 }
 0xeec   :  { %v3661_v45 = vmul.f32 0.70710677, %v3452_v35  ;;  %v3663_v31 = vmul.f32 0.70710677, %v3505_v46  ;;  %v3456_v48 = vadd.f32 %v3455_v40, %v6973_v3  ;;  %v3509_v1 = vadd.f32 %v3508_v20, %v6978_v39  ;;  %v3457_v43 = vpop.f32.mrb[43].mxu1  ;;  %v3510_v62 = vpop.f32.mrb[67].mxu0 }
 0xeed   :  { %v3662_v19 = vmul.f32 0.70710677, %v3454_v47  ;;  %v3664_v12 = vmul.f32 0.70710677, %v3507_v44  ;;  %v3458_v27 = vadd.f32 %v3457_v43, %v6982_v18  ;;  %v3511_v2 = vadd.f32 %v3510_v62, %v6987_v34  ;;  %v5818_v43 = vld [vmem:[#allocation13 + $0x110] ss:$8 sps:$4 sm:$0xff]  }
 0xeee   :  { %6031 = verf.f32 %v3661_v45  ;;  %v3669_v7 = vmul.f32 0.70710677, %v3456_v48  ;;  %v3671_v55 = vmul.f32 0.70710677, %v3509_v1  ;;  %v3629_v51 = vmul.f32 0.5, %v3452_v35 }
 0xeef   :  { %6033 = verf.f32 %v3663_v31  ;;  %v3670_v21 = vmul.f32 0.70710677, %v3458_v27  ;;  %v3672_v25 = vmul.f32 0.70710677, %v3511_v2  ;;  %v3631_v49 = vmul.f32 0.5, %v3505_v46 }
 0xef0   :  { %6035 = verf.f32 %v3662_v19  ;;  %v3630_v52 = vmul.f32 0.5, %v3454_v47  ;;  %v3637_v61 = vmul.f32 0.5, %v3456_v48  ;;  %v3632_v5 = vmul.f32 0.5, %v3507_v44  ;;  %v5820_v48 = vld [vmem:[#allocation13 + $0x114] ss:$8 sps:$4 sm:$0xff]  }
 0xef1   :  { %6037 = verf.f32 %v3664_v12  ;;  %v3639_v50 = vmul.f32 0.5, %v3509_v1  ;;  %v3638_v0 = vmul.f32 0.5, %v3458_v27  ;;  %v3640_v46 = vmul.f32 0.5, %v3511_v2  ;;  %v5815_v12 = vld [vmem:[#allocation13 + $0x100] ss:$8 sps:$4 sm:$0xff]  }
 0xef2   :  { %6039 = verf.f32 %v3669_v7  ;;  %v5823_v62 = vld [vmem:[#allocation13 + $0x124] ss:$8 sps:$4 sm:$0xff]   ;;  %v5821_v27 = vld [vmem:[#allocation13 + $0x120] ss:$8 sps:$4 sm:$0xff]   ;;  %v5826_v2 = vld [vmem:[#allocation13 + $0x134] ss:$8 sps:$4 sm:$0xff]  }
 0xef3   :  { %6041 = verf.f32 %v3671_v55  ;;  %v5824_v7 = vld [vmem:[#allocation13 + $0x130] ss:$8 sps:$4 sm:$0xff]   ;;  %v5829_v55 = vld [vmem:[#allocation13 + $0x144] ss:$8 sps:$4 sm:$0xff]  }
 0xef4   :  { %6043 = verf.f32 %v3670_v21  ;;  %v5827_v21 = vld [vmem:[#allocation13 + $0x140] ss:$8 sps:$4 sm:$0xff]  }
 0xef5   :  { %6045 = verf.f32 %v3672_v25  ;;  %v5832_v25 = vld [vmem:[#allocation13 + $0x154] ss:$8 sps:$4 sm:$0xff]  }
 0xef8   :  { %v6032_v42 = vpop.eup %6031 }
 0xef9   :  { %v6034_v54 = vpop.eup %6033  ;;  %v3725_v53 = vadd.f32 1.0, %v6032_v42  ;;  %v5830_v42 = vld [vmem:[#allocation13 + $0x150] ss:$8 sps:$4 sm:$0xff]  }
 0xefa   :  { %v6036_v10 = vpop.eup %6035  ;;  %v3727_v57 = vadd.f32 1.0, %v6034_v54  ;;  %v5835_v54 = vld [vmem:[#allocation13 + $0x164] ss:$8 sps:$4 sm:$0xff]  }
 0xefb   :  { %v6038_v13 = vpop.eup %6037  ;;  %v3726_v58 = vadd.f32 1.0, %v6036_v10  ;;  %v3757_v29 = vmul.f32 %v3725_v53, %v3629_v51  ;;  %v5833_v10 = vld [vmem:[#allocation13 + $0x160] ss:$8 sps:$4 sm:$0xff]   ;;  %v5836_v51 = vld [vmem:[#allocation13 + $0x170] ss:$8 sps:$4 sm:$0xff]  }
 0xefc   :  { %v6040_v8 = vpop.eup %6039  ;;  %v3728_v9 = vadd.f32 1.0, %v6038_v13  ;;  %v6997_v60 = vmul.f32 %v3727_v57, %v3631_v49  ;;  %v5838_v13 = vld [vmem:[#allocation13 + $0x174] ss:$8 sps:$4 sm:$0xff]  }
 0xefd   :  { %v6042_v4 = vpop.eup %6041  ;;  %v3733_v38 = vadd.f32 1.0, %v6040_v8  ;;  %v3758_v47 = vmul.f32 %v3726_v58, %v3630_v52  ;;  %v5841_v58 = vld [vmem:[#allocation13 + $0x184] ss:$8 sps:$4 sm:$0xff]  }
 0xefe   :  { %v6044_v63 = vpop.eup %6043  ;;  %v3735_v17 = vadd.f32 1.0, %v6042_v4  ;;  %v7001_v45 = vmul.f32 %v3728_v9, %v3632_v5  ;;  %v5839_v9 = vld [vmem:[#allocation13 + $0x180] ss:$8 sps:$4 sm:$0xff]  }
 0xeff   :  { %v6046_v32 = vpop.eup %6045  ;;  %v3765_v33 = vmul.f32 %v3733_v38, %v3637_v61  ;;  %v3734_v37 = vadd.f32 1.0, %v6044_v63 }
 0xf00   :  { %v6999_v35 = vmul.f32 %v3735_v17, %v3639_v50  ;;  %v3736_v6 = vadd.f32 1.0, %v6046_v32  ;;  %v2763_v32 = vsub.s32 6, %v6544_v22 }
 0xf01   :  { %v3789_v40 = vpack.c.bf16 %v3765_v33, %v3757_v29  ;;  %v3766_v20 = vmul.f32 %v3734_v37, %v3638_v0  ;;  %v2767_v0 = vsub.s32 7, %v6544_v22 }
 0xf02   :  { %v7005_v31 = vmul.f32 %v3736_v6, %v3640_v46 }
 0xf03   :  { %v3790_v19 = vpack.c.bf16 %v3766_v20, %v3758_v47 }
 0xf05   :  { %4616 = vmatprep.mubr.bf16.mxu1 %v3790_v19 }
 0xf06   :  { %4617 = vmatmul.mubr.bf16.vlgmr.msra.gmra.mrb[56].mxu1 %v3789_v40  ;;  %v5844_v40 = vld [vmem:[#allocation13 + $0x194] ss:$8 sps:$4 sm:$0xff]  }
 0xf07   :  { %4638 = vmatpush1.bf16.msra.mxu1 %v5815_v12  ;;  %v7022_v12 = vrot.slane %v6969_v30, %v406_v59 }
 0xf08   :  { %4639 = vmatprep.subr.bf16.mxu1 %v5820_v48 }
 0xf0b   :  { %4640 = vmatpush1.bf16.msra.mxu1 %v5818_v43 }
 0xf0c   :  { %4641 = vmatprep.subr.bf16.mxu1 %v5823_v62  ;;  %v7033_v62 = vrot.slane %v6969_v30, %v2767_v0 }
 0xf0f   :  { %4642 = vmatpush1.bf16.msra.mxu1 %v5821_v27  ;;  %v5847_v27 = vld [vmem:[#allocation13 + $0x1a4] ss:$8 sps:$4 sm:$0xff]  }
 0xf10   :  { %4643 = vmatprep.subr.bf16.mxu1 %v5826_v2 }
 0xf13   :  { %4644 = vmatpush1.bf16.msra.mxu1 %v5824_v7 }
 0xf14   :  { %4645 = vmatprep.subr.bf16.mxu1 %v5829_v55 }
 0xf17   :  { %4646 = vmatpush1.bf16.msra.mxu1 %v5827_v21 }
 0xf18   :  { %4647 = vmatprep.subr.bf16.mxu1 %v5832_v25 }
 0xf1b   :  { %4648 = vmatpush1.bf16.msra.mxu1 %v5830_v42 }
 0xf1c   :  { %4649 = vmatprep.subr.bf16.mxu1 %v5835_v54 }
 0xf1f   :  { %4650 = vmatpush1.bf16.msra.mxu1 %v5833_v10  ;;  %v3461_v53 = vpop.f32.mrb[44].mxu1  ;;  %v3514_v8 = vpop.f32.mrb[68].mxu0  ;;  %v5845_v10 = vld [vmem:[#allocation13 + $0x1a0] ss:$8 sps:$4 sm:$0xff]  }
 0xf20   :  { %v3462_v49 = vadd.f32 %v3461_v53, %v6973_v3  ;;  %v3515_v57 = vadd.f32 %v3514_v8, %v6978_v39  ;;  %4651 = vmatprep.subr.bf16.mxu1 %v5838_v13  ;;  %v3463_v4 = vpop.f32.mrb[45].mxu1  ;;  %v3516_v52 = vpop.f32.mrb[69].mxu0  ;;  %v5850_v13 = vld [vmem:[#allocation13 + $0x1b4] ss:$8 sps:$4 sm:$0xff]  }
 0xf21   :  { %v3464_v61 = vadd.f32 %v3463_v4, %v6982_v18  ;;  %v3517_v38 = vadd.f32 %v3516_v52, %v6987_v34  ;;  %v3465_v63 = vpop.f32.mrb[46].mxu1  ;;  %v3518_v5 = vpop.f32.mrb[70].mxu0 }
 0xf22   :  { %v3677_v50 = vmul.f32 0.70710677, %v3462_v49  ;;  %v3679_v17 = vmul.f32 0.70710677, %v3515_v57  ;;  %v3466_v37 = vadd.f32 %v3465_v63, %v6973_v3  ;;  %v3519_v46 = vadd.f32 %v3518_v5, %v6978_v39  ;;  %v3467_v6 = vpop.f32.mrb[47].mxu1  ;;  %v3520_v47 = vpop.f32.mrb[71].mxu0 }
 0xf23   :  { %v3678_v29 = vmul.f32 0.70710677, %v3464_v61  ;;  %v3680_v33 = vmul.f32 0.70710677, %v3517_v38  ;;  %4652 = vmatpush1.bf16.msra.mxu1 %v5836_v51  ;;  %v3468_v20 = vadd.f32 %v3467_v6, %v6982_v18  ;;  %v3521_v19 = vadd.f32 %v3520_v47, %v6987_v34  ;;  %v5842_v34 = vld [vmem:[#allocation13 + $0x190] ss:$8 sps:$4 sm:$0xff]  }
 0xf24   :  { %6047 = verf.f32 %v3677_v50  ;;  %4653 = vmatprep.subr.bf16.mxu1 %v5841_v58  ;;  %v3685_v48 = vmul.f32 0.70710677, %v3466_v37  ;;  %v7025_v3 = vrot.slane %v6969_v30, %v2763_v32  ;;  %v7030_v39 = vrot.slane %v6969_v30, %v410_v23 }
 0xf25   :  { %6049 = verf.f32 %v3679_v17  ;;  %v3687_v43 = vmul.f32 0.70710677, %v3519_v46  ;;  %v3686_v18 = vmul.f32 0.70710677, %v3468_v20  ;;  %v3688_v59 = vmul.f32 0.70710677, %v3521_v19 }
 0xf26   :  { %6051 = verf.f32 %v3678_v29  ;;  %v3645_v53 = vmul.f32 0.5, %v3462_v49  ;;  %v7039_v4 = vmul.f32 0.5, %v3515_v57  ;;  %v7041_v52 = vmul.f32 0.5, %v3464_v61  ;;  %v5848_v61 = vld [vmem:[#allocation13 + $0x1b0] ss:$8 sps:$4 sm:$0xff]  }
 0xf27   :  { %6053 = verf.f32 %v3680_v33  ;;  %4654 = vmatpush1.bf16.msra.mxu1 %v5839_v9  ;;  %v7043_v9 = vmul.f32 0.5, %v3517_v38  ;;  %v7047_v33 = vmul.f32 0.5, %v3466_v37  ;;  %v7049_v0 = vmul.f32 0.5, %v3519_v46 }
 0xf28   :  { %6055 = verf.f32 %v3685_v48  ;;  %4655 = vmatprep.subr.bf16.mxu1 %v5844_v40  ;;  %v7054_v47 = vmul.f32 0.5, %v3468_v20  ;;  %v5853_v48 = vld [vmem:[#allocation13 + $0x1c4] ss:$8 sps:$4 sm:$0xff]  }
 0xf29   :  { %6057 = verf.f32 %v3687_v43  ;;  %v3557_v2 = vpop.f32.mrb[48].mxu1  ;;  %v3610_v7 = vpop.f32.mrb[72].mxu0 }
 0xf2a   :  { %6059 = verf.f32 %v3686_v18  ;;  %v3558_v22 = vadd.f32 %v3557_v2, %v7022_v12  ;;  %v3611_v23 = vadd.f32 %v3610_v7, %v7025_v3  ;;  %v3559_v55 = vpop.f32.mrb[49].mxu1  ;;  %v3612_v21 = vpop.f32.mrb[73].mxu0  ;;  %v7056_v18 = vmul.f32 0.5, %v3521_v19 }
 0xf2b   :  { %6061 = verf.f32 %v3688_v59  ;;  %4656 = vmatpush1.bf16.msra.mxu1 %v5842_v34  ;;  %v3560_v25 = vadd.f32 %v3559_v55, %v7030_v39  ;;  %v3613_v30 = vadd.f32 %v3612_v21, %v7033_v62  ;;  %v3561_v42 = vpop.f32.mrb[50].mxu1  ;;  %v3614_v54 = vpop.f32.mrb[74].mxu0 }
 0xf2c   :  { %v3665_v8 = vmul.f32 0.70710677, %v3558_v22  ;;  %v3667_v51 = vmul.f32 0.70710677, %v3611_v23  ;;  %4657 = vmatprep.subr.bf16.mxu1 %v5847_v27  ;;  %v3562_v50 = vadd.f32 %v3561_v42, %v7022_v12  ;;  %v3615_v17 = vadd.f32 %v3614_v54, %v7025_v3  ;;  %v3563_v32 = vpop.f32.mrb[51].mxu1  ;;  %v3616_v29 = vpop.f32.mrb[75].mxu0 }
 0xf2d   :  { %v3666_v58 = vmul.f32 0.70710677, %v3560_v25  ;;  %v3668_v63 = vmul.f32 0.70710677, %v3613_v30  ;;  %v7052_v57 = vadd.f32 %v3563_v32, %v7030_v39  ;;  %v7058_v37 = vmul.f32 0.5, %v3558_v22 }
 0xf2e   :  { %v6048_v5 = vpop.eup %6047  ;;  %6063 = verf.f32 %v3665_v8  ;;  %v3673_v40 = vmul.f32 0.70710677, %v3562_v50  ;;  %v3617_v46 = vadd.f32 %v3616_v29, %v7033_v62  ;;  %v5851_v27 = vld [vmem:[#allocation13 + $0x1c0] ss:$8 sps:$4 sm:$0xff]   ;;  %v7061_v7 = vmul.f32 0.5, %v3611_v23 }
 0xf2f   :  { %v6050_v49 = vpop.eup %6049  ;;  %6065 = verf.f32 %v3667_v51  ;;  %4658 = vmatpush1.bf16.msra.mxu1 %v5845_v10  ;;  %v3741_v6 = vadd.f32 1.0, %v6048_v5  ;;  %v7063_v20 = vmul.f32 0.5, %v3560_v25  ;;  %v3675_v55 = vmul.f32 0.70710677, %v3615_v17  ;;  %v5856_v32 = vld [vmem:[#allocation13 + $0x1d4] ss:$8 sps:$4 sm:$0xff]  }
 0xf30   :  { %v6052_v38 = vpop.eup %6051  ;;  %6067 = verf.f32 %v3666_v58  ;;  %4659 = vmatprep.subr.bf16.mxu1 %v5850_v13  ;;  %v3743_v19 = vadd.f32 1.0, %v6050_v49  ;;  %v7065_v10 = vmul.f32 0.5, %v3613_v30  ;;  %v3674_v22 = vmul.f32 0.70710677, %v7052_v57 }
 0xf31   :  { %v6054_v43 = vpop.eup %6053  ;;  %6069 = verf.f32 %v3668_v63  ;;  %v3567_v34 = vpop.f32.mrb[52].mxu1  ;;  %v7068_v58 = vmul.f32 %v3741_v6, %v3645_v53  ;;  %v3742_v23 = vadd.f32 1.0, %v6052_v38  ;;  %v3641_v63 = vmul.f32 0.5, %v3562_v50 }
 0xf32   :  { %v3620_v59 = vpop.f32.mrb[76].mxu0  ;;  %v6056_v2 = vpop.eup %6055  ;;  %6071 = verf.f32 %v3673_v40  ;;  %v3744_v40 = vadd.f32 1.0, %v6054_v43  ;;  %v7070_v49 = vmul.f32 0.5, %v3615_v17  ;;  %v3676_v30 = vmul.f32 0.70710677, %v3617_v46 }
 0xf33   :  { %v3569_v21 = vpop.f32.mrb[53].mxu1  ;;  %v3622_v42 = vpop.f32.mrb[77].mxu0  ;;  %4660 = vmatpush1.bf16.msra.mxu1 %v5848_v61  ;;  %6073 = verf.f32 %v3675_v55  ;;  %v3749_v44 = vadd.f32 1.0, %v6056_v2  ;;  %v7073_v1 = vadd.f32 %v3567_v34, %v7022_v12  ;;  %v7076_v53 = vadd.f32 %v3620_v59, %v7025_v3  ;;  %v5854_v17 = vld [vmem:[#allocation13 + $0x1d0] ss:$8 sps:$4 sm:$0xff]  }
 0xf34   :  { %v6058_v54 = vpop.eup %6057  ;;  %v3571_v13 = vpop.f32.mrb[54].mxu1  ;;  %4661 = vmatprep.subr.bf16.mxu1 %v5853_v48  ;;  %6075 = verf.f32 %v3674_v22  ;;  %v7079_v38 = vadd.f32 %v3569_v21, %v7030_v39  ;;  %v7082_v6 = vadd.f32 %v3622_v42, %v7033_v62  ;;  %v7085_v43 = vmul.f32 %v3743_v19, %v7039_v4  ;;  %v5859_v55 = vld [vmem:[#allocation13 + $0x1e4] ss:$8 sps:$4 sm:$0xff]  }
 0xf35   :  { %v3624_v8 = vpop.f32.mrb[78].mxu0  ;;  %v6060_v51 = vpop.eup %6059  ;;  %v3751_v61 = vadd.f32 1.0, %v6058_v54  ;;  %6077 = verf.f32 %v3676_v30  ;;  %v3774_v34 = vmul.f32 %v3742_v23, %v7041_v52  ;;  %v3681_v59 = vmul.f32 0.70710677, %v7073_v1 }
 0xf36   :  { %v3573_v25 = vpop.f32.mrb[55].mxu1  ;;  %v3626_v5 = vpop.f32.mrb[79].mxu0  ;;  %v3750_v50 = vadd.f32 1.0, %v6060_v51  ;;  %v3642_v21 = vmul.f32 0.5, %v7052_v57  ;;  %v3683_v42 = vmul.f32 0.70710677, %v7076_v53  ;;  %v7093_v30 = vmul.f32 %v3744_v40, %v7043_v9 }
 0xf37   :  { %v6062_v29 = vpop.eup %6061  ;;  %4662 = vmatpush1.bf16.msra.mxu1 %v5851_v27  ;;  %v3682_v27 = vmul.f32 0.70710677, %v7079_v38  ;;  %v3781_v4 = vmul.f32 %v3749_v44, %v7047_v33  ;;  %v3644_v52 = vmul.f32 0.5, %v3617_v46  ;;  %v3684_v19 = vmul.f32 0.70710677, %v7082_v6 }
 0xf38   :  { %v6064_v48 = vpop.eup %6063  ;;  %v3752_v2 = vadd.f32 1.0, %v6062_v29  ;;  %4663 = vmatprep.subr.bf16.mxu1 %v5856_v32  ;;  %v7098_v32 = vmul.f32 %v3751_v61, %v7049_v0  ;;  %v3782_v29 = vmul.f32 %v3750_v50, %v7054_v47  ;;  %6079 = verf.f32 %v3681_v59  ;;  %v5862_v0 = vld [vmem:[#allocation13 + $0x1f4] ss:$8 sps:$4 sm:$0xff]  }
 0xf39   :  { %v6066_v54 = vpop.eup %6065  ;;  %v3729_v22 = vadd.f32 1.0, %v6064_v48  ;;  %v7102_v57 = vadd.f32 %v3571_v13, %v7022_v12  ;;  %v5857_v48 = vld [vmem:[#allocation13 + $0x1e0] ss:$8 sps:$4 sm:$0xff]   ;;  %6081 = verf.f32 %v3683_v42  ;;  %v7108_v33 = vadd.f32 %v3624_v8, %v7025_v3 }
 0xf3a   :  { %v6068_v51 = vpop.eup %6067  ;;  %v7105_v9 = vmul.f32 %v3752_v2, %v7056_v18  ;;  %v3731_v44 = vadd.f32 1.0, %v6066_v54  ;;  %6083 = verf.f32 %v3682_v27  ;;  %v7118_v8 = vadd.f32 %v3573_v25, %v7030_v39 }
 0xf3b   :  { %v6070_v23 = vpop.eup %6069  ;;  %4664 = vmatpush1.bf16.msra.mxu1 %v5854_v17  ;;  %v7111_v46 = vmul.f32 %v3729_v22, %v7058_v37  ;;  %v3730_v47 = vadd.f32 1.0, %v6068_v51  ;;  %6085 = verf.f32 %v3684_v19  ;;  %v3689_v61 = vmul.f32 0.70710677, %v7102_v57 }
 0xf3c   :  { %v6072_v16 = vpop.eup %6071  ;;  %4665 = vmatprep.subr.bf16.mxu1 %v5859_v55  ;;  %v3732_v13 = vadd.f32 1.0, %v6070_v23  ;;  %v3691_v18 = vmul.f32 0.70710677, %v7108_v33  ;;  %v7121_v37 = vadd.f32 %v3626_v5, %v7033_v62  ;;  %v3798_v2 = vpack.c.bf16 %v3782_v29, %v3774_v34  ;;  %v5860_v55 = vld [vmem:[#allocation13 + $0x1f0] ss:$8 sps:$4 sm:$0xff]  }
 0xf3d   :  { %v3737_v40 = vadd.f32 1.0, %v6072_v16  ;;  %v6074_v12 = vpop.eup %6073  ;;  %6087 = verf.f32 %v3689_v61  ;;  %v3797_v59 = vpack.c.bf16 %v3781_v4, %v7068_v58  ;;  %v7125_v22 = vmul.f32 %v3731_v44, %v7061_v7  ;;  %v5865_v62 = vld [vmem:[#allocation13 + $0x204] ss:$8 sps:$4 sm:$0xff]   ;;  %v5868_v29 = vld [vmem:[#allocation13 + $0x214] ss:$8 sps:$4 sm:$0xff]  }
 0xf3e   :  { %v6076_v50 = vpop.eup %6075  ;;  %v3739_v3 = vadd.f32 1.0, %v6074_v12  ;;  %6089 = verf.f32 %v3691_v18  ;;  %v7133_v25 = vmul.f32 %v3730_v47, %v7063_v20  ;;  %v3690_v34 = vmul.f32 0.70710677, %v7118_v8  ;;  %4626 = vmatprep.mubr.bf16.mxu1 %v3798_v2  ;;  %v5866_v61 = vld [vmem:[#allocation13 + $0x210] ss:$8 sps:$4 sm:$0xff]  }
 0xf3f   :  { %v7115_v17 = vmul.f32 %v3737_v40, %v3641_v63  ;;  %4666 = vmatpush1.bf16.msra.mxu1 %v5857_v48  ;;  %v3738_v16 = vadd.f32 1.0, %v6076_v50  ;;  %v6078_v54 = vpop.eup %6077  ;;  %v3692_v42 = vmul.f32 0.70710677, %v7121_v37  ;;  %v3799_v27 = vpack.c.bf16 %v7098_v32, %v7085_v43 }
 0xf40   :  { %4667 = vmatprep.subr.bf16.mxu1 %v5862_v0  ;;  %v7130_v39 = vmul.f32 %v3739_v3, %v7070_v49  ;;  %v3740_v58 = vadd.f32 1.0, %v6078_v54  ;;  %4627 = vmatmul.mubr.bf16.gmra.mrb[60].mxu1 %v3797_v59  ;;  %v3800_v49 = vpack.c.bf16 %v7105_v9, %v7093_v30  ;;  %v7146_v20 = vmul.f32 %v3732_v13, %v7065_v10 }
 0xf41   :  { %v3793_v63 = vpack.c.bf16 %v7115_v17, %v7111_v46  ;;  %v7135_v5 = vmul.f32 %v3738_v16, %v3642_v21  ;;  %6091 = verf.f32 %v3690_v34  ;;  %v7250_v51 = vpack.c.bf16 %v7005_v31, %v7001_v45  ;;  %v5920_v46 = vld [vmem:[#allocation13 + $0x330] ss:$8 sps:$4 sm:$0xff]   ;;  %v5925_v17 = vld [vmem:[#allocation13 + $0x344] ss:$8 sps:$4 sm:$0xff]  }
 0xf42   :  { %v3795_v7 = vpack.c.bf16 %v7130_v39, %v7125_v22  ;;  %v7148_v21 = vmul.f32 %v3740_v58, %v3644_v52  ;;  %v6080_v19 = vpop.eup %6079  ;;  %6093 = verf.f32 %v3692_v42  ;;  %v5863_v52 = vld [vmem:[#allocation13 + $0x200] ss:$8 sps:$4 sm:$0xff]   ;;  %v3649_v31 = vmul.f32 0.5, %v7073_v1  ;;  %v5871_v1 = vld [vmem:[#allocation13 + $0x224] ss:$8 sps:$4 sm:$0xff]  }
 0xf43   :  { %4669 = vmatprep.mubr.bf16.mxu1 %v7250_v51  ;;  %4668 = vmatpush1.bf16.msra.mxu1 %v5860_v55  ;;  %v3794_v4 = vpack.c.bf16 %v7135_v5, %v7133_v25  ;;  %v6082_v30 = vpop.eup %6081  ;;  %v3745_v32 = vadd.f32 1.0, %v6080_v19  ;;  %v3657_v44 = vmul.f32 0.5, %v7102_v57  ;;  %v7251_v47 = vpack.c.bf16 %v6999_v35, %v6997_v60  ;;  %v5869_v5 = vld [vmem:[#allocation13 + $0x220] ss:$8 sps:$4 sm:$0xff]   ;;  %v5877_v19 = vld [vmem:[#allocation13 + $0x244] ss:$8 sps:$4 sm:$0xff]  }
 0xf44   :  { %4690 = vmatprep.subr.bf16.mxu1 %v5865_v62  ;;  %v3796_v43 = vpack.c.bf16 %v7148_v21, %v7146_v20  ;;  %v6084_v10 = vpop.eup %6083  ;;  %v3747_v9 = vadd.f32 1.0, %v6082_v30  ;;  %v3651_v40 = vmul.f32 0.5, %v7076_v53  ;;  %v3659_v12 = vmul.f32 0.5, %v7108_v33  ;;  %v5875_v30 = vld [vmem:[#allocation13 + $0x240] ss:$8 sps:$4 sm:$0xff]  }
 0xf45   :  { %v6086_v23 = vpop.eup %6085  ;;  %v7164_v18 = vmul.f32 %v3745_v32, %v3649_v31  ;;  %v3746_v50 = vadd.f32 1.0, %v6084_v10  ;;  %v3650_v33 = vmul.f32 0.5, %v7079_v38  ;;  %v3658_v2 = vmul.f32 0.5, %v7118_v8  ;;  %v5874_v38 = vld [vmem:[#allocation13 + $0x234] ss:$8 sps:$4 sm:$0xff]  }
 0xf46   :  { %v7168_v16 = vmul.f32 %v3747_v9, %v3651_v40  ;;  %v3748_v60 = vadd.f32 1.0, %v6086_v23  ;;  %v3652_v54 = vmul.f32 0.5, %v7082_v6  ;;  %v3660_v62 = vmul.f32 0.5, %v7121_v37  ;;  %v5872_v37 = vld [vmem:[#allocation13 + $0x230] ss:$8 sps:$4 sm:$0xff]  }
 0xf47   :  { %v6088_v48 = vpop.eup %6087  ;;  %v7180_v34 = vmul.f32 %v3746_v50, %v3650_v33  ;;  %v5880_v10 = vld [vmem:[#allocation13 + $0x254] ss:$8 sps:$4 sm:$0xff]   ;;  %v5878_v23 = vld [vmem:[#allocation13 + $0x250] ss:$8 sps:$4 sm:$0xff]   ;;  %v5895_v31 = vld [vmem:[#allocation13 + $0x2a4] ss:$8 sps:$4 sm:$0xff]  }
 0xf48   :  { %v6090_v45 = vpop.eup %6089  ;;  %v3753_v0 = vadd.f32 1.0, %v6088_v48  ;;  %4670 = vmatmul.mubr.bf16.vlgmr.msra.gmra.mrb[56].mxu1 %v7251_v47  ;;  %v7184_v8 = vmul.f32 %v3748_v60, %v3652_v54  ;;  %v5886_v32 = vld [vmem:[#allocation13 + $0x274] ss:$8 sps:$4 sm:$0xff]   ;;  %v5887_v48 = vld [vmem:[#allocation13 + $0x280] ss:$8 sps:$4 sm:$0xff]  }
 0xf49   :  { %v3755_v13 = vadd.f32 1.0, %v6090_v45  ;;  %4679 = vmatprep.mubr.bf16.mxu1 %v3800_v49  ;;  %4691 = vmatpush1.bf16.msra.mxu1 %v5863_v52  ;;  %v5883_v52 = vld [vmem:[#allocation13 + $0x264] ss:$8 sps:$4 sm:$0xff]   ;;  %v5892_v9 = vld [vmem:[#allocation13 + $0x294] ss:$8 sps:$4 sm:$0xff]  }
 0xf4a   :  { %v7166_v3 = vmul.f32 %v3753_v0, %v3657_v44  ;;  %4692 = vmatprep.subr.bf16.mxu1 %v5868_v29  ;;  %v5889_v29 = vld [vmem:[#allocation13 + $0x284] ss:$8 sps:$4 sm:$0xff]   ;;  %v5890_v45 = vld [vmem:[#allocation13 + $0x290] ss:$8 sps:$4 sm:$0xff]   ;;  %v5893_v44 = vld [vmem:[#allocation13 + $0x2a0] ss:$8 sps:$4 sm:$0xff]  }
 0xf4b   :  { %v6092_v57 = vpop.eup %6091  ;;  %v7170_v35 = vmul.f32 %v3755_v13, %v3659_v12  ;;  %v5898_v0 = vld [vmem:[#allocation13 + $0x2b4] ss:$8 sps:$4 sm:$0xff]   ;;  %v5896_v47 = vld [vmem:[#allocation13 + $0x2b0] ss:$8 sps:$4 sm:$0xff]   ;;  %v5901_v40 = vld [vmem:[#allocation13 + $0x2c4] ss:$8 sps:$4 sm:$0xff]  }
 0xf4c   :  { %v6094_v53 = vpop.eup %6093  ;;  %v3754_v59 = vadd.f32 1.0, %v6092_v57  ;;  %v3801_v55 = vpack.c.bf16 %v7166_v3, %v7164_v18  ;;  %v5899_v12 = vld [vmem:[#allocation13 + $0x2c0] ss:$8 sps:$4 sm:$0xff]   ;;  %v5904_v13 = vld [vmem:[#allocation13 + $0x2d4] ss:$8 sps:$4 sm:$0xff]  }
 0xf4d   :  { %v3756_v25 = vadd.f32 1.0, %v6094_v53  ;;  %4693 = vmatpush1.bf16.msra.mxu1 %v5866_v61  ;;  %v3803_v58 = vpack.c.bf16 %v7170_v35, %v7168_v16  ;;  %v5902_v61 = vld [vmem:[#allocation13 + $0x2d0] ss:$8 sps:$4 sm:$0xff]   ;;  %v5907_v50 = vld [vmem:[#allocation13 + $0x2e4] ss:$8 sps:$4 sm:$0xff]  }
 0xf4e   :  { %v7182_v42 = vmul.f32 %v3754_v59, %v3658_v2  ;;  %4694 = vmatprep.subr.bf16.mxu1 %v5871_v1  ;;  %v5905_v1 = vld [vmem:[#allocation13 + $0x2e0] ss:$8 sps:$4 sm:$0xff]   ;;  %v5910_v57 = vld [vmem:[#allocation13 + $0x2f4] ss:$8 sps:$4 sm:$0xff]   ;;  %v5908_v60 = vld [vmem:[#allocation13 + $0x2f0] ss:$8 sps:$4 sm:$0xff]  }
 0xf4f   :  { %v7186_v49 = vmul.f32 %v3756_v25, %v3660_v62  ;;  %v5913_v53 = vld [vmem:[#allocation13 + $0x304] ss:$8 sps:$4 sm:$0xff]   ;;  %v5911_v33 = vld [vmem:[#allocation13 + $0x300] ss:$8 sps:$4 sm:$0xff]   ;;  %v5916_v2 = vld [vmem:[#allocation13 + $0x314] ss:$8 sps:$4 sm:$0xff]  }
 0xf50   :  { %4680 = vmatmul.mubr.bf16.gmra.mrb[60].mxu1 %v3799_v27  ;;  %v3802_v6 = vpack.c.bf16 %v7182_v42, %v7180_v34  ;;  %v5881_v27 = vld [vmem:[#allocation13 + $0x260] ss:$8 sps:$4 sm:$0xff]   ;;  %v5914_v59 = vld [vmem:[#allocation13 + $0x310] ss:$8 sps:$4 sm:$0xff]   ;;  %v5919_v54 = vld [vmem:[#allocation13 + $0x324] ss:$8 sps:$4 sm:$0xff]  }
 0xf51   :  { %4695 = vmatpush1.bf16.msra.mxu1 %v5869_v5  ;;  %4722 = vmatprep.mubr.bf16.mxu1 %v3794_v4  ;;  %v3804_v51 = vpack.c.bf16 %v7186_v49, %v7184_v8  ;;  %v5884_v4 = vld [vmem:[#allocation13 + $0x270] ss:$8 sps:$4 sm:$0xff]   ;;  %v5917_v62 = vld [vmem:[#allocation13 + $0x320] ss:$8 sps:$4 sm:$0xff]   ;;  %v5922_v25 = vld [vmem:[#allocation13 + $0x334] ss:$8 sps:$4 sm:$0xff]  }
 0xf52   :  { %4696 = vmatprep.subr.bf16.mxu1 %v5874_v38  ;;  %v5928_v5 = vld [vmem:[#allocation13 + $0x354] ss:$8 sps:$4 sm:$0xff]   ;;  %v5926_v34 = vld [vmem:[#allocation13 + $0x350] ss:$8 sps:$4 sm:$0xff]   ;;  %v5931_v42 = vld [vmem:[#allocation13 + $0x364] ss:$8 sps:$4 sm:$0xff]  }
 0xf53   :  { %v5929_v38 = vld [vmem:[#allocation13 + $0x360] ss:$8 sps:$4 sm:$0xff]   ;;  %v5934_v18 = vld [vmem:[#allocation13 + $0x374] ss:$8 sps:$4 sm:$0xff]   ;;  %v5932_v3 = vld [vmem:[#allocation13 + $0x370] ss:$8 sps:$4 sm:$0xff]  }
 0xf54   :  { %v5937_v20 = vld [vmem:[#allocation13 + $0x384] ss:$8 sps:$4 sm:$0xff]   ;;  %v5935_v21 = vld [vmem:[#allocation13 + $0x380] ss:$8 sps:$4 sm:$0xff]  }
 0xf55   :  { %4697 = vmatpush1.bf16.msra.mxu1 %v5872_v37  ;;  %v5941_v37 = vld [vmem:[#allocation13 + $0x3a0] ss:$8 sps:$4 sm:$0xff]  }
 0xf56   :  { %4698 = vmatprep.subr.bf16.mxu1 %v5877_v19  ;;  %v5946_v19 = vld [vmem:[#allocation13 + $0x3b4] ss:$8 sps:$4 sm:$0xff]  }
 0xf59   :  { %4699 = vmatpush1.bf16.msra.mxu1 %v5875_v30  ;;  %v5944_v30 = vld [vmem:[#allocation13 + $0x3b0] ss:$8 sps:$4 sm:$0xff]  }
 0xf5a   :  { %4700 = vmatprep.subr.bf16.mxu1 %v5880_v10  ;;  %v5949_v10 = vld [vmem:[#allocation13 + $0x3c4] ss:$8 sps:$4 sm:$0xff]  }
 0xf5d   :  { %4701 = vmatpush1.bf16.msra.mxu1 %v5878_v23  ;;  %v5947_v23 = vld [vmem:[#allocation13 + $0x3c0] ss:$8 sps:$4 sm:$0xff]  }
 0xf5e   :  { %4702 = vmatprep.subr.bf16.mxu1 %v5883_v52  ;;  %v5952_v52 = vld [vmem:[#allocation13 + $0x3d4] ss:$8 sps:$4 sm:$0xff]  }
 0xf61   :  { %4703 = vmatpush1.bf16.msra.mxu1 %v5881_v27  ;;  %v5950_v27 = vld [vmem:[#allocation13 + $0x3d0] ss:$8 sps:$4 sm:$0xff]  }
 0xf62   :  { %4704 = vmatprep.subr.bf16.mxu1 %v5886_v32  ;;  %v5955_v32 = vld [vmem:[#allocation13 + $0x3e4] ss:$8 sps:$4 sm:$0xff]  }
 0xf65   :  { %4705 = vmatpush1.bf16.msra.mxu1 %v5884_v4  ;;  %v5953_v4 = vld [vmem:[#allocation13 + $0x3e0] ss:$8 sps:$4 sm:$0xff]  }
 0xf66   :  { %4706 = vmatprep.subr.bf16.mxu1 %v5889_v29  ;;  %v5958_v29 = vld [vmem:[#allocation13 + $0x3f4] ss:$8 sps:$4 sm:$0xff]  }
 0xf69   :  { %4707 = vmatpush1.bf16.msra.mxu1 %v5887_v48  ;;  %v5956_v48 = vld [vmem:[#allocation13 + $0x3f0] ss:$8 sps:$4 sm:$0xff]  }
 0xf6a   :  { %4708 = vmatprep.subr.bf16.mxu1 %v5892_v9  ;;  %v152_v9 = vld [vmem:[#allocation14 + $0x5] ss:$8 sm:$0x3] }
 0xf6d   :  { %4709 = vmatpush1.bf16.msra.mxu1 %v5890_v45  ;;  %v3937_v45 = vrot.slane %v152_v9, %v6549_v11 }
 0xf6e   :  { %4710 = vmatprep.subr.bf16.mxu1 %v5895_v31  ;;  %v3941_v31 = vrot.slane %v152_v9, %v6552_v24 }
 0xf71   :  { %4711 = vmatpush1.bf16.msra.mxu1 %v5893_v44 }
 0xf72   :  { %4712 = vmatprep.subr.bf16.mxu1 %v5898_v0 }
 0xf75   :  { %4713 = vmatpush1.bf16.msra.mxu1 %v5896_v47 }
 0xf76   :  { %4714 = vmatprep.subr.bf16.mxu1 %v5901_v40 }
 0xf79   :  { %4715 = vmatpush1.bf16.msra.mxu1 %v5899_v12 }
 0xf7a   :  { %4716 = vmatprep.subr.bf16.mxu1 %v5904_v13 }
 0xf7d   :  { %4717 = vmatpush1.bf16.msra.mxu1 %v5902_v61 }
 0xf7e   :  { %4718 = vmatprep.subr.bf16.mxu1 %v5907_v50 }
 0xf81   :  { %4719 = vmatpush1.bf16.msra.mxu1 %v5905_v1 }
 0xf82   :  { %4720 = vmatprep.subr.bf16.mxu1 %v5910_v57 }
 0xf85   :  { %4721 = vmatpush1.bf16.msra.mxu1 %v5908_v60 }
 0xf86   :  { %4743 = vmatprep.subr.bf16.mxu1 %v5913_v53 }
 0xf88   :  { %4723 = vmatmul.mubr.bf16.vlgmr.msra.gmra.mrb[56].mxu1 %v3793_v63  ;;  %v5923_v63 = vld [vmem:[#allocation13 + $0x340] ss:$8 sps:$4 sm:$0xff]  }
 0xf89   :  { %4732 = vmatprep.mubr.bf16.mxu1 %v3802_v6  ;;  %4744 = vmatpush1.bf16.msra.mxu1 %v5911_v33  ;;  %v5943_v6 = vld [vmem:[#allocation13 + $0x3a4] ss:$8 sps:$4 sm:$0xff]  }
 0xf8a   :  { %4745 = vmatprep.subr.bf16.mxu1 %v5916_v2  ;;  %v7252_v2 = vld [vmem:[#allocation23_spill] sm:$0xff] }
 0xf8d   :  { %4746 = vmatpush1.bf16.msra.mxu1 %v5914_v59 }
 0xf8e   :  { %4747 = vmatprep.subr.bf16.mxu1 %v5919_v54 }
 0xf90   :  { %4733 = vmatmul.mubr.bf16.gmra.mrb[60].mxu1 %v3801_v55  ;;  %v5938_v55 = vld [vmem:[#allocation13 + $0x390] ss:$8 sps:$4 sm:$0xff]  }
 0xf91   :  { %4748 = vmatpush1.bf16.msra.mxu1 %v5917_v62  ;;  %4775 = vmatprep.mubr.bf16.mxu1 %v3796_v43  ;;  %v5940_v43 = vld [vmem:[#allocation13 + $0x394] ss:$8 sps:$4 sm:$0xff]  }
 0xf92   :  { %4749 = vmatprep.subr.bf16.mxu1 %v5922_v25 }
 0xf95   :  { %4750 = vmatpush1.bf16.msra.mxu1 %v5920_v46 }
 0xf96   :  { %4751 = vmatprep.subr.bf16.mxu1 %v5925_v17 }
 0xf99   :  { %4752 = vmatpush1.bf16.msra.mxu1 %v5923_v63 }
 0xf9a   :  { %4753 = vmatprep.subr.bf16.mxu1 %v5928_v5 }
 0xf9d   :  { %4754 = vmatpush1.bf16.msra.mxu1 %v5926_v34 }
 0xf9e   :  { %4755 = vmatprep.subr.bf16.mxu1 %v5931_v42 }
 0xfa1   :  { %4756 = vmatpush1.bf16.msra.mxu1 %v5929_v38 }
 0xfa2   :  { %4757 = vmatprep.subr.bf16.mxu1 %v5934_v18 }
 0xfa5   :  { %4758 = vmatpush1.bf16.msra.mxu1 %v5932_v3 }
 0xfa6   :  { %4759 = vmatprep.subr.bf16.mxu1 %v5937_v20 }
 0xfa9   :  { %4760 = vmatpush1.bf16.msra.mxu1 %v5935_v21 }
 0xfaa   :  { %4761 = vmatprep.subr.bf16.mxu1 %v5940_v43 }
 0xfad   :  { %4762 = vmatpush1.bf16.msra.mxu1 %v5938_v55 }
 0xfae   :  { %4763 = vmatprep.subr.bf16.mxu1 %v5943_v6 }
 0xfb1   :  { %4764 = vmatpush1.bf16.msra.mxu1 %v5941_v37 }
 0xfb2   :  { %4765 = vmatprep.subr.bf16.mxu1 %v5946_v19 }
 0xfb5   :  { %4766 = vmatpush1.bf16.msra.mxu1 %v5944_v30 }
 0xfb6   :  { %4767 = vmatprep.subr.bf16.mxu1 %v5949_v10 }
 0xfb9   :  { %4768 = vmatpush1.bf16.msra.mxu1 %v5947_v23 }
 0xfba   :  { %4769 = vmatprep.subr.bf16.mxu1 %v5952_v52 }
 0xfbd   :  { %4770 = vmatpush1.bf16.msra.mxu1 %v5950_v27 }
 0xfbe   :  { %4771 = vmatprep.subr.bf16.mxu1 %v5955_v32 }
 0xfc1   :  { %4772 = vmatpush1.bf16.msra.mxu1 %v5953_v4 }
 0xfc2   :  { %4773 = vmatprep.subr.bf16.mxu1 %v5958_v29 }
 0xfc5   :  { %4774 = vmatpush1.bf16.msra.mxu1 %v5956_v48 }
 0xfc8   :  { %4776 = vmatmul.mubr.bf16.vlgmr.msra.gmra.mrb[56].mxu1 %v3795_v7 }
 0xfc9   :  { %4785 = vmatprep.mubr.bf16.mxu1 %v3804_v51 }
 0xfd0   :  { %4786 = vmatmul.mubr.bf16.gmra.mrb[60].mxu1 %v3803_v58 }
0x109b   :  { %v4777_v44 = vpop.f32.mrb[56].mxu1 }
0x109c   :  { %v5483_v0 = vadd.f32 %v4777_v44, %v3937_v45  ;;  %v4779_v47 = vpop.f32.mrb[57].mxu1 }
0x109d   :  { %v5484_v40 = vadd.f32 %v4779_v47, %v3941_v31  ;;  %v4781_v12 = vpop.f32.mrb[58].mxu1 }
0x109e   :  { %v4796_v22 = vadd.f32 %v5483_v0, %v6918_v14  ;;  %v5485_v39 = vadd.f32 %v4781_v12, %v3937_v45  ;;  %v4783_v7 = vpop.f32.mrb[59].mxu1 }
0x109f   :  { %v4797_v8 = vadd.f32 %v5484_v40, %v6912_v36  ;;  %v5486_v49 = vadd.f32 %v4783_v7, %v3941_v31  ;;  %v154_v40 = vld [vmem:[#allocation14 + $0x6] ss:$8 sm:$0x3] }
0x10a0   :  { %v4798_v16 = vadd.f32 %v5485_v39, %v6921_v56  ;;  %v156_v39 = vld [vmem:[#allocation14 + $0x7] ss:$8 sm:$0x3] }
0x10a1   :  { %v4799_v35 = vadd.f32 %v5486_v49, %v6915_v41  ;;  %v4804_v58 = vadd.f32 %v4797_v8, %v4796_v22  ;;  %v4876_v49 = vrot.slane %v154_v40, %v6552_v24 }
0x10a3   :  { %v4787_v51 = vpop.f32.mrb[60].mxu1  ;;  %4805 = vadd.xlane.f32.xlu0 %v4804_v58  ;;  %v4807_v57 = vadd.f32 %v4799_v35, %v4798_v16  ;;  %v4891_v58 = vrot.slane %v156_v39, %v6549_v11 }
0x10a4   :  { %v5487_v13 = vadd.f32 %v4787_v51, %v3937_v45  ;;  %v4789_v61 = vpop.f32.mrb[61].mxu1  ;;  %v4895_v51 = vrot.slane %v156_v39, %v6552_v24 }
0x10a5   :  { %v5488_v50 = vadd.f32 %v4789_v61, %v3941_v31  ;;  %v4791_v1 = vpop.f32.mrb[62].mxu1 }
0x10a6   :  { %v4800_v60 = vadd.f32 %v5487_v13, %v6956_v26  ;;  %v5489_v14 = vadd.f32 %v4791_v1, %v3937_v45  ;;  %v4793_v53 = vpop.f32.mrb[63].mxu1 }
0x10a7   :  { %v4801_v33 = vadd.f32 %v5488_v50, %v6950_v15  ;;  %v5490_v36 = vadd.f32 %v4793_v53, %v3941_v31  ;;  %4808 = vadd.xlane.f32.xlu0 %v4807_v57 }
0x10a8   :  { %v4802_v56 = vadd.f32 %v5489_v14, %v6959_v28 }
0x10a9   :  { %v4803_v41 = vadd.f32 %v5490_v36, %v7252_v2  ;;  %v4810_v59 = vadd.f32 %v4801_v33, %v4800_v60 }
0x10ab   :  { %4811 = vadd.xlane.f32.xlu0 %v4810_v59  ;;  %v4813_v54 = vadd.f32 %v4803_v41, %v4802_v56 }
0x10af   :  { %4814 = vadd.xlane.f32.xlu0 %v4813_v54 }
0x1130   :  { %v4806_v62 = vpop.xlane.xlu0 %4805 }
0x1131   :  { %v4816_v25 = vmul.f32 0.00390625, %v4806_v62 }
0x1133   :  { %v4820_v46 = vsub.f32 %v4796_v22, %v4816_v25  ;;  %v4821_v17 = vsub.f32 %v4797_v8, %v4816_v25  ;;  %v4872_v8 = vrot.slane %v154_v40, %v6549_v11 }
0x1134   :  { %v4809_v63 = vpop.xlane.xlu0 %4808 }
0x1135   :  { %v4817_v26 = vmul.f32 0.00390625, %v4809_v63  ;;  %v4828_v5 = vmul.f32 %v4820_v46, %v4820_v46  ;;  %v4829_v34 = vmul.f32 %v4821_v17, %v4821_v17 }
0x1137   :  { %v4822_v42 = vsub.f32 %v4798_v16, %v4817_v26  ;;  %v4823_v15 = vsub.f32 %v4799_v35, %v4817_v26  ;;  %v4836_v38 = vadd.f32 %v4829_v34, %v4828_v5 }
0x1138   :  { %v4812_v18 = vpop.xlane.xlu0 %4811 }
0x1139   :  { %v4818_v3 = vmul.f32 0.00390625, %v4812_v18  ;;  %4837 = vadd.xlane.f32.xlu0 %v4836_v38  ;;  %v4830_v28 = vmul.f32 %v4822_v42, %v4822_v42  ;;  %v4831_v20 = vmul.f32 %v4823_v15, %v4823_v15 }
0x113b   :  { %v4824_v21 = vsub.f32 %v4800_v60, %v4818_v3  ;;  %v4825_v43 = vsub.f32 %v4801_v33, %v4818_v3  ;;  %v4839_v55 = vadd.f32 %v4831_v20, %v4830_v28 }
0x113c   :  { %v4815_v6 = vpop.xlane.xlu0 %4814 }
0x113d   :  { %v4819_v37 = vmul.f32 0.00390625, %v4815_v6  ;;  %4840 = vadd.xlane.f32.xlu1 %v4839_v55  ;;  %v4832_v19 = vmul.f32 %v4824_v21, %v4824_v21  ;;  %v4833_v30 = vmul.f32 %v4825_v43, %v4825_v43 }
0x113f   :  { %v4826_v10 = vsub.f32 %v4802_v56, %v4819_v37  ;;  %v4827_v23 = vsub.f32 %v4803_v41, %v4819_v37  ;;  %v4842_v52 = vadd.f32 %v4833_v30, %v4832_v19 }
0x1141   :  { %4843 = vadd.xlane.f32.xlu0 %v4842_v52  ;;  %v4834_v27 = vmul.f32 %v4826_v10, %v4826_v10  ;;  %v4835_v32 = vmul.f32 %v4827_v23, %v4827_v23 }
0x1143   :  { %v4845_v4 = vadd.f32 %v4835_v32, %v4834_v27 }
0x1145   :  { %4846 = vadd.xlane.f32.xlu1 %v4845_v4 }
0x11c6   :  { %v4838_v29 = vpop.xlane.xlu0 %4837 }
0x11c7   :  { %v4848_v48 = vmul.f32 0.00390625, %v4838_v29 }
0x11c9   :  { %v4852_v9 = vadd.f32 1e-05, %v4848_v48 }
0x11ca   :  { %v4841_v45 = vpop.xlane.xlu1 %4840 }
0x11cb   :  { %6095 = vrsqrt.f32 %v4852_v9  ;;  %v4849_v31 = vmul.f32 0.00390625, %v4841_v45 }
0x11cd   :  { %v4853_v44 = vadd.f32 1e-05, %v4849_v31 }
0x11ce   :  { %v4844_v0 = vpop.xlane.xlu0 %4843 }
0x11cf   :  { %6097 = vrsqrt.f32 %v4853_v44  ;;  %v4850_v47 = vmul.f32 0.00390625, %v4844_v0 }
0x11d1   :  { %v4854_v12 = vadd.f32 1e-05, %v4850_v47 }
0x11d2   :  { %v4847_v22 = vpop.xlane.xlu1 %4846 }
0x11d3   :  { %6099 = vrsqrt.f32 %v4854_v12  ;;  %v4851_v7 = vmul.f32 0.00390625, %v4847_v22 }
0x11d5   :  { %v6096_v16 = vpop.eup %6095  ;;  %v4855_v35 = vadd.f32 1e-05, %v4851_v7 }
0x11d6   :  { %v4860_v13 = vmul.f32 %v6096_v16, %v4820_v46  ;;  %v4861_v61 = vmul.f32 %v6096_v16, %v4821_v17 }
0x11d7   :  { %6101 = vrsqrt.f32 %v4855_v35 }
0x11d8   :  { %v4879_v50 = vmul.f32 %v4872_v8, %v4860_v13  ;;  %v4880_v1 = vmul.f32 %v4876_v49, %v4861_v61 }
0x11d9   :  { %v6098_v57 = vpop.eup %6097 }
0x11da   :  { %v4898_v60 = vadd.f32 %v4891_v58, %v4879_v50  ;;  %v4899_v14 = vadd.f32 %v4895_v51, %v4880_v1  ;;  %v4862_v53 = vmul.f32 %v6098_v57, %v4822_v42  ;;  %v4863_v33 = vmul.f32 %v6098_v57, %v4823_v15 }
0x11dc   :  { %4906 = vst [vmem:[#allocation16] sm:$0xff] %v4898_v60  ;;  %4907 = vst [vmem:[#allocation16 + $0x8] sm:$0xff] %v4899_v14  ;;  %v4881_v36 = vmul.f32 %v4872_v8, %v4862_v53  ;;  %v4882_v56 = vmul.f32 %v4876_v49, %v4863_v33 }
0x11dd   :  { %v6100_v2 = vpop.eup %6099 }
0x11de   :  { %v4900_v41 = vadd.f32 %v4891_v58, %v4881_v36  ;;  %v4901_v59 = vadd.f32 %v4895_v51, %v4882_v56  ;;  %v4864_v11 = vmul.f32 %v6100_v2, %v4824_v21  ;;  %v4865_v54 = vmul.f32 %v6100_v2, %v4825_v43 }
0x11e0   :  { %4908 = vst [vmem:[#allocation16 + $0x10] sm:$0xff] %v4900_v41  ;;  %4909 = vst [vmem:[#allocation16 + $0x18] sm:$0xff] %v4901_v59  ;;  %v4883_v24 = vmul.f32 %v4872_v8, %v4864_v11  ;;  %v4884_v62 = vmul.f32 %v4876_v49, %v4865_v54 }
0x11e1   :  { %v6102_v25 = vpop.eup %6101 }
0x11e2   :  { %v4902_v46 = vadd.f32 %v4891_v58, %v4883_v24  ;;  %v4903_v17 = vadd.f32 %v4895_v51, %v4884_v62  ;;  %v4866_v63 = vmul.f32 %v6102_v25, %v4826_v10  ;;  %v4867_v26 = vmul.f32 %v6102_v25, %v4827_v23 }
0x11e4   :  { %4910 = vst [vmem:[#allocation16 + $0x20] sm:$0xff] %v4902_v46  ;;  %4911 = vst [vmem:[#allocation16 + $0x28] sm:$0xff] %v4903_v17  ;;  %v4885_v5 = vmul.f32 %v4872_v8, %v4866_v63  ;;  %v4886_v34 = vmul.f32 %v4876_v49, %v4867_v26 }
0x11e6   :  { %v4904_v42 = vadd.f32 %v4891_v58, %v4885_v5  ;;  %v4905_v15 = vadd.f32 %v4895_v51, %v4886_v34 }
0x11e8   :  { %4912 = vst [vmem:[#allocation16 + $0x30] sm:$0xff] %v4904_v42  ;;  %4913 = vst [vmem:[#allocation16 + $0x38] sm:$0xff] %v4905_v15 }
0x11e9   :  { %6290 = shalt.err (!%p6287_p12)
}
0x11ea   :  { %s6291_s21 = scalar_lea.hbm %s7247_s8, 1024 }
0x11eb   :  { %p6292_p13 = scmp.ne.s32.totalorder %s7247_s8, %s6291_s21  ;;  %p6295_p0 = scmp.lt.u32.totalorder %s6291_s21, %s7247_s8 }
0x11ed   :  { %p6297_p1 = pnand %p6295_p0, %p6292_p13 }
0x11ef   :  { %6300 = shalt.err (!%p6297_p1)
}
0x11f0   :  { %4925 = dma.vmem_to_hbm [thread:$0]  %s4920_s5, 1024, %s7247_s8, [#allocation4], %s6314_s15, %s6314_s15, %s6315_s16  }
0x11f1   :  { %6311 = dma.done.wait [#allocation4], 1024  }
0x11f2   :  { %6312 = vsyncadd [#allocation4], 4294966272 }
0x11f3   :  { %4929 = vsyncpa [#allocation3], 1 }
0x11f4   :  { %4930 = vsyncpa [#allocation6], 1 }
0x11f5   :  { %4931 = vsyncpa [#allocation9], 1 }
0x11f6   :  { %4932 = vsyncpa [#allocation12], 1 }
0x11f7   :  { %4933 = vsyncpa [#allocation15], 1 }
0x11f8   :  { %4934 = vsyncpa [#allocation4], 1 }

</bundles_post_ra>
